<compile_context>
chip_gen: v6e
topology: v6e:2x2x1
jax: 0.10.0
libtpu: 0.0.40
codegen_flags: <defaults>
</compile_context>

<pallas_src>
import numpy as np
import jax
import jax.numpy as jnp
from jax import lax
from jax.experimental import pallas as pl
from jax.experimental.pallas import tpu as pltpu

INTER = 24
BN_EPS = 1e-5
LANE = 128


def _round_up(n, m):
    return ((n + m - 1) // m) * m


# ---------------------------------------------------------------------------
# Host-side folding: Conv3d (K,1,1) -> dense matrix, conv bias + BN -> shift (+ a3).
# ---------------------------------------------------------------------------
def conv_spectral_to_matrix(w, b, in_len, stride, pad):
    """Fold a conv with spectral kernel K into a dense matrix over flattened
    (channel, depth) features; flat index = channel * depth_len + depth.
    Returns (M, b_flat) such that out_flat = in_flat @ M + b_flat."""
    c_out, c_in, k = w.shape
    out_len = (in_len + 2 * pad - k) // stride + 1
    m = np.zeros((c_in, in_len, c_out, out_len), dtype=np.float32)
    for o in range(c_out):
        for d in range(out_len):
            for kk in range(k):
                src = d * stride + kk - pad
                if 0 <= src < in_len:
                    m[:, src, o, d] = w[o, :, kk]
    return m.reshape(c_in * in_len, c_out * out_len), np.repeat(b, out_len)


def init_params(input_channels, feature_dim):
    rng = np.random.RandomState(0)
    conv_w = lambda co, ci, k: (0.1 * rng.standard_normal((co, ci, k))).astype(np.float32)
    conv_b = lambda co: (0.05 * rng.standard_normal((co,))).astype(np.float32)

    def bn(co):
        gamma = (1.0 + 0.1 * rng.standard_normal(co)).astype(np.float32)
        beta = (0.05 * rng.standard_normal(co)).astype(np.float32)
        mean = (0.05 * rng.standard_normal(co)).astype(np.float32)
        var = (1.0 + 0.1 * rng.rand(co)).astype(np.float32)
        return gamma, beta, mean, var

    d1 = (input_channels + 2 * 1 - 7) // 2 + 1   # conv1 output spectral length
    params = dict(
        w1=conv_w(INTER, 1, 7), b1=conv_b(INTER), bn1=bn(INTER),
        w2=conv_w(INTER, INTER, 7), b2=conv_b(INTER), bn2=bn(INTER),
        w3=conv_w(INTER, INTER, 7), b3=conv_b(INTER), bn3=bn(INTER),
        w4=conv_w(feature_dim, INTER, d1), b4=conv_b(feature_dim), bn4=bn(feature_dim),
    )
    return params, d1


def build_kernel_operands(params, input_channels, d1, feature_dim):
    hid = INTER * d1                       # 144 for C=16
    hid_pad = _round_up(hid, LANE)         # 256
    f_pad = _round_up(feature_dim, LANE)   # 128

    def bn_scale_shift(bn_p, b_flat, rep):
        gamma, beta, mean, var = bn_p
        scale = gamma / np.sqrt(var + BN_EPS)
        shift = beta - mean * scale
        a = np.repeat(scale, rep).astype(np.float32)
        c = (a * b_flat + np.repeat(shift, rep)).astype(np.float32)
        return a, c

    def pad_vec(v, width):
        return np.pad(v, (0, width - v.shape[0]))[None, :]

    def pad2d(m, rows, cols):
        return np.pad(m, ((0, rows - m.shape[0]), (0, cols - m.shape[1])))

    w1m, b1f = conv_spectral_to_matrix(params['w1'], params['b1'], input_channels, 2, 1)
    w2m, b2f = conv_spectral_to_matrix(params['w2'], params['b2'], d1, 1, 3)
    w3m, b3f = conv_spectral_to_matrix(params['w3'], params['b3'], d1, 1, 3)
    w4m, b4f = conv_spectral_to_matrix(params['w4'], params['b4'], d1, 1, 0)  # out_len == 1

    a1, c1 = bn_scale_shift(params['bn1'], b1f, d1)
    a2, c2 = bn_scale_shift(params['bn2'], b2f, d1)
    a3, c3 = bn_scale_shift(params['bn3'], b3f, d1)
    a4, c4 = bn_scale_shift(params['bn4'], b4f, 1)

    # Fold BN scales into the weight columns.  Layer 3's scale also multiplies the
    # residual, so a3 is additionally kept as a separate vector operand.
    w1m = w1m * a1[None, :]
    w2m = w2m * a2[None, :]
    w3m = w3m * a3[None, :]
    w4m = w4m * a4[None, :]

    # zero-pad to lane-dense widths: padded columns/shifts are 0 -> padded features
    # stay exactly 0 through the whole chain (incl. residual and pooling).
    w1m = pad2d(w1m, input_channels, hid_pad)
    w2m = pad2d(w2m, hid_pad, hid_pad)
    w3m = pad2d(w3m, hid_pad, hid_pad)
    w4m = pad2d(w4m, hid_pad, f_pad)

    c1p = pad_vec(c1, hid_pad)
    c2p = pad_vec(c2, hid_pad)
    a3p = pad_vec(a3, hid_pad)
    c3p = pad_vec(c3, hid_pad)
    c4p = pad_vec(c4, f_pad)

    to_bf16 = lambda z: jnp.asarray(z, dtype=jnp.bfloat16)
    to_f32 = lambda z: jnp.asarray(z, dtype=jnp.float32)
    return [to_bf16(w1m), to_f32(c1p),
            to_bf16(w2m), to_f32(c2p),
            to_bf16(w3m), to_f32(a3p), to_f32(c3p),
            to_bf16(w4m), to_f32(c4p)]


# ---------------------------------------------------------------------------
# Pallas kernel + wrapper.
# ---------------------------------------------------------------------------
def _vmem_capacity_bytes():
    try:
        return int(pltpu.get_tpu_info().vmem_capacity_bytes)
    except Exception:
        return 64 * 2**20          # conservative (v7x per-core) default


def spectral_encoder_pallas(x_bhwc, operands, feature_dim):
    """x_bhwc: (B, H, W, C) float32, channels-last (avoids a transpose pass)."""
    b, h, w, c = x_bhwc.shape
    hw = h * w
    x_flat = x_bhwc.reshape(b, hw, c)                 # free reshape (channels-last)

    (w1m, c1p, w2m, c2p, w3m, a3p, c3p, w4m, c4p) = operands
    hid_pad = c1p.shape[1]
    f_pad = c4p.shape[1]

    vmem_cap = _vmem_capacity_bytes()
    max_tp = 4096 if vmem_cap >= 96 * 2**20 else 2048   # v5e/v6e : v7x

    tp = hw if hw <= max_tp else max_tp               # pixel rows per grid step
    n_pix = (hw + tp - 1) // tp
    hw_pad = n_pix * tp
    need_correction = hw_pad != hw
    if need_correction:
        x_flat = jnp.pad(x_flat, ((0, 0), (0, hw_pad - hw), (0, 0)))

    # split the pixel axis into (outer 'parallel', inner 'arbitrary') so a second
    # TensorCore (v7x) has work even at batch 1; outer slices emit partial sums.
    n_outer = 2 if (n_pix % 2 == 0 and n_pix >= 2) else 1
    n_inner = n_pix // n_outer

    def kernel(x_ref,
               w1_ref, c1_ref,
               w2_ref, c2_ref,
               w3_ref, a3_ref, c3_ref,
               w4_ref, c4_ref,
               o_ref, acc_ref):
        pi = pl.program_id(2)

        @pl.when(pi == 0)
        def _():
            acc_ref[...] = jnp.zeros_like(acc_ref)

        x = x_ref[0].astype(jnp.bfloat16)                                  # (TP, C)
        # conv1+bn1+relu (scale folded into W1); fused epilogue -> single bf16 copy
        h1 = jnp.maximum(
            jnp.dot(x, w1_ref[...], preferred_element_type=jnp.float32) + c1_ref[...],
            0.0).astype(jnp.bfloat16)                                      # residual too
        # conv2+bn2+relu
        h2 = jnp.maximum(
            jnp.dot(h1, w2_ref[...], preferred_element_type=jnp.float32) + c2_ref[...],
            0.0).astype(jnp.bfloat16)
        # conv3 + residual, bn3+relu  (a3 applied to residual only; W3 carries a3)
        h3 = jnp.maximum(
            jnp.dot(h2, w3_ref[...], preferred_element_type=jnp.float32)
            + h1 * a3_ref[...] + c3_ref[...],
            0.0).astype(jnp.bfloat16)
        # conv4 (full spectral reduction) + bn4 + relu
        h4 = jnp.maximum(
            jnp.dot(h3, w4_ref[...], preferred_element_type=jnp.float32) + c4_ref[...],
            0.0)                                                           # (TP, F_PAD) f32

        # adaptive avg pool (1,1): running f32 partial sum over inner pixel tiles
        acc_ref[...] += jnp.sum(h4, axis=0, keepdims=True)

        @pl.when(pi == pl.num_programs(2) - 1)
        def _():
            o_ref[...] = acc_ref[...][None, :, :]

    # VMEM budget: (tp, C) f32 input block is lane-padded to 128 in VMEM; one bf16 +
    # one transient f32 copy per hidden layer, f32 for the last layer / accumulator.
    operand_bytes = sum(int(np.prod(z.shape)) * z.dtype.itemsize for z in operands)
    est = (2 * tp * LANE * 4                                   # double-buffered input
           + 2 * operand_bytes                                 # resident weights/shifts
           + tp * (3 * hid_pad * (4 + 2) + f_pad * 4 + LANE * 2)
           + 8 * f_pad * 4)
    vmem_limit = int(min(max(2 * est, 32 * 2**20), int(0.70 * vmem_cap)))

    def build_and_run(single_buffer_weights):
        def op_spec(z):
            if single_buffer_weights:
                return pl.BlockSpec(z.shape, lambda bi, oi, pi: (0, 0),
                                    pipeline_mode=pl.Buffered(1))
            return pl.BlockSpec(z.shape, lambda bi, oi, pi: (0, 0))

        in_specs = ([pl.BlockSpec((1, tp, c),
                                  lambda bi, oi, pi: (bi, oi * n_inner + pi, 0))] +
                    [op_spec(z) for z in operands])

        return pl.pallas_call(
            kernel,
            out_shape=jax.ShapeDtypeStruct((b * n_outer, 1, f_pad), jnp.float32),
            grid_spec=pltpu.PrefetchScalarGridSpec(
                num_scalar_prefetch=0,
                grid=(b, n_outer, n_inner),
                in_specs=in_specs,
                out_specs=pl.BlockSpec((1, 1, f_pad),
                                       lambda bi, oi, pi: (bi * n_outer + oi, 0, 0)),
                scratch_shapes=[pltpu.VMEM((1, f_pad), jnp.float32)],
            ),
            compiler_params=pltpu.CompilerParams(
                dimension_semantics=("parallel", "parallel", "arbitrary"),
                vmem_limit_bytes=vmem_limit,
            ),
        )(x_flat, *operands)

    try:
        partial = jax.block_until_ready(build_and_run(True))
    except Exception:
        # fallback if Buffered(1) on constant operands is rejected by this JAX build
        partial = jax.block_until_ready(build_and_run(False))

    pooled = partial.reshape(b, n_outer, f_pad).sum(axis=1)    # (B, F_PAD) raw sums

    if need_correction:
        # subtract the (constant) contribution of an all-zero padded pixel row,
        # computed once with the same folded operands / dtypes as the kernel.
        z1 = jnp.maximum(c1p, 0.0).astype(jnp.bfloat16)        # zero row @ W1 == 0
        z2 = jnp.maximum(jnp.dot(z1, w2m, preferred_element_type=jnp.float32) + c2p,
                         0.0).astype(jnp.bfloat16)
        z3 = jnp.maximum(jnp.dot(z2, w3m, preferred_element_type=jnp.float32)
                         + z1 * a3p + c3p, 0.0).astype(jnp.bfloat16)
        v0 = jnp.maximum(jnp.dot(z3, w4m, preferred_element_type=jnp.float32) + c4p, 0.0)
        pooled = pooled - jnp.float32(hw_pad - hw) * v0

    pooled = pooled / jnp.float32(hw)
    return pooled[:, :feature_dim]                             # drop lane padding


# ---------------------------------------------------------------------------
# Pure-JAX reference (actual 1-D convs along the spectral axis, f32) for checking.
# ---------------------------------------------------------------------------
def reference_forward(x_nchw, params, feature_dim):
    b, c, h, w = x_nchw.shape
    xp = jnp.transpose(x_nchw, (0, 2, 3, 1)).reshape(b * h * w, 1, c)

    def conv1d(hh, wt, bt, stride, pad):
        out = lax.conv_general_dilated(hh, jnp.asarray(wt), (stride,), [(pad, pad)],
                                       dimension_numbers=('NCH', 'OIH', 'NCH'))
        return out + jnp.asarray(bt)[None, :, None]

    def bn_relu(hh, bn_p):
        gamma, beta, mean, var = (jnp.asarray(z) for z in bn_p)
        s = gamma / jnp.sqrt(var + BN_EPS)
        t = beta - mean * s
        return jnp.maximum(hh * s[None, :, None] + t[None, :, None], 0.0)

    h1 = bn_relu(conv1d(xp, params['w1'], params['b1'], 2, 1), params['bn1'])
    res = h1
    h2 = bn_relu(conv1d(h1, params['w2'], params['b2'], 1, 3), params['bn2'])
    h3 = conv1d(h2, params['w3'], params['b3'], 1, 3)
    h3 = bn_relu(res + h3, params['bn3'])
    h4 = bn_relu(conv1d(h3, params['w4'], params['b4'], 1, 0), params['bn4'])  # (N, F, 1)
    h4 = h4[:, :, 0].reshape(b, h * w, feature_dim)
    return jnp.mean(h4, axis=1)


if __name__ == "__main__":
    B, C, H, W = 2, 16, 16, 16         # batch, spectral bands, spatial patch
    feature_dim = 32

    params, D1 = init_params(C, feature_dim)
    operands = build_kernel_operands(params, C, D1, feature_dim)

    # channels-last input (B, H, W, C) -> kernel consumes it without a transpose pass
    x_bhwc = jax.random.normal(jax.random.PRNGKey(0), (B, H, W, C), dtype=jnp.float32)

    out = spectral_encoder_pallas(x_bhwc, operands, feature_dim)
    out = jax.block_until_ready(out)
    assert out.shape == (B, feature_dim)

    # reference on the equivalent NCHW tensor (the PyTorch module's layout)
    x_nchw = jnp.transpose(x_bhwc, (0, 3, 1, 2))
    ref = reference_forward(x_nchw, params, feature_dim)
    o_np, r_np = np.asarray(out), np.asarray(ref)
    if not np.allclose(o_np, r_np, atol=3e-2, rtol=3e-2):   # bf16 matmul chain tolerance
        raise AssertionError(
            f"Pallas kernel output mismatch vs JAX reference "
            f"(max abs err {np.max(np.abs(o_np - r_np)):.4f})")

    print("KERNEL_OK")
</pallas_src>

<mosaic_0001>
module attributes {stable_mosaic.version = 11 : i64} {
  func.func @kernel(%arg0: i32, %arg1: i32, %arg2: i32, %arg3: memref<1x256x16xf32, #tpu.memory_space<vmem>>, %arg4: memref<16x256xbf16, #tpu.memory_space<vmem>>, %arg5: memref<1x256xf32, #tpu.memory_space<vmem>>, %arg6: memref<256x256xbf16, #tpu.memory_space<vmem>>, %arg7: memref<1x256xf32, #tpu.memory_space<vmem>>, %arg8: memref<256x256xbf16, #tpu.memory_space<vmem>>, %arg9: memref<1x256xf32, #tpu.memory_space<vmem>>, %arg10: memref<1x256xf32, #tpu.memory_space<vmem>>, %arg11: memref<256x128xbf16, #tpu.memory_space<vmem>>, %arg12: memref<1x128xf32, #tpu.memory_space<vmem>>, %arg13: memref<1x1x128xf32, #tpu.memory_space<vmem>>, %arg14: memref<1x128xf32, #tpu.memory_space<vmem>>) attributes {dimension_semantics = [#tpu.dimension_semantics<parallel>, #tpu.dimension_semantics<parallel>, #tpu.dimension_semantics<arbitrary>], iteration_bounds = array<i64: 2, 1, 1>, scalar_prefetch = 0 : i64, scratch_operands = 1 : i64, tpu.core_type = #tpu.core_type<tc>, window_params = [{transform_indices = @transform_0, window_bounds = array<i64: 1, 256, 16>}, {pipeline_mode = #tpu.pipeline_mode<synchronous>, transform_indices = @transform_1, window_bounds = array<i64: 16, 256>}, {pipeline_mode = #tpu.pipeline_mode<synchronous>, transform_indices = @transform_2, window_bounds = array<i64: 1, 256>}, {pipeline_mode = #tpu.pipeline_mode<synchronous>, transform_indices = @transform_3, window_bounds = array<i64: 256, 256>}, {pipeline_mode = #tpu.pipeline_mode<synchronous>, transform_indices = @transform_4, window_bounds = array<i64: 1, 256>}, {pipeline_mode = #tpu.pipeline_mode<synchronous>, transform_indices = @transform_5, window_bounds = array<i64: 256, 256>}, {pipeline_mode = #tpu.pipeline_mode<synchronous>, transform_indices = @transform_6, window_bounds = array<i64: 1, 256>}, {pipeline_mode = #tpu.pipeline_mode<synchronous>, transform_indices = @transform_7, window_bounds = array<i64: 1, 256>}, {pipeline_mode = #tpu.pipeline_mode<synchronous>, transform_indices = @transform_8, window_bounds = array<i64: 256, 128>}, {pipeline_mode = #tpu.pipeline_mode<synchronous>, transform_indices = @transform_9, window_bounds = array<i64: 1, 128>}, {transform_indices = @transform_10, window_bounds = array<i64: 1, 1, 128>}]} {
    %c0_i32 = arith.constant 0 : i32
    %0 = arith.cmpi eq, %arg2, %c0_i32 : i32
    %1 = arith.extui %0 : i1 to i32
    %c0_i32_0 = arith.constant 0 : i32
    %2 = arith.cmpi ne, %1, %c0_i32_0 : i32
    scf.if %2 {
      %cst_35 = arith.constant 0.000000e+00 : f32
      %50 = vector.broadcast %cst_35 : f32 to vector<1x128xf32>
      %c0_36 = arith.constant 0 : index
      %c0_37 = arith.constant 0 : index
      %51 = vector.load %arg14[%c0_36, %c0_37] : memref<1x128xf32, #tpu.memory_space<vmem>>, vector<1x128xf32>
      tpu.vector_store %arg14[%c0_36, %c0_37], %50 {strides = array<i32>} : memref<1x128xf32, #tpu.memory_space<vmem>>, vector<1x128xf32>,
    } else {
    }
    %c0 = arith.constant 0 : index
    %c0_1 = arith.constant 0 : index
    %c0_2 = arith.constant 0 : index
    %3 = vector.load %arg3[%c0, %c0_1, %c0_2] : memref<1x256x16xf32, #tpu.memory_space<vmem>>, vector<1x256x16xf32>
    %4 = vector.shape_cast %3 : vector<1x256x16xf32> to vector<256x16xf32>
    %5 = arith.truncf %4 : vector<256x16xf32> to vector<256x16xbf16>
    %c0_3 = arith.constant 0 : index
    %c0_4 = arith.constant 0 : index
    %6 = vector.load %arg4[%c0_3, %c0_4] : memref<16x256xbf16, #tpu.memory_space<vmem>>, vector<16x256xbf16>
    %cst = arith.constant dense<0.000000e+00> : vector<256x256xf32>
    %7 = tpu.matmul %5, %6, %cst {dimension_numbers = #tpu.dot_dimension_numbers<[1], [0], [0], [1], [0, 0, 1, 1], [], []>} : vector<256x16xbf16>, vector<16x256xbf16>, vector<256x256xf32> -> vector<256x256xf32>
    %c0_5 = arith.constant 0 : index
    %c0_6 = arith.constant 0 : index
    %8 = vector.load %arg5[%c0_5, %c0_6] : memref<1x256xf32, #tpu.memory_space<vmem>>, vector<1x256xf32>
    %9 = vector.broadcast %8 : vector<1x256xf32> to vector<256x256xf32>
    %10 = arith.addf %7, %9 : vector<256x256xf32>
    %cst_7 = arith.constant 0.000000e+00 : f32
    %11 = vector.broadcast %cst_7 : f32 to vector<256x256xf32>
    %12 = arith.maximumf %10, %11 : vector<256x256xf32>
    %13 = arith.truncf %12 : vector<256x256xf32> to vector<256x256xbf16>
    %c0_8 = arith.constant 0 : index
    %c0_9 = arith.constant 0 : index
    %14 = vector.load %arg6[%c0_8, %c0_9] : memref<256x256xbf16, #tpu.memory_space<vmem>>, vector<256x256xbf16>
    %cst_10 = arith.constant dense<0.000000e+00> : vector<256x256xf32>
    %15 = tpu.matmul %13, %14, %cst_10 {dimension_numbers = #tpu.dot_dimension_numbers<[1], [0], [0], [1], [0, 0, 1, 1], [], []>} : vector<256x256xbf16>, vector<256x256xbf16>, vector<256x256xf32> -> vector<256x256xf32>
    %c0_11 = arith.constant 0 : index
    %c0_12 = arith.constant 0 : index
    %16 = vector.load %arg7[%c0_11, %c0_12] : memref<1x256xf32, #tpu.memory_space<vmem>>, vector<1x256xf32>
    %17 = vector.broadcast %16 : vector<1x256xf32> to vector<256x256xf32>
    %18 = arith.addf %15, %17 : vector<256x256xf32>
    %cst_13 = arith.constant 0.000000e+00 : f32
    %19 = vector.broadcast %cst_13 : f32 to vector<256x256xf32>
    %20 = arith.maximumf %18, %19 : vector<256x256xf32>
    %21 = arith.truncf %20 : vector<256x256xf32> to vector<256x256xbf16>
    %c0_14 = arith.constant 0 : index
    %c0_15 = arith.constant 0 : index
    %22 = vector.load %arg8[%c0_14, %c0_15] : memref<256x256xbf16, #tpu.memory_space<vmem>>, vector<256x256xbf16>
    %cst_16 = arith.constant dense<0.000000e+00> : vector<256x256xf32>
    %23 = tpu.matmul %21, %22, %cst_16 {dimension_numbers = #tpu.dot_dimension_numbers<[1], [0], [0], [1], [0, 0, 1, 1], [], []>} : vector<256x256xbf16>, vector<256x256xbf16>, vector<256x256xf32> -> vector<256x256xf32>
    %c0_17 = arith.constant 0 : index
    %c0_18 = arith.constant 0 : index
    %24 = vector.load %arg9[%c0_17, %c0_18] : memref<1x256xf32, #tpu.memory_space<vmem>>, vector<1x256xf32>
    %25 = arith.extf %13 : vector<256x256xbf16> to vector<256x256xf32>
    %26 = vector.broadcast %24 : vector<1x256xf32> to vector<256x256xf32>
    %27 = arith.mulf %25, %26 : vector<256x256xf32>
    %28 = arith.addf %23, %27 : vector<256x256xf32>
    %c0_19 = arith.constant 0 : index
    %c0_20 = arith.constant 0 : index
    %29 = vector.load %arg10[%c0_19, %c0_20] : memref<1x256xf32, #tpu.memory_space<vmem>>, vector<1x256xf32>
    %30 = vector.broadcast %29 : vector<1x256xf32> to vector<256x256xf32>
    %31 = arith.addf %28, %30 : vector<256x256xf32>
    %cst_21 = arith.constant 0.000000e+00 : f32
    %32 = vector.broadcast %cst_21 : f32 to vector<256x256xf32>
    %33 = arith.maximumf %31, %32 : vector<256x256xf32>
    %34 = arith.truncf %33 : vector<256x256xf32> to vector<256x256xbf16>
    %c0_22 = arith.constant 0 : index
    %c0_23 = arith.constant 0 : index
    %35 = vector.load %arg11[%c0_22, %c0_23] : memref<256x128xbf16, #tpu.memory_space<vmem>>, vector<256x128xbf16>
    %cst_24 = arith.constant dense<0.000000e+00> : vector<256x128xf32>
    %36 = tpu.matmul %34, %35, %cst_24 {dimension_numbers = #tpu.dot_dimension_numbers<[1], [0], [0], [1], [0, 0, 1, 1], [], []>} : vector<256x256xbf16>, vector<256x128xbf16>, vector<256x128xf32> -> vector<256x128xf32>
    %c0_25 = arith.constant 0 : index
    %c0_26 = arith.constant 0 : index
    %37 = vector.load %arg12[%c0_25, %c0_26] : memref<1x128xf32, #tpu.memory_space<vmem>>, vector<1x128xf32>
    %38 = vector.broadcast %37 : vector<1x128xf32> to vector<256x128xf32>
    %39 = arith.addf %36, %38 : vector<256x128xf32>
    %cst_27 = arith.constant 0.000000e+00 : f32
    %40 = vector.broadcast %cst_27 : f32 to vector<256x128xf32>
    %41 = arith.maximumf %39, %40 : vector<256x128xf32>
    %c0_28 = arith.constant 0 : index
    %c0_29 = arith.constant 0 : index
    %42 = vector.load %arg14[%c0_28, %c0_29] : memref<1x128xf32, #tpu.memory_space<vmem>>, vector<1x128xf32>
    %cst_30 = arith.constant dense<0.000000e+00> : vector<128xf32>
    %43 = vector.multi_reduction <add>, %41, %cst_30 [0] : vector<256x128xf32> to vector<128xf32>
    %44 = vector.shape_cast %43 : vector<128xf32> to vector<1x128xf32>
    %45 = arith.addf %42, %44 : vector<1x128xf32>
    %c0_31 = arith.constant 0 : index
    %c0_32 = arith.constant 0 : index
    %46 = vector.load %arg14[%c0_31, %c0_32] : memref<1x128xf32, #tpu.memory_space<vmem>>, vector<1x128xf32>
    tpu.vector_store %arg14[%c0_31, %c0_32], %45 {strides = array<i32>} : memref<1x128xf32, #tpu.memory_space<vmem>>, vector<1x128xf32>,
    %c0_i32_33 = arith.constant 0 : i32
    %47 = arith.cmpi eq, %arg2, %c0_i32_33 : i32
    %48 = arith.extui %47 : i1 to i32
    %c0_i32_34 = arith.constant 0 : i32
    %49 = arith.cmpi ne, %48, %c0_i32_34 : i32
    scf.if %49 {
      %c0_35 = arith.constant 0 : index
      %c0_36 = arith.constant 0 : index
      %50 = vector.load %arg14[%c0_35, %c0_36] : memref<1x128xf32, #tpu.memory_space<vmem>>, vector<1x128xf32>
      %51 = vector.shape_cast %50 : vector<1x128xf32> to vector<1x1x128xf32>
      %c0_37 = arith.constant 0 : index
      %c0_38 = arith.constant 0 : index
      %c0_39 = arith.constant 0 : index
      %52 = vector.load %arg13[%c0_37, %c0_38, %c0_39] : memref<1x1x128xf32, #tpu.memory_space<vmem>>, vector<1x1x128xf32>
      tpu.vector_store %arg13[%c0_37, %c0_38, %c0_39], %51 {strides = array<i32>} : memref<1x1x128xf32, #tpu.memory_space<vmem>>, vector<1x1x128xf32>,
    } else {
    }
    return
  }
  func.func @transform_0(%arg0: i32, %arg1: i32, %arg2: i32) -> (i32, i32, i32) {
    %c1_i32 = arith.constant 1 : i32
    %0 = arith.muli %arg1, %c1_i32 : i32
    %1 = arith.addi %0, %arg2 : i32
    %c0_i32 = arith.constant 0 : i32
    %c0_i32_0 = arith.constant 0 : i32
    return %arg0, %1, %c0_i32 : i32, i32, i32
  }
  func.func @transform_1(%arg0: i32, %arg1: i32, %arg2: i32) -> (i32, i32) {
    %c0_i32 = arith.constant 0 : i32
    %c0_i32_0 = arith.constant 0 : i32
    %c0_i32_1 = arith.constant 0 : i32
    return %c0_i32, %c0_i32_0 : i32, i32
  }
  func.func @transform_2(%arg0: i32, %arg1: i32, %arg2: i32) -> (i32, i32) {
    %c0_i32 = arith.constant 0 : i32
    %c0_i32_0 = arith.constant 0 : i32
    %c0_i32_1 = arith.constant 0 : i32
    return %c0_i32, %c0_i32_0 : i32, i32
  }
  func.func @transform_3(%arg0: i32, %arg1: i32, %arg2: i32) -> (i32, i32) {
    %c0_i32 = arith.constant 0 : i32
    %c0_i32_0 = arith.constant 0 : i32
    %c0_i32_1 = arith.constant 0 : i32
    return %c0_i32, %c0_i32_0 : i32, i32
  }
  func.func @transform_4(%arg0: i32, %arg1: i32, %arg2: i32) -> (i32, i32) {
    %c0_i32 = arith.constant 0 : i32
    %c0_i32_0 = arith.constant 0 : i32
    %c0_i32_1 = arith.constant 0 : i32
    return %c0_i32, %c0_i32_0 : i32, i32
  }
  func.func @transform_5(%arg0: i32, %arg1: i32, %arg2: i32) -> (i32, i32) {
    %c0_i32 = arith.constant 0 : i32
    %c0_i32_0 = arith.constant 0 : i32
    %c0_i32_1 = arith.constant 0 : i32
    return %c0_i32, %c0_i32_0 : i32, i32
  }
  func.func @transform_6(%arg0: i32, %arg1: i32, %arg2: i32) -> (i32, i32) {
    %c0_i32 = arith.constant 0 : i32
    %c0_i32_0 = arith.constant 0 : i32
    %c0_i32_1 = arith.constant 0 : i32
    return %c0_i32, %c0_i32_0 : i32, i32
  }
  func.func @transform_7(%arg0: i32, %arg1: i32, %arg2: i32) -> (i32, i32) {
    %c0_i32 = arith.constant 0 : i32
    %c0_i32_0 = arith.constant 0 : i32
    %c0_i32_1 = arith.constant 0 : i32
    return %c0_i32, %c0_i32_0 : i32, i32
  }
  func.func @transform_8(%arg0: i32, %arg1: i32, %arg2: i32) -> (i32, i32) {
    %c0_i32 = arith.constant 0 : i32
    %c0_i32_0 = arith.constant 0 : i32
    %c0_i32_1 = arith.constant 0 : i32
    return %c0_i32, %c0_i32_0 : i32, i32
  }
  func.func @transform_9(%arg0: i32, %arg1: i32, %arg2: i32) -> (i32, i32) {
    %c0_i32 = arith.constant 0 : i32
    %c0_i32_0 = arith.constant 0 : i32
    %c0_i32_1 = arith.constant 0 : i32
    return %c0_i32, %c0_i32_0 : i32, i32
  }
  func.func @transform_10(%arg0: i32, %arg1: i32, %arg2: i32) -> (i32, i32, i32) {
    %c1_i32 = arith.constant 1 : i32
    %0 = arith.muli %arg0, %c1_i32 : i32
    %1 = arith.addi %0, %arg1 : i32
    %c0_i32 = arith.constant 0 : i32
    %c0_i32_0 = arith.constant 0 : i32
    %c0_i32_1 = arith.constant 0 : i32
    return %1, %c0_i32, %c0_i32_0 : i32, i32, i32
  }
}

module attributes {stable_mosaic.version = 11 : i64} {
  func.func @kernel(%arg0: i32, %arg1: i32, %arg2: i32, %arg3: memref<1x256x16xf32, #tpu.memory_space<vmem>>, %arg4: memref<16x256xbf16, #tpu.memory_space<vmem>>, %arg5: memref<1x256xf32, #tpu.memory_space<vmem>>, %arg6: memref<256x256xbf16, #tpu.memory_space<vmem>>, %arg7: memref<1x256xf32, #tpu.memory_space<vmem>>, %arg8: memref<256x256xbf16, #tpu.memory_space<vmem>>, %arg9: memref<1x256xf32, #tpu.memory_space<vmem>>, %arg10: memref<1x256xf32, #tpu.memory_space<vmem>>, %arg11: memref<256x128xbf16, #tpu.memory_space<vmem>>, %arg12: memref<1x128xf32, #tpu.memory_space<vmem>>, %arg13: memref<1x1x128xf32, #tpu.memory_space<vmem>>, %arg14: memref<1x128xf32, #tpu.memory_space<vmem>>) attributes {dimension_semantics = [#tpu.dimension_semantics<parallel>, #tpu.dimension_semantics<parallel>, #tpu.dimension_semantics<arbitrary>], iteration_bounds = array<i64: 2, 1, 1>, scalar_prefetch = 0 : i64, scratch_operands = 1 : i64, tpu.core_type = #tpu.core_type<tc>, window_params = [{transform_indices = @transform_0, window_bounds = array<i64: 1, 256, 16>}, {pipeline_mode = #tpu.pipeline_mode<synchronous>, transform_indices = @transform_1, window_bounds = array<i64: 16, 256>}, {pipeline_mode = #tpu.pipeline_mode<synchronous>, transform_indices = @transform_2, window_bounds = array<i64: 1, 256>}, {pipeline_mode = #tpu.pipeline_mode<synchronous>, transform_indices = @transform_3, window_bounds = array<i64: 256, 256>}, {pipeline_mode = #tpu.pipeline_mode<synchronous>, transform_indices = @transform_4, window_bounds = array<i64: 1, 256>}, {pipeline_mode = #tpu.pipeline_mode<synchronous>, transform_indices = @transform_5, window_bounds = array<i64: 256, 256>}, {pipeline_mode = #tpu.pipeline_mode<synchronous>, transform_indices = @transform_6, window_bounds = array<i64: 1, 256>}, {pipeline_mode = #tpu.pipeline_mode<synchronous>, transform_indices = @transform_7, window_bounds = array<i64: 1, 256>}, {pipeline_mode = #tpu.pipeline_mode<synchronous>, transform_indices = @transform_8, window_bounds = array<i64: 256, 128>}, {pipeline_mode = #tpu.pipeline_mode<synchronous>, transform_indices = @transform_9, window_bounds = array<i64: 1, 128>}, {transform_indices = @transform_10, window_bounds = array<i64: 1, 1, 128>}]} {
    %c0_i32 = arith.constant 0 : i32
    %0 = arith.cmpi eq, %arg2, %c0_i32 : i32
    %1 = arith.extui %0 : i1 to i32
    %c0_i32_0 = arith.constant 0 : i32
    %2 = arith.cmpi ne, %1, %c0_i32_0 : i32
    scf.if %2 {
      %cst_35 = arith.constant 0.000000e+00 : f32
      %50 = vector.broadcast %cst_35 : f32 to vector<1x128xf32>
      %c0_36 = arith.constant 0 : index
      %c0_37 = arith.constant 0 : index
      %51 = vector.load %arg14[%c0_36, %c0_37] : memref<1x128xf32, #tpu.memory_space<vmem>>, vector<1x128xf32>
      tpu.vector_store %arg14[%c0_36, %c0_37], %50 {strides = array<i32>} : memref<1x128xf32, #tpu.memory_space<vmem>>, vector<1x128xf32>,
    } else {
    }
    %c0 = arith.constant 0 : index
    %c0_1 = arith.constant 0 : index
    %c0_2 = arith.constant 0 : index
    %3 = vector.load %arg3[%c0, %c0_1, %c0_2] : memref<1x256x16xf32, #tpu.memory_space<vmem>>, vector<1x256x16xf32>
    %4 = vector.shape_cast %3 : vector<1x256x16xf32> to vector<256x16xf32>
    %5 = arith.truncf %4 : vector<256x16xf32> to vector<256x16xbf16>
    %c0_3 = arith.constant 0 : index
    %c0_4 = arith.constant 0 : index
    %6 = vector.load %arg4[%c0_3, %c0_4] : memref<16x256xbf16, #tpu.memory_space<vmem>>, vector<16x256xbf16>
    %cst = arith.constant dense<0.000000e+00> : vector<256x256xf32>
    %7 = tpu.matmul %5, %6, %cst {dimension_numbers = #tpu.dot_dimension_numbers<[1], [0], [0], [1], [0, 0, 1, 1], [], []>} : vector<256x16xbf16>, vector<16x256xbf16>, vector<256x256xf32> -> vector<256x256xf32>
    %c0_5 = arith.constant 0 : index
    %c0_6 = arith.constant 0 : index
    %8 = vector.load %arg5[%c0_5, %c0_6] : memref<1x256xf32, #tpu.memory_space<vmem>>, vector<1x256xf32>
    %9 = vector.broadcast %8 : vector<1x256xf32> to vector<256x256xf32>
    %10 = arith.addf %7, %9 : vector<256x256xf32>
    %cst_7 = arith.constant 0.000000e+00 : f32
    %11 = vector.broadcast %cst_7 : f32 to vector<256x256xf32>
    %12 = arith.maximumf %10, %11 : vector<256x256xf32>
    %13 = arith.truncf %12 : vector<256x256xf32> to vector<256x256xbf16>
    %c0_8 = arith.constant 0 : index
    %c0_9 = arith.constant 0 : index
    %14 = vector.load %arg6[%c0_8, %c0_9] : memref<256x256xbf16, #tpu.memory_space<vmem>>, vector<256x256xbf16>
    %cst_10 = arith.constant dense<0.000000e+00> : vector<256x256xf32>
    %15 = tpu.matmul %13, %14, %cst_10 {dimension_numbers = #tpu.dot_dimension_numbers<[1], [0], [0], [1], [0, 0, 1, 1], [], []>} : vector<256x256xbf16>, vector<256x256xbf16>, vector<256x256xf32> -> vector<256x256xf32>
    %c0_11 = arith.constant 0 : index
    %c0_12 = arith.constant 0 : index
    %16 = vector.load %arg7[%c0_11, %c0_12] : memref<1x256xf32, #tpu.memory_space<vmem>>, vector<1x256xf32>
    %17 = vector.broadcast %16 : vector<1x256xf32> to vector<256x256xf32>
    %18 = arith.addf %15, %17 : vector<256x256xf32>
    %cst_13 = arith.constant 0.000000e+00 : f32
    %19 = vector.broadcast %cst_13 : f32 to vector<256x256xf32>
    %20 = arith.maximumf %18, %19 : vector<256x256xf32>
    %21 = arith.truncf %20 : vector<256x256xf32> to vector<256x256xbf16>
    %c0_14 = arith.constant 0 : index
    %c0_15 = arith.constant 0 : index
    %22 = vector.load %arg8[%c0_14, %c0_15] : memref<256x256xbf16, #tpu.memory_space<vmem>>, vector<256x256xbf16>
    %cst_16 = arith.constant dense<0.000000e+00> : vector<256x256xf32>
    %23 = tpu.matmul %21, %22, %cst_16 {dimension_numbers = #tpu.dot_dimension_numbers<[1], [0], [0], [1], [0, 0, 1, 1], [], []>} : vector<256x256xbf16>, vector<256x256xbf16>, vector<256x256xf32> -> vector<256x256xf32>
    %c0_17 = arith.constant 0 : index
    %c0_18 = arith.constant 0 : index
    %24 = vector.load %arg9[%c0_17, %c0_18] : memref<1x256xf32, #tpu.memory_space<vmem>>, vector<1x256xf32>
    %25 = arith.extf %13 : vector<256x256xbf16> to vector<256x256xf32>
    %26 = vector.broadcast %24 : vector<1x256xf32> to vector<256x256xf32>
    %27 = arith.mulf %25, %26 : vector<256x256xf32>
    %28 = arith.addf %23, %27 : vector<256x256xf32>
    %c0_19 = arith.constant 0 : index
    %c0_20 = arith.constant 0 : index
    %29 = vector.load %arg10[%c0_19, %c0_20] : memref<1x256xf32, #tpu.memory_space<vmem>>, vector<1x256xf32>
    %30 = vector.broadcast %29 : vector<1x256xf32> to vector<256x256xf32>
    %31 = arith.addf %28, %30 : vector<256x256xf32>
    %cst_21 = arith.constant 0.000000e+00 : f32
    %32 = vector.broadcast %cst_21 : f32 to vector<256x256xf32>
    %33 = arith.maximumf %31, %32 : vector<256x256xf32>
    %34 = arith.truncf %33 : vector<256x256xf32> to vector<256x256xbf16>
    %c0_22 = arith.constant 0 : index
    %c0_23 = arith.constant 0 : index
    %35 = vector.load %arg11[%c0_22, %c0_23] : memref<256x128xbf16, #tpu.memory_space<vmem>>, vector<256x128xbf16>
    %cst_24 = arith.constant dense<0.000000e+00> : vector<256x128xf32>
    %36 = tpu.matmul %34, %35, %cst_24 {dimension_numbers = #tpu.dot_dimension_numbers<[1], [0], [0], [1], [0, 0, 1, 1], [], []>} : vector<256x256xbf16>, vector<256x128xbf16>, vector<256x128xf32> -> vector<256x128xf32>
    %c0_25 = arith.constant 0 : index
    %c0_26 = arith.constant 0 : index
    %37 = vector.load %arg12[%c0_25, %c0_26] : memref<1x128xf32, #tpu.memory_space<vmem>>, vector<1x128xf32>
    %38 = vector.broadcast %37 : vector<1x128xf32> to vector<256x128xf32>
    %39 = arith.addf %36, %38 : vector<256x128xf32>
    %cst_27 = arith.constant 0.000000e+00 : f32
    %40 = vector.broadcast %cst_27 : f32 to vector<256x128xf32>
    %41 = arith.maximumf %39, %40 : vector<256x128xf32>
    %c0_28 = arith.constant 0 : index
    %c0_29 = arith.constant 0 : index
    %42 = vector.load %arg14[%c0_28, %c0_29] : memref<1x128xf32, #tpu.memory_space<vmem>>, vector<1x128xf32>
    %cst_30 = arith.constant dense<0.000000e+00> : vector<128xf32>
    %43 = vector.multi_reduction <add>, %41, %cst_30 [0] : vector<256x128xf32> to vector<128xf32>
    %44 = vector.shape_cast %43 : vector<128xf32> to vector<1x128xf32>
    %45 = arith.addf %42, %44 : vector<1x128xf32>
    %c0_31 = arith.constant 0 : index
    %c0_32 = arith.constant 0 : index
    %46 = vector.load %arg14[%c0_31, %c0_32] : memref<1x128xf32, #tpu.memory_space<vmem>>, vector<1x128xf32>
    tpu.vector_store %arg14[%c0_31, %c0_32], %45 {strides = array<i32>} : memref<1x128xf32, #tpu.memory_space<vmem>>, vector<1x128xf32>,
    %c0_i32_33 = arith.constant 0 : i32
    %47 = arith.cmpi eq, %arg2, %c0_i32_33 : i32
    %48 = arith.extui %47 : i1 to i32
    %c0_i32_34 = arith.constant 0 : i32
    %49 = arith.cmpi ne, %48, %c0_i32_34 : i32
    scf.if %49 {
      %c0_35 = arith.constant 0 : index
      %c0_36 = arith.constant 0 : index
      %50 = vector.load %arg14[%c0_35, %c0_36] : memref<1x128xf32, #tpu.memory_space<vmem>>, vector<1x128xf32>
      %51 = vector.shape_cast %50 : vector<1x128xf32> to vector<1x1x128xf32>
      %c0_37 = arith.constant 0 : index
      %c0_38 = arith.constant 0 : index
      %c0_39 = arith.constant 0 : index
      %52 = vector.load %arg13[%c0_37, %c0_38, %c0_39] : memref<1x1x128xf32, #tpu.memory_space<vmem>>, vector<1x1x128xf32>
      tpu.vector_store %arg13[%c0_37, %c0_38, %c0_39], %51 {strides = array<i32>} : memref<1x1x128xf32, #tpu.memory_space<vmem>>, vector<1x1x128xf32>,
    } else {
    }
    return
  }
  func.func @transform_0(%arg0: i32, %arg1: i32, %arg2: i32) -> (i32, i32, i32) {
    %c1_i32 = arith.constant 1 : i32
    %0 = arith.muli %arg1, %c1_i32 : i32
    %1 = arith.addi %0, %arg2 : i32
    %c0_i32 = arith.constant 0 : i32
    %c0_i32_0 = arith.constant 0 : i32
    return %arg0, %1, %c0_i32 : i32, i32, i32
  }
  func.func @transform_1(%arg0: i32, %arg1: i32, %arg2: i32) -> (i32, i32) {
    %c0_i32 = arith.constant 0 : i32
    %c0_i32_0 = arith.constant 0 : i32
    %c0_i32_1 = arith.constant 0 : i32
    return %c0_i32, %c0_i32_0 : i32, i32
  }
  func.func @transform_2(%arg0: i32, %arg1: i32, %arg2: i32) -> (i32, i32) {
    %c0_i32 = arith.constant 0 : i32
    %c0_i32_0 = arith.constant 0 : i32
    %c0_i32_1 = arith.constant 0 : i32
    return %c0_i32, %c0_i32_0 : i32, i32
  }
  func.func @transform_3(%arg0: i32, %arg1: i32, %arg2: i32) -> (i32, i32) {
    %c0_i32 = arith.constant 0 : i32
    %c0_i32_0 = arith.constant 0 : i32
    %c0_i32_1 = arith.constant 0 : i32
    return %c0_i32, %c0_i32_0 : i32, i32
  }
  func.func @transform_4(%arg0: i32, %arg1: i32, %arg2: i32) -> (i32, i32) {
    %c0_i32 = arith.constant 0 : i32
    %c0_i32_0 = arith.constant 0 : i32
    %c0_i32_1 = arith.constant 0 : i32
    return %c0_i32, %c0_i32_0 : i32, i32
  }
  func.func @transform_5(%arg0: i32, %arg1: i32, %arg2: i32) -> (i32, i32) {
    %c0_i32 = arith.constant 0 : i32
    %c0_i32_0 = arith.constant 0 : i32
    %c0_i32_1 = arith.constant 0 : i32
    return %c0_i32, %c0_i32_0 : i32, i32
  }
  func.func @transform_6(%arg0: i32, %arg1: i32, %arg2: i32) -> (i32, i32) {
    %c0_i32 = arith.constant 0 : i32
    %c0_i32_0 = arith.constant 0 : i32
    %c0_i32_1 = arith.constant 0 : i32
    return %c0_i32, %c0_i32_0 : i32, i32
  }
  func.func @transform_7(%arg0: i32, %arg1: i32, %arg2: i32) -> (i32, i32) {
    %c0_i32 = arith.constant 0 : i32
    %c0_i32_0 = arith.constant 0 : i32
    %c0_i32_1 = arith.constant 0 : i32
    return %c0_i32, %c0_i32_0 : i32, i32
  }
  func.func @transform_8(%arg0: i32, %arg1: i32, %arg2: i32) -> (i32, i32) {
    %c0_i32 = arith.constant 0 : i32
    %c0_i32_0 = arith.constant 0 : i32
    %c0_i32_1 = arith.constant 0 : i32
    return %c0_i32, %c0_i32_0 : i32, i32
  }
  func.func @transform_9(%arg0: i32, %arg1: i32, %arg2: i32) -> (i32, i32) {
    %c0_i32 = arith.constant 0 : i32
    %c0_i32_0 = arith.constant 0 : i32
    %c0_i32_1 = arith.constant 0 : i32
    return %c0_i32, %c0_i32_0 : i32, i32
  }
  func.func @transform_10(%arg0: i32, %arg1: i32, %arg2: i32) -> (i32, i32, i32) {
    %c1_i32 = arith.constant 1 : i32
    %0 = arith.muli %arg0, %c1_i32 : i32
    %1 = arith.addi %0, %arg1 : i32
    %c0_i32 = arith.constant 0 : i32
    %c0_i32_0 = arith.constant 0 : i32
    %c0_i32_1 = arith.constant 0 : i32
    return %1, %c0_i32, %c0_i32_0 : i32, i32, i32
  }
}

</mosaic_0001>

<bundles_post_ra>
// kernel: tpu_custom_call.1
= control target key start
LH: loop header
LB: loop body
LE: loop exit
PB: predicated region body
PF: predicated region fallthrough
CT: control target
= control target key end

     0   :  { %s3993_s0 = inlined_call_operand.vmem [shape: f32[2,256,16], index: 0, kind: input, shape index: {}]   ;;  %s3994_s1 = inlined_call_operand.vmem [shape: bf16[16,256], index: 1, kind: input, shape index: {}]   ;;  %s3995_s2 = inlined_call_operand.vmem [shape: f32[1,256], index: 2, kind: input, shape index: {}]   ;;  %s3996_s3 = inlined_call_operand.vmem [shape: bf16[256,256], index: 3, kind: input, shape index: {}]   ;;  %s3997_s4 = inlined_call_operand.vmem [shape: f32[1,256], index: 4, kind: input, shape index: {}]   ;;  %s3998_s5 = inlined_call_operand.vmem [shape: bf16[256,256], index: 5, kind: input, shape index: {}]   ;;  %s3999_s6 = inlined_call_operand.vmem [shape: f32[1,256], index: 6, kind: input, shape index: {}]   ;;  %s4000_s7 = inlined_call_operand.vmem [shape: f32[1,256], index: 7, kind: input, shape index: {}]   ;;  %s4001_s8 = inlined_call_operand.hbm [shape: bf16[256,128], index: 8, kind: input, shape index: {}]   ;;  %s4002_s9 = inlined_call_operand.vmem [shape: f32[1,128], index: 9, kind: input, shape index: {}]   ;;  %s4003_s10 = inlined_call_operand.hbm [shape: f32[2,1,128], index: 10, kind: output, shape index: {}]  }
   0x1   :  { %4004 = sst [smem:[#allocation9_spill]] %s3993_s0 }
   0x2   :  { %15 = vsyncpa [#allocation4], 0 }
   0x3   :  { %16 = vsyncpa [#allocation5], 0 }
   0x4   :  { %18 = vsyncpa [#allocation5 + $0x1], 0  ;;  %s3089_s13 = smov 0   ;;  %s3091_s14 = smov 0  }
   0x5   :  { %s3093_s15 = smov 0   ;;  %s3095_s16 = smov 0  }
   0x6   :  { %s3097_s17 = smov 0   ;;  %s3099_s18 = smov 0  }
   0x7 LB: > { %s2495_s19 = sadd.s32 4294967295, %s3026_s18   ;;  %s2496_s20 = sadd.s32 4294967294, %s3026_s18   ;;  %s3026_s18 = sphi %s3099_s18, %s24_s18   ;;  %s3022_s17 = sphi %s3097_s17, %s4014_s17   ;;  %s3018_s16 = sphi %s3095_s16, %s4013_s16   ;;  %s3014_s15 = sphi %s3093_s15, %s4012_s15   ;;  %s3010_s14 = sphi %s3091_s14, %s4011_s14   ;;  %s3006_s13 = sphi %s3089_s13, %s4010_s13  }
   0x8   : > { %s43_s21 = sadd.s32 1, %s3022_s17  ;;  %s271_s22 = sadd.s32 1, %s3014_s15 }
   0x9   : > { %p45_p0 = scmp.ge.s32.totalorder %s43_s21, 2  ;;  %p281_p1 = scmp.ne.s32.totalorder %s3014_s15, %s3010_s14 }
   0xa   : > { %p282_p2 = scmp.eq.s32.totalorder %s2495_s19, 1  ;;  %p287_p3 = scmp.ne.s32.totalorder %s3010_s14, %s3006_s13 }
   0xb   : > { %s4016_s21 = smov (%p45_p0, %s43_s21), 0  ;;  %p288_p5 = scmp.eq.s32.totalorder %s2496_s20, 1 }
   0xc   : > { %p3129_p4 = por %p282_p2, %p281_p1  ;;  %s268_s24 = ssub.s32 %s3022_s17, %s4016_s21 }
   0xd   : > { %p2497_p6 = scmp.ge.s32.totalorder %s3026_s18, 1  ;;  %p269_p7 = scmp.eq.s32.totalorder %s268_s24, 0 }
   0xe   : > { %p3136_p8 = por %p288_p5, %p287_p3  ;;  %p295_p9 = scmp.lt.s32.totalorder %s3026_s18, 3 }
   0xf   : > { %s3142_s26 = scalar_select %p269_p7, %s3014_s15, %s271_s22  }
  0x10   : > { %p3144_p10 = pnand %p2497_p6, %p295_p9  ;;  %p3148_p11 = scmp.eq.s32.totalorder %s2495_s19, 0 }
  0x11   : > { %s3028_s29 = smov [#allocation3]  }
  0x12   : > { %p2741_p12 = pneg %p3144_p10  ;;  %s328_s30 = sshll.u32 %s3028_s29, 4  ;;  %s329_s30 = int_to_ptr.vmem [resolvable:$true] %s328_s30 }
  0x13   : > { %s2931_s11 = scalar_lea.vmem %s329_s30, 2048  ;;  %p2939_p5 = scmp.lt.s32.totalorder %s329_s30, %s329_s30 }
  0x14   : > { %p2742_p13 = pnand %p3148_p11, %p2741_p12  ;;  %p2932_p1 = scmp.ne.s32.totalorder %s329_s30, %s2931_s11 }
  0x15   : > { %p2940_p6 = scmp.lt.s32.totalorder %s2931_s11, %s2931_s11 }
  0x16   : > { %p2922_p0 = pneg %p2742_p13 }
  0x17   : > { %p2941_p7 = por %p2940_p6, %p2939_p5 }
  0x18   : > { %p2934_p2 = pnand %p2932_p1, %p2922_p0 }
  0x1a   : > { %p2935_p3 = pneg %p2934_p2 }
  0x1c   : > { %p2942_p9 = pnand %p2941_p7, %p2935_p3 }
  0x1e   : > { %2945 = shalt.err (!%p2942_p9)
}
  0x1f   : > { %s3029_s12 = smov 64   ;;  %s3030_s19 = smov 4  }
  0x20   : > { %2744 = dma.hbm_to_vmem [thread:$0]  (!%p2742_p13), %s4001_s8, 2048, %s329_s30, [#allocation4], %s3029_s12, %s3029_s12, %s3030_s19  }
  0x21   : > { %362 = sbr.rel (%p3144_p10) target bundleno = 1031 (0x407), region = 60 }
  0x26   : > { %2997 = dma.done.wait (%p3148_p11), [#allocation4], 2048  }
  0x27   : > { %2999 = vsyncadd (%p3148_p11), [#allocation4], 4294965248  ;;  %p406_p12 = scmp.lt.s32.totalorder %s3018_s16, 1  ;;  %v3031_v0 = vmov 0   ;;  %s4009_s0 = sld [smem:[#allocation9_spill]]  ;;  %vm495_vm0 = vcmask 130048  }
  0x28   : > { %576 = vmatprep.mubr.bf16.mxu0 %v3031_v0  ;;  %v2805_v1 = vld [vmem:[%s3994_s1 + $0x4] ss:$8 sps:$4 sm:$0xff]   ;;  %v2807_v2 = vld [vmem:[%s3994_s1] ss:$8 sps:$4 sm:$0xff]   ;;  %v2808_v9 = vld [vmem:[%s3996_s3 + $0x74] ss:$8 sps:$4 sm:$0xff]  }
  0x29   : > { %s407_s24 = scalar_select %p406_p12, %s3018_s16, 1  ;;  %558 = vmatprep.subr.bf16.mxu0 %v2805_v1  ;;  %v2810_v10 = vld [vmem:[%s3996_s3 + $0x70] ss:$8 sps:$4 sm:$0xff]   ;;  %1037 = vmatprep.subr.bf16.mxu1 %v2808_v9  ;;  %v2811_v12 = vld [vmem:[%s3996_s3 + $0x64] ss:$8 sps:$4 sm:$0xff]  }
  0x2a   : > { %559 = vmatpush1.bf16.msra.mxu0 %v2807_v2  ;;  %1038 = vmatpush1.bf16.msra.mxu1 %v2810_v10  ;;  %v2813_v14 = vld [vmem:[%s3996_s3 + $0x60] ss:$8 sps:$4 sm:$0xff]   ;;  %v2814_v15 = vld [vmem:[%s3996_s3 + $0x54] ss:$8 sps:$4 sm:$0xff]   ;;  %v2816_v17 = vld [vmem:[%s3996_s3 + $0x50] ss:$8 sps:$4 sm:$0xff]  }
  0x2b   : > { %s2606_s29 = sshll.u32 %s407_s24, 8  ;;  %1039 = vmatprep.subr.bf16.mxu1 %v2811_v12  ;;  %v2817_v18 = vld [vmem:[%s3996_s3 + $0x44] ss:$8 sps:$4 sm:$0xff]   ;;  %v2819_v21 = vld [vmem:[%s3996_s3 + $0x40] ss:$8 sps:$4 sm:$0xff]   ;;  %s402_s27 = sand.u32 1, %s3010_s14  }
  0x2c   : > { %v2820_v22 = vld [vmem:[%s3996_s3 + $0x34] ss:$8 sps:$4 sm:$0xff]   ;;  %v2822_v24 = vld [vmem:[%s3996_s3 + $0x30] ss:$8 sps:$4 sm:$0xff]   ;;  %v2823_v25 = vld [vmem:[%s3996_s3 + $0x24] ss:$8 sps:$4 sm:$0xff]  }
  0x2d   : > { %s3171_s30 = scalar_lea.vmem %s4009_s0, %s2606_s29  ;;  %v2825_v28 = vld [vmem:[%s3996_s3 + $0x20] ss:$8 sps:$4 sm:$0xff]   ;;  %v2826_v29 = vld [vmem:[%s3996_s3 + $0x14] ss:$8 sps:$4 sm:$0xff]   ;;  %v2828_v30 = vld [vmem:[%s3996_s3 + $0x10] ss:$8 sps:$4 sm:$0xff]  }
  0x2e   : > { %v423_v3 = vld [vmem:[%s3171_s30] sm:$0xff]  ;;  %v424_v4 = vld [vmem:[%s3171_s30 + $0x8] sm:$0xff]  ;;  %v425_v6 = vld [vmem:[%s3171_s30 + $0x10] sm:$0xff]  ;;  %1040 = vmatpush1.bf16.msra.mxu1 %v2813_v14  ;;  %s2603_s12 = sshll.u32 %s3018_s16, 4  ;;  %s403_s28 = scalar_lea.vmem [#allocation6], %s402_s27 }
  0x2f   : > { %v455_v5 = vpack.c.bf16 %v424_v4, %v423_v3  ;;  %v426_v7 = vld [vmem:[%s3171_s30 + $0x18] sm:$0xff]  ;;  %v427_v11 = vld [vmem:[%s3171_s30 + $0x20] sm:$0xff]  ;;  %v428_v13 = vld [vmem:[%s3171_s30 + $0x28] sm:$0xff]  ;;  %1041 = vmatprep.subr.bf16.mxu1 %v2814_v15  ;;  %s2410_s19 = sshll.u32 %s403_s28, 4  ;;  %s3953_s24 = scalar_lea.hbm %s4003_s10, %s2603_s12  ;;  %s2411_s19 = int_to_ptr.vmem [resolvable:$true] %s2410_s19 }
  0x30   : > { %v456_v8 = vpack.c.bf16 %v426_v7, %v425_v6  ;;  %v457_v16 = vpack.c.bf16 %v428_v13, %v427_v11  ;;  %v429_v19 = vld [vmem:[%s3171_s30 + $0x30] sm:$0xff]  ;;  %v430_v20 = vld [vmem:[%s3171_s30 + $0x38] sm:$0xff]  ;;  %v431_v26 = vld [vmem:[%s3171_s30 + $0x40] sm:$0xff]  ;;  %s2397_s29 = scalar_lea.sflag [#allocation5], %s402_s27  ;;  %s2946_s11 = scalar_lea.vmem %s2411_s19, 16 }
  0x31   : > { %2506 = vmatmul.mubr.msk.bf16.vlgmr.msra.gmra.mxu0 %vm495_vm0, %v455_v5  ;;  %v458_v23 = vpack.c.bf16 %v430_v20, %v429_v19  ;;  %v432_v27 = vld [vmem:[%s3171_s30 + $0x48] sm:$0xff]  ;;  %v433_v33 = vld [vmem:[%s3171_s30 + $0x50] sm:$0xff]  ;;  %v434_v34 = vld [vmem:[%s3171_s30 + $0x58] sm:$0xff]  ;;  %p2947_p10 = scmp.ne.s32.totalorder %s2411_s19, %s2946_s11  ;;  %s3033_s20 = smov [#allocation6]  }
  0x32   : > { %586 = vmatprep.mubr.bf16.mxu0 %v3031_v0  ;;  %1042 = vmatpush1.bf16.msra.mxu1 %v2816_v17  ;;  %v459_v31 = vpack.c.bf16 %v432_v27, %v431_v26  ;;  %v2829_v32 = vld [vmem:[%s3996_s3 + $0x4] ss:$8 sps:$4 sm:$0xff]   ;;  %v2831_v35 = vld [vmem:[%s3996_s3] ss:$8 sps:$4 sm:$0xff]   ;;  %v2832_v36 = vld [vmem:[%s3996_s3 + $0xf4] ss:$8 sps:$4 sm:$0xff]   ;;  %v460_v38 = vpack.c.bf16 %v434_v34, %v433_v33  ;;  %v475_v27 = vlaneseq }
  0x33   : > { %1043 = vmatprep.subr.bf16.mxu1 %v2817_v18  ;;  %v2834_v37 = vld [vmem:[%s3996_s3 + $0xf0] ss:$8 sps:$4 sm:$0xff]   ;;  %v2835_v39 = vld [vmem:[%s3996_s3 + $0xe4] ss:$8 sps:$4 sm:$0xff]   ;;  %v2837_v42 = vld [vmem:[%s3996_s3 + $0xe0] ss:$8 sps:$4 sm:$0xff]   ;;  %p2948_p11 = pnand %p2947_p10, %p3129_p4 }
  0x34   : > { %v435_v40 = vld [vmem:[%s3171_s30 + $0x60] sm:$0xff]  ;;  %v436_v41 = vld [vmem:[%s3171_s30 + $0x68] sm:$0xff]  ;;  %v2838_v43 = vld [vmem:[%s3996_s3 + $0xd4] ss:$8 sps:$4 sm:$0xff]   ;;  %s2950_s0 = sshll.u32 %s3033_s20, 4  ;;  %s2951_s0 = int_to_ptr.vmem [resolvable:$false] %s2950_s0 }
  0x35   : > { %v2840_v44 = vld [vmem:[%s3996_s3 + $0xd0] ss:$8 sps:$4 sm:$0xff]   ;;  %v461_v45 = vpack.c.bf16 %v436_v41, %v435_v40  ;;  %v2841_v46 = vld [vmem:[%s3996_s3 + $0xc4] ss:$8 sps:$4 sm:$0xff]   ;;  %v2843_v49 = vld [vmem:[%s3996_s3 + $0xc0] ss:$8 sps:$4 sm:$0xff]   ;;  %p2949_p13 = pneg %p2948_p11  ;;  %p2953_p0 = scmp.lt.s32.totalorder %s2411_s19, %s2951_s0 }
  0x36   : > { %1044 = vmatpush1.bf16.msra.mxu1 %v2819_v21  ;;  %v437_v47 = vld [vmem:[%s3171_s30 + $0x70] sm:$0xff]  ;;  %v438_v48 = vld [vmem:[%s3171_s30 + $0x78] sm:$0xff]  ;;  %v439_v53 = vld [vmem:[%s3171_s30 + $0x80] sm:$0xff]  ;;  %s2952_s16 = scalar_lea.vmem %s2951_s0, 32 }
  0x37   : > { %1045 = vmatprep.subr.bf16.mxu1 %v2820_v22  ;;  %v2844_v50 = vld [vmem:[%s3996_s3 + $0xb4] ss:$8 sps:$4 sm:$0xff]   ;;  %v462_v51 = vpack.c.bf16 %v438_v48, %v437_v47  ;;  %v2846_v52 = vld [vmem:[%s3996_s3 + $0xb0] ss:$8 sps:$4 sm:$0xff]   ;;  %v440_v54 = vld [vmem:[%s3171_s30 + $0x88] sm:$0xff]  ;;  %p2954_p1 = scmp.lt.s32.totalorder %s2952_s16, %s2946_s11 }
  0x38   : > { %v463_v55 = vpack.c.bf16 %v440_v54, %v439_v53  ;;  %v2847_v56 = vld [vmem:[%s3996_s3 + $0xa4] ss:$8 sps:$4 sm:$0xff]   ;;  %v441_v57 = vld [vmem:[%s3171_s30 + $0x90] sm:$0xff]  ;;  %v442_v58 = vld [vmem:[%s3171_s30 + $0x98] sm:$0xff] }
  0x39   : > { %2507 = vmatmul.mubr.msk.bf16.gmra.mxu0 %vm495_vm0, %v456_v8  ;;  %v2849_v59 = vld [vmem:[%s3996_s3 + $0xa0] ss:$8 sps:$4 sm:$0xff]   ;;  %v464_v60 = vpack.c.bf16 %v442_v58, %v441_v57  ;;  %v2850_v61 = vld [vmem:[%s3996_s3 + $0x94] ss:$8 sps:$4 sm:$0xff]   ;;  %v2852_v62 = vld [vmem:[%s3996_s3 + $0x90] ss:$8 sps:$4 sm:$0xff]   ;;  %p2955_p2 = por %p2954_p1, %p2953_p0 }
  0x3a   : > { %596 = vmatprep.mubr.bf16.mxu0 %v3031_v0  ;;  %1046 = vmatpush1.bf16.msra.mxu1 %v2822_v24  ;;  %v2853_v63 = vld [vmem:[%s3996_s3 + $0x84] ss:$8 sps:$4 sm:$0xff]   ;;  %v2855_v3 = vld [vmem:[%s3996_s3 + $0x80] ss:$8 sps:$4 sm:$0xff]   ;;  %v445_v5 = vld [vmem:[%s3171_s30 + $0xb0] sm:$0xff] }
  0x3b   : > { %1047 = vmatprep.subr.bf16.mxu1 %v2823_v25  ;;  %v443_v1 = vld [vmem:[%s3171_s30 + $0xa0] sm:$0xff]  ;;  %v444_v2 = vld [vmem:[%s3171_s30 + $0xa8] sm:$0xff]  ;;  %v446_v6 = vld [vmem:[%s3171_s30 + $0xb8] sm:$0xff]  ;;  %p2956_p3 = pnand %p2955_p2, %p2949_p13 }
  0x3c   : > { %v465_v4 = vpack.c.bf16 %v444_v2, %v443_v1  ;;  %v466_v7 = vpack.c.bf16 %v446_v6, %v445_v5  ;;  %v447_v8 = vld [vmem:[%s3171_s30 + $0xc0] sm:$0xff]  ;;  %v448_v9 = vld [vmem:[%s3171_s30 + $0xc8] sm:$0xff]  ;;  %v449_v11 = vld [vmem:[%s3171_s30 + $0xd0] sm:$0xff] }
  0x3d   : > { %v467_v10 = vpack.c.bf16 %v448_v9, %v447_v8  ;;  %v450_v12 = vld [vmem:[%s3171_s30 + $0xd8] sm:$0xff]  ;;  %v451_v14 = vld [vmem:[%s3171_s30 + $0xe0] sm:$0xff]  ;;  %v452_v15 = vld [vmem:[%s3171_s30 + $0xe8] sm:$0xff] }
  0x3e   : > { %1048 = vmatpush1.bf16.msra.mxu1 %v2825_v28  ;;  %v468_v13 = vpack.c.bf16 %v450_v12, %v449_v11  ;;  %v453_v17 = vld [vmem:[%s3171_s30 + $0xf0] sm:$0xff]  ;;  %v454_v18 = vld [vmem:[%s3171_s30 + $0xf8] sm:$0xff]  ;;  %v2859_v22 = vld [vmem:[%s3998_s5 + $0x60] ss:$8 sps:$4 sm:$0xff]   ;;  %v476_v28 = vshrl.u32 %v475_v27, 7 }
  0x3f   : > { %1049 = vmatprep.subr.bf16.mxu1 %v2826_v29  ;;  %v470_v19 = vpack.c.bf16 %v454_v18, %v453_v17  ;;  %v2856_v20 = vld [vmem:[%s3998_s5 + $0x70] ss:$8 sps:$4 sm:$0xff]   ;;  %v2858_v21 = vld [vmem:[%s3998_s5 + $0x74] ss:$8 sps:$4 sm:$0xff]   ;;  %v2865_v25 = vld [vmem:[%s3998_s5 + $0x40] ss:$8 sps:$4 sm:$0xff]  }
  0x40   : > { %1658 = vmatprep.subr.bf16.mxu0 %v2858_v21  ;;  %v2864_v24 = vld [vmem:[%s3998_s5 + $0x54] ss:$8 sps:$4 sm:$0xff]   ;;  %v2867_v26 = vld [vmem:[%s3998_s5 + $0x44] ss:$8 sps:$4 sm:$0xff]   ;;  %v3362_v29 = vsub.s32 1, %v476_v28 }
  0x41   : > { %2508 = vmatmul.mubr.msk.bf16.gmra.mxu0 %vm495_vm0, %v457_v16  ;;  %v469_v16 = vpack.c.bf16 %v452_v15, %v451_v14  ;;  %v473_v33 = vld [vmem:[%s3995_s2] sm:$0x3]  ;;  %v2879_v48 = vld [vmem:[%s3998_s5 + $0x4] ss:$8 sps:$4 sm:$0xff]   ;;  %v2882_v57 = vld [vmem:[%s3998_s5 + $0xf4] ss:$8 sps:$4 sm:$0xff]  }
  0x42   : > { %606 = vmatprep.mubr.bf16.mxu0 %v3031_v0  ;;  %1050 = vmatpush1.bf16.msra.mxu1 %v2828_v30  ;;  %v2868_v30 = vld [vmem:[%s3998_s5 + $0x30] ss:$8 sps:$4 sm:$0xff]   ;;  %v2888_v12 = vld [vmem:[%s3998_s5 + $0xd4] ss:$8 sps:$4 sm:$0xff]   ;;  %v2891_v21 = vld [vmem:[%s3998_s5 + $0xc4] ss:$8 sps:$4 sm:$0xff]  }
  0x43   : > { %1051 = vmatprep.subr.bf16.mxu1 %v2829_v32  ;;  %1659 = vmatpush1.bf16.msra.mxu0 %v2856_v20  ;;  %v3370_v32 = vsub.s32 0, %v476_v28  ;;  %v2880_v1 = vld [vmem:[%s3998_s5 + $0xf0] ss:$8 sps:$4 sm:$0xff]   ;;  %v2889_v27 = vld [vmem:[%s3998_s5 + $0xc0] ss:$8 sps:$4 sm:$0xff]  }
  0x46   : > { %1052 = vmatpush1.bf16.msra.mxu1 %v2831_v35  ;;  %v3376_v35 = vrot.slane %v473_v33, %v3362_v29 }
  0x47   : > { %1053 = vmatprep.subr.bf16.mxu1 %v2832_v36  ;;  %v3379_v36 = vrot.slane %v473_v33, %v3370_v32 }
  0x49   : > { %2509 = vmatmul.mubr.msk.bf16.gmra.mxu0 %vm495_vm0, %v458_v23  ;;  %v2862_v23 = vld [vmem:[%s3998_s5 + $0x50] ss:$8 sps:$4 sm:$0xff]  }
  0x4a   : > { %616 = vmatprep.mubr.bf16.mxu0 %v3031_v0  ;;  %1054 = vmatpush2.bf16.msra.mxu1 %v2834_v37 }
  0x4b   : > { %1055 = vmatprep.subr.bf16.mxu1 %v2835_v39  ;;  %v2873_v39 = vld [vmem:[%s3998_s5 + $0x24] ss:$8 sps:$4 sm:$0xff]  }
  0x4e   : > { %1056 = vmatpush2.bf16.msra.mxu1 %v2837_v42 }
  0x4f   : > { %1057 = vmatprep.subr.bf16.mxu1 %v2838_v43 }
  0x51   : > { %2510 = vmatmul.mubr.msk.bf16.gmra.mxu0 %vm495_vm0, %v459_v31  ;;  %v2870_v31 = vld [vmem:[%s3998_s5 + $0x34] ss:$8 sps:$4 sm:$0xff]  }
  0x52   : > { %626 = vmatprep.mubr.bf16.mxu0 %v3031_v0  ;;  %1058 = vmatpush2.bf16.msra.mxu1 %v2840_v44 }
  0x53   : > { %1059 = vmatprep.subr.bf16.mxu1 %v2841_v46  ;;  %v2876_v46 = vld [vmem:[%s3998_s5 + $0x14] ss:$8 sps:$4 sm:$0xff]  }
  0x56   : > { %1060 = vmatpush2.bf16.msra.mxu1 %v2843_v49 }
  0x57   : > { %1061 = vmatprep.subr.bf16.mxu1 %v2844_v50 }
  0x59   : > { %2511 = vmatmul.mubr.msk.bf16.gmra.mxu0 %vm495_vm0, %v460_v38  ;;  %v2871_v38 = vld [vmem:[%s3998_s5 + $0x20] ss:$8 sps:$4 sm:$0xff]  }
  0x5a   : > { %636 = vmatprep.mubr.bf16.mxu0 %v3031_v0  ;;  %1062 = vmatpush2.bf16.msra.mxu1 %v2846_v52 }
  0x5b   : > { %1063 = vmatprep.subr.bf16.mxu1 %v2847_v56 }
  0x5e   : > { %1064 = vmatpush2.bf16.msra.mxu1 %v2849_v59 }
  0x5f   : > { %1065 = vmatprep.subr.bf16.mxu1 %v2850_v61 }
  0x61   : > { %2512 = vmatmul.mubr.msk.bf16.gmra.mxu0 %vm495_vm0, %v461_v45  ;;  %v2874_v45 = vld [vmem:[%s3998_s5 + $0x10] ss:$8 sps:$4 sm:$0xff]  }
  0x62   : > { %646 = vmatprep.mubr.bf16.mxu0 %v3031_v0  ;;  %1066 = vmatpush2.bf16.msra.mxu1 %v2852_v62 }
  0x63   : > { %1067 = vmatprep.subr.bf16.mxu1 %v2853_v63 }
  0x66   : > { %1068 = vmatpush2.bf16.msra.mxu1 %v2855_v3  ;;  %v2885_v3 = vld [vmem:[%s3998_s5 + $0xe4] ss:$8 sps:$4 sm:$0xff]  }
  0x69   : > { %2513 = vmatmul.mubr.msk.bf16.gmra.mxu0 %vm495_vm0, %v462_v51 }
  0x6a   : > { %656 = vmatprep.mubr.bf16.mxu0 %v3031_v0 }
  0x71   : > { %2514 = vmatmul.mubr.msk.bf16.gmra.mxu0 %vm495_vm0, %v463_v55  ;;  %v2877_v55 = vld [vmem:[%s3998_s5] ss:$8 sps:$4 sm:$0xff]  }
  0x72   : > { %666 = vmatprep.mubr.bf16.mxu0 %v3031_v0 }
  0x79   : > { %2515 = vmatmul.mubr.msk.bf16.gmra.mxu0 %vm495_vm0, %v464_v60 }
  0x7a   : > { %676 = vmatprep.mubr.bf16.mxu0 %v3031_v0 }
  0x81   : > { %2516 = vmatmul.mubr.msk.bf16.gmra.mxu0 %vm495_vm0, %v465_v4 }
  0x82   : > { %686 = vmatprep.mubr.bf16.mxu0 %v3031_v0 }
  0x89   : > { %2517 = vmatmul.mubr.msk.bf16.gmra.mxu0 %vm495_vm0, %v466_v7 }
  0x8a   : > { %696 = vmatprep.mubr.bf16.mxu0 %v3031_v0 }
  0x91   : > { %2518 = vmatmul.mubr.msk.bf16.gmra.mxu0 %vm495_vm0, %v467_v10  ;;  %v2883_v10 = vld [vmem:[%s3998_s5 + $0xe0] ss:$8 sps:$4 sm:$0xff]  }
  0x92   : > { %706 = vmatprep.mubr.bf16.mxu0 %v3031_v0 }
  0x99   : > { %2519 = vmatmul.mubr.msk.bf16.gmra.mxu0 %vm495_vm0, %v468_v13 }
  0x9a   : > { %716 = vmatprep.mubr.bf16.mxu0 %v3031_v0 }
  0xa1   : > { %2520 = vmatmul.mubr.msk.bf16.gmra.mxu0 %vm495_vm0, %v469_v16 }
  0xa2   : > { %726 = vmatprep.mubr.bf16.mxu0 %v3031_v0  ;;  %v2861_v0 = vld [vmem:[%s3998_s5 + $0x64] ss:$8 sps:$4 sm:$0xff]  }
  0xa3   : > { %1660 = vmatprep.subr.bf16.mxu0 %v2861_v0 }
  0xa4   : > { %1661 = vmatpush1.bf16.msra.mxu0 %v2859_v22 }
  0xa5   : > { %1662 = vmatprep.subr.bf16.mxu0 %v2864_v24 }
  0xa8   : > { %1663 = vmatpush1.bf16.msra.mxu0 %v2862_v23 }
  0xa9   : > { %2521 = vmatmul.mubr.msk.bf16.gmra.mxu0 %vm495_vm0, %v470_v19  ;;  %1664 = vmatprep.subr.bf16.mxu0 %v2867_v26  ;;  %v2886_v19 = vld [vmem:[%s3998_s5 + $0xd0] ss:$8 sps:$4 sm:$0xff]  }
  0xac   : > { %1665 = vmatpush1.bf16.msra.mxu0 %v2865_v25 }
  0xad   : > { %1666 = vmatprep.subr.bf16.mxu0 %v2870_v31 }
  0xb0   : > { %1667 = vmatpush1.bf16.msra.mxu0 %v2868_v30  ;;  %v2894_v30 = vld [vmem:[%s3998_s5 + $0xb4] ss:$8 sps:$4 sm:$0xff]  }
  0xb1   : > { %1668 = vmatprep.subr.bf16.mxu0 %v2873_v39 }
  0xb4   : > { %1669 = vmatpush1.bf16.msra.mxu0 %v2871_v38 }
  0xb5   : > { %1670 = vmatprep.subr.bf16.mxu0 %v2876_v46 }
  0xb8   : > { %1671 = vmatpush1.bf16.msra.mxu0 %v2874_v45 }
  0xb9   : > { %1672 = vmatprep.subr.bf16.mxu0 %v2879_v48 }
  0xbc   : > { %1673 = vmatpush1.bf16.msra.mxu0 %v2877_v55 }
  0xbd   : > { %1674 = vmatprep.subr.bf16.mxu0 %v2882_v57 }
  0xc0   : > { %1675 = vmatpush2.bf16.msra.mxu0 %v2880_v1 }
  0xc1   : > { %1676 = vmatprep.subr.bf16.mxu0 %v2885_v3 }
  0xc4   : > { %1677 = vmatpush2.bf16.msra.mxu0 %v2883_v10 }
  0xc5   : > { %1678 = vmatprep.subr.bf16.mxu0 %v2888_v12 }
  0xc8   : > { %1679 = vmatpush2.bf16.msra.mxu0 %v2886_v19 }
  0xc9   : > { %1680 = vmatprep.subr.bf16.mxu0 %v2891_v21 }
  0xcc   : > { %1681 = vmatpush2.bf16.msra.mxu0 %v2889_v27 }
  0xcd   : > { %1682 = vmatprep.subr.bf16.mxu0 %v2894_v30 }
  0xf1   : > { %v578_v34 = vpop.f32.mrf.mxu0 }
  0xf2   : > { %v579_v43 = vadd.f32 %v578_v34, %v3379_v36 }
  0xf3   : > { %v580_v37 = vpop.f32.mrf.mxu0 }
  0xf4   : > { %v581_v41 = vadd.f32 %v580_v37, %v3376_v35  ;;  %v737_v53 = vmax.f32 %v579_v43, 0.0 }
  0xf5   : > { %v582_v40 = vpop.f32.mrf.mxu0 }
  0xf6   : > { %v583_v42 = vadd.f32 %v582_v40, %v3379_v36  ;;  %v738_v51 = vmax.f32 %v581_v41, 0.0  ;;  %v2892_v40 = vld [vmem:[%s3998_s5 + $0xb0] ss:$8 sps:$4 sm:$0xff]  }
  0xf7   : > { %v584_v44 = vpop.f32.mrf.mxu0  ;;  %1683 = vmatpush2.bf16.msra.mxu0 %v2892_v40 }
  0xf8   : > { %v585_v47 = vadd.f32 %v584_v44, %v3376_v35  ;;  %v739_v49 = vmax.f32 %v583_v42, 0.0  ;;  %v2897_v42 = vld [vmem:[%s3998_s5 + $0xa4] ss:$8 sps:$4 sm:$0xff]  }
  0xf9   : > { %v588_v50 = vpop.f32.mrf.mxu0  ;;  %1684 = vmatprep.subr.bf16.mxu0 %v2897_v42 }
  0xfa   : > { %v740_v52 = vmax.f32 %v585_v47, 0.0  ;;  %v3408_v58 = vpack.c.bf16 %v739_v49, %v737_v53  ;;  %v589_v62 = vadd.f32 %v588_v50, %v3379_v36  ;;  %v2895_v49 = vld [vmem:[%s3998_s5 + $0xa0] ss:$8 sps:$4 sm:$0xff]  }
  0xfb   : > { %v590_v54 = vpop.f32.mrf.mxu0  ;;  %1685 = vmatpush2.bf16.msra.mxu0 %v2895_v49 }
  0xfc   : > { %v3403_v56 = vpack.c.bf16 %v740_v52, %v738_v51  ;;  %v591_v60 = vadd.f32 %v590_v54, %v3376_v35  ;;  %v741_v8 = vmax.f32 %v589_v62, 0.0  ;;  %v2900_v51 = vld [vmem:[%s3998_s5 + $0x94] ss:$8 sps:$4 sm:$0xff]  }
  0xfd   : > { %v592_v59 = vpop.f32.mrf.mxu0  ;;  %1686 = vmatprep.subr.bf16.mxu0 %v2900_v51 }
  0xfe   : > { %v593_v61 = vadd.f32 %v592_v59, %v3379_v36  ;;  %1069 = vmatprep.mubr.bf16.mxu1 %v3403_v56  ;;  %v742_v6 = vmax.f32 %v591_v60, 0.0  ;;  %v2898_v60 = vld [vmem:[%s3998_s5 + $0x90] ss:$8 sps:$4 sm:$0xff]  }
  0xff   : > { %v594_v63 = vpop.f32.mrf.mxu0  ;;  %1070 = vmatmul.mubr.bf16.vlgmr.msra.gmra.mxu1 %v3408_v58  ;;  %1687 = vmatpush2.bf16.msra.mxu0 %v2898_v60 }
 0x100   : > { %v595_v2 = vadd.f32 %v594_v63, %v3376_v35  ;;  %v743_v4 = vmax.f32 %v593_v61, 0.0 }
 0x101   : > { %v598_v5 = vpop.f32.mrf.mxu0 }
 0x102   : > { %v744_v7 = vmax.f32 %v595_v2, 0.0  ;;  %v3430_v13 = vpack.c.bf16 %v743_v4, %v741_v8  ;;  %v599_v17 = vadd.f32 %v598_v5, %v3379_v36 }
 0x103   : > { %v600_v9 = vpop.f32.mrf.mxu0 }
 0x104   : > { %v3425_v11 = vpack.c.bf16 %v744_v7, %v742_v6  ;;  %v601_v15 = vadd.f32 %v600_v9, %v3376_v35  ;;  %v745_v25 = vmax.f32 %v599_v17, 0.0 }
 0x105   : > { %v602_v14 = vpop.f32.mrf.mxu0 }
 0x106   : > { %v603_v16 = vadd.f32 %v602_v14, %v3379_v36  ;;  %1079 = vmatprep.mubr.bf16.mxu1 %v3425_v11  ;;  %v746_v23 = vmax.f32 %v601_v15, 0.0 }
 0x107   : > { %v604_v18 = vpop.f32.mrf.mxu0  ;;  %1080 = vmatmul.mubr.bf16.gmra.mxu1 %v3430_v13 }
 0x108   : > { %v605_v20 = vadd.f32 %v604_v18, %v3376_v35  ;;  %v747_v22 = vmax.f32 %v603_v16, 0.0 }
 0x109   : > { %v608_v0 = vpop.f32.mrf.mxu0 }
 0x10a   : > { %v748_v24 = vmax.f32 %v605_v20, 0.0  ;;  %v3452_v31 = vpack.c.bf16 %v747_v22, %v745_v25  ;;  %v609_v38 = vadd.f32 %v608_v0, %v3379_v36 }
 0x10b   : > { %v610_v26 = vpop.f32.mrf.mxu0 }
 0x10c   : > { %v3447_v28 = vpack.c.bf16 %v748_v24, %v746_v23  ;;  %v611_v34 = vadd.f32 %v610_v26, %v3376_v35  ;;  %v749_v47 = vmax.f32 %v609_v38, 0.0 }
 0x10d   : > { %v612_v33 = vpop.f32.mrf.mxu0 }
 0x10e   : > { %v613_v37 = vadd.f32 %v612_v33, %v3379_v36  ;;  %1089 = vmatprep.mubr.bf16.mxu1 %v3447_v28  ;;  %v750_v45 = vmax.f32 %v611_v34, 0.0 }
 0x10f   : > { %v614_v39 = vpop.f32.mrf.mxu0  ;;  %1090 = vmatmul.mubr.bf16.gmra.mxu1 %v3452_v31 }
 0x110   : > { %v615_v41 = vadd.f32 %v614_v39, %v3376_v35  ;;  %v751_v43 = vmax.f32 %v613_v37, 0.0 }
 0x111   : > { %v618_v44 = vpop.f32.mrf.mxu0 }
 0x112   : > { %v752_v46 = vmax.f32 %v615_v41, 0.0  ;;  %v3474_v52 = vpack.c.bf16 %v751_v43, %v749_v47  ;;  %v619_v57 = vadd.f32 %v618_v44, %v3379_v36 }
 0x113   : > { %v620_v48 = vpop.f32.mrf.mxu0 }
 0x114   : > { %v3469_v50 = vpack.c.bf16 %v752_v46, %v750_v45  ;;  %v621_v54 = vadd.f32 %v620_v48, %v3376_v35  ;;  %v753_v3 = vmax.f32 %v619_v57, 0.0 }
 0x115   : > { %v622_v53 = vpop.f32.mrf.mxu0 }
 0x116   : > { %v623_v55 = vadd.f32 %v622_v53, %v3379_v36  ;;  %1099 = vmatprep.mubr.bf16.mxu1 %v3469_v50  ;;  %v754_v1 = vmax.f32 %v621_v54, 0.0 }
 0x117   : > { %v624_v59 = vpop.f32.mrf.mxu0  ;;  %1100 = vmatmul.mubr.bf16.gmra.mxu1 %v3474_v52 }
 0x118   : > { %v625_v61 = vadd.f32 %v624_v59, %v3376_v35  ;;  %v755_v62 = vmax.f32 %v623_v55, 0.0 }
 0x119   : > { %v628_v63 = vpop.f32.mrf.mxu0 }
 0x11a   : > { %v756_v2 = vmax.f32 %v625_v61, 0.0  ;;  %v3487_v6 = vpack.c.bf16 %v755_v62, %v753_v3  ;;  %v629_v10 = vadd.f32 %v628_v63, %v3379_v36 }
 0x11b   : > { %v630_v4 = vpop.f32.mrf.mxu0 }
 0x11c   : > { %v3485_v5 = vpack.c.bf16 %v756_v2, %v754_v1  ;;  %v631_v8 = vadd.f32 %v630_v4, %v3376_v35  ;;  %v757_v19 = vmax.f32 %v629_v10, 0.0 }
 0x11d   : > { %v632_v7 = vpop.f32.mrf.mxu0 }
 0x11e   : > { %v633_v9 = vadd.f32 %v632_v7, %v3379_v36  ;;  %1109 = vmatprep.mubr.bf16.mxu1 %v3485_v5  ;;  %v758_v17 = vmax.f32 %v631_v8, 0.0 }
 0x11f   : > { %v634_v12 = vpop.f32.mrf.mxu0  ;;  %1110 = vmatmul.mubr.bf16.gmra.mxu1 %v3487_v6 }
 0x120   : > { %v635_v14 = vadd.f32 %v634_v12, %v3376_v35  ;;  %v759_v15 = vmax.f32 %v633_v9, 0.0 }
 0x121   : > { %v638_v16 = vpop.f32.mrf.mxu0 }
 0x122   : > { %v760_v18 = vmax.f32 %v635_v14, 0.0  ;;  %v3497_v22 = vpack.c.bf16 %v759_v15, %v757_v19  ;;  %v639_v25 = vadd.f32 %v638_v16, %v3379_v36 }
 0x123   : > { %v640_v20 = vpop.f32.mrf.mxu0 }
 0x124   : > { %v3495_v21 = vpack.c.bf16 %v760_v18, %v758_v17  ;;  %v641_v23 = vadd.f32 %v640_v20, %v3376_v35  ;;  %v761_v38 = vmax.f32 %v639_v25, 0.0 }
 0x125   : > { %v642_v0 = vpop.f32.mrf.mxu0 }
 0x126   : > { %v643_v24 = vadd.f32 %v642_v0, %v3379_v36  ;;  %1119 = vmatprep.mubr.bf16.mxu1 %v3495_v21  ;;  %v762_v34 = vmax.f32 %v641_v23, 0.0 }
 0x127   : > { %v644_v26 = vpop.f32.mrf.mxu0  ;;  %1120 = vmatmul.mubr.bf16.gmra.mxu1 %v3497_v22 }
 0x128   : > { %v645_v27 = vadd.f32 %v644_v26, %v3376_v35  ;;  %v763_v30 = vmax.f32 %v643_v24, 0.0 }
 0x129   : > { %v648_v33 = vpop.f32.mrf.mxu0 }
 0x12a   : > { %v764_v37 = vmax.f32 %v645_v27, 0.0  ;;  %v3507_v41 = vpack.c.bf16 %v763_v30, %v761_v38  ;;  %v649_v45 = vadd.f32 %v648_v33, %v3379_v36 }
 0x12b   : > { %v650_v39 = vpop.f32.mrf.mxu0 }
 0x12c   : > { %v3505_v40 = vpack.c.bf16 %v764_v37, %v762_v34  ;;  %v651_v43 = vadd.f32 %v650_v39, %v3376_v35  ;;  %v765_v54 = vmax.f32 %v649_v45, 0.0  ;;  %v2901_v45 = vld [vmem:[%s3998_s5 + $0x80] ss:$8 sps:$4 sm:$0xff]  }
 0x12d   : > { %v652_v42 = vpop.f32.mrf.mxu0 }
 0x12e   : > { %v653_v44 = vadd.f32 %v652_v42, %v3379_v36  ;;  %1129 = vmatprep.mubr.bf16.mxu1 %v3505_v40  ;;  %v766_v51 = vmax.f32 %v651_v43, 0.0  ;;  %v2903_v43 = vld [vmem:[%s3998_s5 + $0x84] ss:$8 sps:$4 sm:$0xff]  }
 0x12f   : > { %v654_v46 = vpop.f32.mrf.mxu0  ;;  %1130 = vmatmul.mubr.bf16.gmra.mxu1 %v3507_v41  ;;  %1688 = vmatprep.subr.bf16.mxu0 %v2903_v43 }
 0x130   : > { %v655_v47 = vadd.f32 %v654_v46, %v3376_v35  ;;  %v767_v48 = vmax.f32 %v653_v44, 0.0  ;;  %1689 = vmatpush2.bf16.msra.mxu0 %v2901_v45 }
 0x131   : > { %v658_v49 = vpop.f32.mrf.mxu0 }
 0x132   : > { %v768_v53 = vmax.f32 %v655_v47, 0.0  ;;  %v3517_v59 = vpack.c.bf16 %v767_v48, %v765_v54  ;;  %v659_v63 = vadd.f32 %v658_v49, %v3379_v36 }
 0x133   : > { %v660_v55 = vpop.f32.mrf.mxu0 }
 0x134   : > { %v3515_v57 = vpack.c.bf16 %v768_v53, %v766_v51  ;;  %v661_v61 = vadd.f32 %v660_v55, %v3376_v35  ;;  %v769_v9 = vmax.f32 %v659_v63, 0.0 }
 0x135   : > { %v662_v60 = vpop.f32.mrf.mxu0 }
 0x136   : > { %v663_v62 = vadd.f32 %v662_v60, %v3379_v36  ;;  %1139 = vmatprep.mubr.bf16.mxu1 %v3515_v57  ;;  %v770_v7 = vmax.f32 %v661_v61, 0.0 }
 0x137   : > { %v664_v1 = vpop.f32.mrf.mxu0  ;;  %1140 = vmatmul.mubr.bf16.gmra.mxu1 %v3517_v59 }
 0x138   : > { %v665_v2 = vadd.f32 %v664_v1, %v3376_v35  ;;  %v771_v3 = vmax.f32 %v663_v62, 0.0 }
 0x139   : > { %v668_v4 = vpop.f32.mrf.mxu0 }
 0x13a   : > { %v772_v8 = vmax.f32 %v665_v2, 0.0  ;;  %v3527_v14 = vpack.c.bf16 %v771_v3, %v769_v9  ;;  %v669_v18 = vadd.f32 %v668_v4, %v3379_v36 }
 0x13b   : > { %v670_v10 = vpop.f32.mrf.mxu0 }
 0x13c   : > { %v3525_v12 = vpack.c.bf16 %v772_v8, %v770_v7  ;;  %v671_v16 = vadd.f32 %v670_v10, %v3376_v35  ;;  %v773_v26 = vmax.f32 %v669_v18, 0.0 }
 0x13d   : > { %v672_v15 = vpop.f32.mrf.mxu0 }
 0x13e   : > { %v673_v17 = vadd.f32 %v672_v15, %v3379_v36  ;;  %1149 = vmatprep.mubr.bf16.mxu1 %v3525_v12  ;;  %v774_v24 = vmax.f32 %v671_v16, 0.0 }
 0x13f   : > { %v674_v19 = vpop.f32.mrf.mxu0  ;;  %1150 = vmatmul.mubr.bf16.gmra.mxu1 %v3527_v14 }
 0x140   : > { %v675_v20 = vadd.f32 %v674_v19, %v3376_v35  ;;  %v775_v0 = vmax.f32 %v673_v17, 0.0 }
 0x141   : > { %v678_v23 = vpop.f32.mrf.mxu0 }
 0x142   : > { %v776_v25 = vmax.f32 %v675_v20, 0.0  ;;  %v3537_v33 = vpack.c.bf16 %v775_v0, %v773_v26  ;;  %v679_v39 = vadd.f32 %v678_v23, %v3379_v36 }
 0x143   : > { %v680_v27 = vpop.f32.mrf.mxu0 }
 0x144   : > { %v3535_v30 = vpack.c.bf16 %v776_v25, %v774_v24  ;;  %v681_v37 = vadd.f32 %v680_v27, %v3376_v35  ;;  %v777_v51 = vmax.f32 %v679_v39, 0.0 }
 0x145   : > { %v682_v34 = vpop.f32.mrf.mxu0 }
 0x146   : > { %v683_v38 = vadd.f32 %v682_v34, %v3379_v36  ;;  %1159 = vmatprep.mubr.bf16.mxu1 %v3535_v30  ;;  %v778_v48 = vmax.f32 %v681_v37, 0.0 }
 0x147   : > { %v684_v42 = vpop.f32.mrf.mxu0  ;;  %1160 = vmatmul.mubr.bf16.gmra.mxu1 %v3537_v33 }
 0x148   : > { %v685_v44 = vadd.f32 %v684_v42, %v3376_v35  ;;  %v779_v46 = vmax.f32 %v683_v38, 0.0 }
 0x149   : > { %v688_v47 = vpop.f32.mrf.mxu0 }
 0x14a   : > { %v780_v49 = vmax.f32 %v685_v44, 0.0  ;;  %v3553_v55 = vpack.c.bf16 %v779_v46, %v777_v51  ;;  %v689_v63 = vadd.f32 %v688_v47, %v3379_v36 }
 0x14b   : > { %v690_v53 = vpop.f32.mrf.mxu0 }
 0x14c   : > { %v3551_v54 = vpack.c.bf16 %v780_v49, %v778_v48  ;;  %v691_v61 = vadd.f32 %v690_v53, %v3376_v35  ;;  %v781_v9 = vmax.f32 %v689_v63, 0.0 }
 0x14d   : > { %v692_v60 = vpop.f32.mrf.mxu0 }
 0x14e   : > { %v693_v62 = vadd.f32 %v692_v60, %v3379_v36  ;;  %1169 = vmatprep.mubr.bf16.mxu1 %v3551_v54  ;;  %v782_v7 = vmax.f32 %v691_v61, 0.0 }
 0x14f   : > { %v694_v1 = vpop.f32.mrf.mxu0  ;;  %1170 = vmatmul.mubr.bf16.gmra.mxu1 %v3553_v55 }
 0x150   : > { %v695_v2 = vadd.f32 %v694_v1, %v3376_v35  ;;  %v783_v3 = vmax.f32 %v693_v62, 0.0 }
 0x151   : > { %v698_v4 = vpop.f32.mrf.mxu0 }
 0x152   : > { %v784_v8 = vmax.f32 %v695_v2, 0.0  ;;  %v3563_v16 = vpack.c.bf16 %v783_v3, %v781_v9  ;;  %v699_v20 = vadd.f32 %v698_v4, %v3379_v36 }
 0x153   : > { %v700_v10 = vpop.f32.mrf.mxu0 }
 0x154   : > { %v3561_v15 = vpack.c.bf16 %v784_v8, %v782_v7  ;;  %v701_v18 = vadd.f32 %v700_v10, %v3376_v35  ;;  %v785_v34 = vmax.f32 %v699_v20, 0.0 }
 0x155   : > { %v702_v17 = vpop.f32.mrf.mxu0 }
 0x156   : > { %v703_v19 = vadd.f32 %v702_v17, %v3379_v36  ;;  %1179 = vmatprep.mubr.bf16.mxu1 %v3561_v15  ;;  %v786_v26 = vmax.f32 %v701_v18, 0.0 }
 0x157   : > { %v704_v0 = vpop.f32.mrf.mxu0  ;;  %1180 = vmatmul.mubr.bf16.gmra.mxu1 %v3563_v16 }
 0x158   : > { %v705_v23 = vadd.f32 %v704_v0, %v3376_v35  ;;  %v787_v24 = vmax.f32 %v703_v19, 0.0 }
 0x159   : > { %v708_v25 = vpop.f32.mrf.mxu0 }
 0x15a   : > { %v788_v27 = vmax.f32 %v705_v23, 0.0  ;;  %v3573_v39 = vpack.c.bf16 %v787_v24, %v785_v34  ;;  %v709_v45 = vadd.f32 %v708_v25, %v3379_v36 }
 0x15b   : > { %v710_v37 = vpop.f32.mrf.mxu0 }
 0x15c   : > { %v3571_v38 = vpack.c.bf16 %v788_v27, %v786_v26  ;;  %v711_v43 = vadd.f32 %v710_v37, %v3376_v35  ;;  %v789_v60 = vmax.f32 %v709_v45, 0.0 }
 0x15d   : > { %v712_v42 = vpop.f32.mrf.mxu0 }
 0x15e   : > { %v713_v44 = vadd.f32 %v712_v42, %v3379_v36  ;;  %1189 = vmatprep.mubr.bf16.mxu1 %v3571_v38  ;;  %v790_v51 = vmax.f32 %v711_v43, 0.0 }
 0x15f   : > { %v714_v46 = vpop.f32.mrf.mxu0  ;;  %1190 = vmatmul.mubr.bf16.gmra.mxu1 %v3573_v39 }
 0x160   : > { %v715_v47 = vadd.f32 %v714_v46, %v3376_v35  ;;  %v791_v48 = vmax.f32 %v713_v44, 0.0 }
 0x161   : > { %v718_v49 = vpop.f32.mrf.mxu0 }
 0x162   : > { %v792_v53 = vmax.f32 %v715_v47, 0.0  ;;  %v3583_v63 = vpack.c.bf16 %v791_v48, %v789_v60  ;;  %v719_v4 = vadd.f32 %v718_v49, %v3379_v36  ;;  %v2904_v48 = vld [vmem:[#allocation3 + $0x78] sm:$0xff]  }
 0x163   : > { %v720_v61 = vpop.f32.mrf.mxu0  ;;  %2719 = vmatprep.subr.bf16.mxu1 %v2904_v48  ;;  %2607 = vmatprep.subr.bf16.mxu0 %v2904_v48 }
 0x164   : > { %v3581_v62 = vpack.c.bf16 %v792_v53, %v790_v51  ;;  %v721_v2 = vadd.f32 %v720_v61, %v3376_v35  ;;  %v793_v19 = vmax.f32 %v719_v4, 0.0 }
 0x165   : > { %v722_v1 = vpop.f32.mrf.mxu0 }
 0x166   : > { %v723_v3 = vadd.f32 %v722_v1, %v3379_v36  ;;  %1199 = vmatprep.mubr.bf16.mxu1 %v3581_v62  ;;  %v794_v17 = vmax.f32 %v721_v2, 0.0 }
 0x167   : > { %v724_v7 = vpop.f32.mrf.mxu0  ;;  %1200 = vmatmul.mubr.bf16.gmra.mxu1 %v3583_v63 }
 0x168   : > { %v725_v8 = vadd.f32 %v724_v7, %v3376_v35  ;;  %v795_v9 = vmax.f32 %v723_v3, 0.0  ;;  %v2906_v3 = vld [vmem:[#allocation3 + $0x70] sm:$0xff]  }
 0x169   : > { %v728_v10 = vpop.f32.mrf.mxu0 }
 0x16a   : > { %v796_v18 = vmax.f32 %v725_v8, 0.0  ;;  %v3593_v23 = vpack.c.bf16 %v795_v9, %v793_v19  ;;  %v729_v27 = vadd.f32 %v728_v10, %v3379_v36  ;;  %v2907_v8 = vld [vmem:[#allocation3 + $0x30] sm:$0xff]   ;;  %v2908_v10 = vld [vmem:[#allocation3 + $0x68] sm:$0xff]  }
 0x16b   : > { %v730_v20 = vpop.f32.mrf.mxu0 }
 0x16c   : > { %v3591_v0 = vpack.c.bf16 %v796_v18, %v794_v17  ;;  %v731_v25 = vadd.f32 %v730_v20, %v3376_v35  ;;  %v797_v45 = vmax.f32 %v729_v27, 0.0 }
 0x16d   : > { %v732_v24 = vpop.f32.mrf.mxu0 }
 0x16e   : > { %v733_v26 = vadd.f32 %v732_v24, %v3379_v36  ;;  %1209 = vmatprep.mubr.bf16.mxu1 %v3591_v0  ;;  %v798_v43 = vmax.f32 %v731_v25, 0.0  ;;  %v2905_v36 = vld [vmem:[#allocation3 + $0x38] sm:$0xff]  }
 0x16f   : > { %v734_v34 = vpop.f32.mrf.mxu0  ;;  %1210 = vmatmul.mubr.bf16.gmra.mxu1 %v3593_v23 }
 0x170   : > { %v735_v37 = vadd.f32 %v734_v34, %v3376_v35  ;;  %v799_v42 = vmax.f32 %v733_v26, 0.0  ;;  %2727 = vmatpush3.bf16.msra.mxu1 %v2905_v36  ;;  %v865_v35 = vld [vmem:[%s3997_s4] sm:$0x3]  ;;  %v2909_v26 = vld [vmem:[#allocation3 + $0x28] sm:$0xff]  }
 0x171   : > { %v3611_v51 = vrot.slane %v865_v35, %v3362_v29  ;;  %v3614_v53 = vrot.slane %v865_v35, %v3370_v32  ;;  %2720 = vmatprep.subr.bf16.mxu1 %v2906_v3  ;;  %v2910_v34 = vld [vmem:[#allocation3 + $0x60] sm:$0xff]  }
 0x172   : > { %v800_v44 = vmax.f32 %v735_v37, 0.0  ;;  %v3603_v47 = vpack.c.bf16 %v799_v42, %v797_v45  ;;  %v2911_v35 = vld [vmem:[#allocation3 + $0x20] sm:$0xff]  }
 0x174   : > { %v3601_v46 = vpack.c.bf16 %v800_v44, %v798_v43  ;;  %2728 = vmatpush3.bf16.msra.mxu1 %v2907_v8 }
 0x175   : > { %2721 = vmatprep.subr.bf16.mxu1 %v2908_v10 }
 0x176   : > { %1219 = vmatprep.mubr.bf16.mxu1 %v3601_v46 }
 0x177   : > { %1220 = vmatmul.mubr.bf16.gmra.mxu1 %v3603_v47 }
 0x178   : > { %2729 = vmatpush3.bf16.msra.mxu1 %v2909_v26 }
 0x179   : > { %2722 = vmatprep.subr.bf16.mxu1 %v2910_v34 }
 0x17c   : > { %2730 = vmatpush3.bf16.msra.mxu1 %v2911_v35 }
 0x1bf   : > { %v1071_v49 = vpop.f32.mrf.mxu1 }
 0x1c0   : > { %v1072_v4 = vadd.f32 %v1071_v49, %v3614_v53 }
 0x1c1   : > { %v1073_v60 = vpop.f32.mrf.mxu1 }
 0x1c2   : > { %v1074_v1 = vadd.f32 %v1073_v60, %v3611_v51  ;;  %v1230_v24 = vmax.f32 %v1072_v4, 0.0  ;;  %v2912_v60 = vld [vmem:[#allocation3 + $0x58] sm:$0xff]  }
 0x1c3   : > { %v1075_v61 = vpop.f32.mrf.mxu1  ;;  %2723 = vmatprep.subr.bf16.mxu1 %v2912_v60 }
 0x1c4   : > { %v1076_v2 = vadd.f32 %v1075_v61, %v3614_v53  ;;  %v1231_v19 = vmax.f32 %v1074_v1, 0.0 }
 0x1c5   : > { %v1077_v7 = vpop.f32.mrf.mxu1 }
 0x1c6   : > { %v1078_v9 = vadd.f32 %v1077_v7, %v3611_v51  ;;  %v1232_v17 = vmax.f32 %v1076_v2, 0.0 }
 0x1c7   : > { %v1081_v18 = vpop.f32.mrf.mxu1 }
 0x1c8   : > { %v1233_v20 = vmax.f32 %v1078_v9, 0.0  ;;  %v1294_v37 = vpack.c.bf16 %v1232_v17, %v1230_v24  ;;  %v1082_v45 = vadd.f32 %v1081_v18, %v3614_v53  ;;  %v2913_v17 = vld [vmem:[#allocation3 + $0x18] sm:$0xff]   ;;  %v2914_v18 = vld [vmem:[#allocation3 + $0x50] sm:$0xff]  }
 0x1c9   : > { %v1083_v25 = vpop.f32.mrf.mxu1  ;;  %2731 = vmatpush3.bf16.msra.mxu1 %v2913_v17 }
 0x1ca   : > { %v1295_v27 = vpack.c.bf16 %v1233_v20, %v1231_v19  ;;  %v1084_v43 = vadd.f32 %v1083_v25, %v3611_v51  ;;  %v1234_v7 = vmax.f32 %v1082_v45, 0.0  ;;  %2724 = vmatprep.subr.bf16.mxu1 %v2914_v18 }
 0x1cb   : > { %v1085_v42 = vpop.f32.mrf.mxu1 }
 0x1cc   : > { %v1086_v44 = vadd.f32 %v1085_v42, %v3614_v53  ;;  %1690 = vmatprep.mubr.bf16.mxu0 %v1295_v27  ;;  %v1235_v2 = vmax.f32 %v1084_v43, 0.0 }
 0x1cd   : > { %v1087_v48 = vpop.f32.mrf.mxu1  ;;  %1691 = vmatmul.mubr.bf16.vlgmr.msra.gmra.mxu0 %v1294_v37  ;;  %v2915_v37 = vld [vmem:[#allocation3 + $0x10] sm:$0xff]  }
 0x1ce   : > { %v1088_v49 = vadd.f32 %v1087_v48, %v3611_v51  ;;  %2608 = vmatpush3.bf16.msra.mxu0 %v2905_v36  ;;  %v1236_v61 = vmax.f32 %v1086_v44, 0.0  ;;  %2732 = vmatpush3.bf16.msra.mxu1 %v2915_v37 }
 0x1cf   : > { %v1091_v1 = vpop.f32.mrf.mxu1  ;;  %2609 = vmatprep.subr.bf16.mxu0 %v2906_v3 }
 0x1d0   : > { %v1237_v4 = vmax.f32 %v1088_v49, 0.0  ;;  %v1296_v20 = vpack.c.bf16 %v1236_v61, %v1234_v7  ;;  %v1092_v3 = vadd.f32 %v1091_v1, %v3614_v53 }
 0x1d1   : > { %v1093_v9 = vpop.f32.mrf.mxu1 }
 0x1d2   : > { %v1297_v19 = vpack.c.bf16 %v1237_v4, %v1235_v2  ;;  %2610 = vmatpush3.bf16.msra.mxu0 %v2907_v8  ;;  %v1094_v36 = vadd.f32 %v1093_v9, %v3611_v51  ;;  %v1238_v45 = vmax.f32 %v1092_v3, 0.0 }
 0x1d3   : > { %v1095_v24 = vpop.f32.mrf.mxu1  ;;  %2611 = vmatprep.subr.bf16.mxu0 %v2908_v10 }
 0x1d4   : > { %v1096_v25 = vadd.f32 %v1095_v24, %v3614_v53  ;;  %1700 = vmatprep.mubr.bf16.mxu0 %v1297_v19  ;;  %v1239_v10 = vmax.f32 %v1094_v36, 0.0 }
 0x1d5   : > { %v1097_v27 = vpop.f32.mrf.mxu1  ;;  %1701 = vmatmul.mubr.bf16.gmra.mxu0 %v1296_v20 }
 0x1d6   : > { %v1098_v42 = vadd.f32 %v1097_v27, %v3611_v51  ;;  %2612 = vmatpush3.bf16.msra.mxu0 %v2909_v26  ;;  %v1240_v8 = vmax.f32 %v1096_v25, 0.0 }
 0x1d7   : > { %v1101_v43 = vpop.f32.mrf.mxu1  ;;  %2613 = vmatprep.subr.bf16.mxu0 %v2910_v34 }
 0x1d8   : > { %v1241_v44 = vmax.f32 %v1098_v42, 0.0  ;;  %v1298_v61 = vpack.c.bf16 %v1240_v8, %v1238_v45  ;;  %v1102_v26 = vadd.f32 %v1101_v43, %v3614_v53 }
 0x1d9   : > { %v1103_v48 = vpop.f32.mrf.mxu1 }
 0x1da   : > { %v1299_v49 = vpack.c.bf16 %v1241_v44, %v1239_v10  ;;  %2614 = vmatpush3.bf16.msra.mxu0 %v2911_v35  ;;  %v1104_v1 = vadd.f32 %v1103_v48, %v3611_v51  ;;  %v1242_v24 = vmax.f32 %v1102_v26, 0.0 }
 0x1db   : > { %v1105_v2 = vpop.f32.mrf.mxu1  ;;  %2615 = vmatprep.subr.bf16.mxu0 %v2912_v60 }
 0x1dc   : > { %v1106_v4 = vadd.f32 %v1105_v2, %v3614_v53  ;;  %1710 = vmatprep.mubr.bf16.mxu0 %v1299_v49  ;;  %v1243_v20 = vmax.f32 %v1104_v1, 0.0 }
 0x1dd   : > { %v1107_v7 = vpop.f32.mrf.mxu1  ;;  %1711 = vmatmul.mubr.bf16.gmra.mxu0 %v1298_v61 }
 0x1de   : > { %v1108_v34 = vadd.f32 %v1107_v7, %v3611_v51  ;;  %2616 = vmatpush3.bf16.msra.mxu0 %v2913_v17  ;;  %v1244_v9 = vmax.f32 %v1106_v4, 0.0 }
 0x1df   : > { %v1111_v19 = vpop.f32.mrf.mxu1  ;;  %2617 = vmatprep.subr.bf16.mxu0 %v2914_v18 }
 0x1e0   : > { %v1245_v35 = vmax.f32 %v1108_v34, 0.0  ;;  %v1300_v25 = vpack.c.bf16 %v1244_v9, %v1242_v24  ;;  %v1112_v8 = vadd.f32 %v1111_v19, %v3614_v53 }
 0x1e1   : > { %v1113_v36 = vpop.f32.mrf.mxu1 }
 0x1e2   : > { %v1301_v60 = vpack.c.bf16 %v1245_v35, %v1243_v20  ;;  %2618 = vmatpush3.bf16.msra.mxu0 %v2915_v37  ;;  %v1114_v27 = vadd.f32 %v1113_v36, %v3611_v51  ;;  %v1246_v48 = vmax.f32 %v1112_v8, 0.0 }
 0x1e3   : > { %v1115_v3 = vpop.f32.mrf.mxu1 }
 0x1e4   : > { %v1116_v42 = vadd.f32 %v1115_v3, %v3614_v53  ;;  %1720 = vmatprep.mubr.bf16.mxu0 %v1301_v60  ;;  %v1247_v44 = vmax.f32 %v1114_v27, 0.0 }
 0x1e5   : > { %v1117_v43 = vpop.f32.mrf.mxu1  ;;  %1721 = vmatmul.mubr.bf16.gmra.mxu0 %v1300_v25 }
 0x1e6   : > { %v1118_v17 = vadd.f32 %v1117_v43, %v3611_v51  ;;  %v1248_v18 = vmax.f32 %v1116_v42, 0.0 }
 0x1e7   : > { %v1121_v10 = vpop.f32.mrf.mxu1 }
 0x1e8   : > { %v1249_v45 = vmax.f32 %v1118_v17, 0.0  ;;  %v1302_v61 = vpack.c.bf16 %v1248_v18, %v1246_v48  ;;  %v1122_v26 = vadd.f32 %v1121_v10, %v3614_v53 }
 0x1e9   : > { %v1123_v49 = vpop.f32.mrf.mxu1 }
 0x1ea   : > { %v1303_v37 = vpack.c.bf16 %v1249_v45, %v1247_v44  ;;  %v1124_v1 = vadd.f32 %v1123_v49, %v3611_v51  ;;  %v1250_v24 = vmax.f32 %v1122_v26, 0.0 }
 0x1eb   : > { %v1125_v2 = vpop.f32.mrf.mxu1 }
 0x1ec   : > { %v1126_v4 = vadd.f32 %v1125_v2, %v3614_v53  ;;  %1730 = vmatprep.mubr.bf16.mxu0 %v1303_v37  ;;  %v1251_v20 = vmax.f32 %v1124_v1, 0.0 }
 0x1ed   : > { %v1127_v7 = vpop.f32.mrf.mxu1  ;;  %1731 = vmatmul.mubr.bf16.gmra.mxu0 %v1302_v61 }
 0x1ee   : > { %v1128_v34 = vadd.f32 %v1127_v7, %v3611_v51  ;;  %v1252_v9 = vmax.f32 %v1126_v4, 0.0 }
 0x1ef   : > { %v1131_v19 = vpop.f32.mrf.mxu1 }
 0x1f0   : > { %v1253_v35 = vmax.f32 %v1128_v34, 0.0  ;;  %v1304_v25 = vpack.c.bf16 %v1252_v9, %v1250_v24  ;;  %v1132_v8 = vadd.f32 %v1131_v19, %v3614_v53 }
 0x1f1   : > { %v1133_v36 = vpop.f32.mrf.mxu1 }
 0x1f2   : > { %v1305_v60 = vpack.c.bf16 %v1253_v35, %v1251_v20  ;;  %v1134_v27 = vadd.f32 %v1133_v36, %v3611_v51  ;;  %v1254_v48 = vmax.f32 %v1132_v8, 0.0 }
 0x1f3   : > { %v1135_v3 = vpop.f32.mrf.mxu1 }
 0x1f4   : > { %v1136_v42 = vadd.f32 %v1135_v3, %v3614_v53  ;;  %1740 = vmatprep.mubr.bf16.mxu0 %v1305_v60  ;;  %v1255_v44 = vmax.f32 %v1134_v27, 0.0 }
 0x1f5   : > { %v1137_v43 = vpop.f32.mrf.mxu1  ;;  %1741 = vmatmul.mubr.bf16.gmra.mxu0 %v1304_v25 }
 0x1f6   : > { %v1138_v17 = vadd.f32 %v1137_v43, %v3611_v51  ;;  %v1256_v18 = vmax.f32 %v1136_v42, 0.0 }
 0x1f7   : > { %v1141_v10 = vpop.f32.mrf.mxu1 }
 0x1f8   : > { %v1257_v45 = vmax.f32 %v1138_v17, 0.0  ;;  %v1306_v61 = vpack.c.bf16 %v1256_v18, %v1254_v48  ;;  %v1142_v26 = vadd.f32 %v1141_v10, %v3614_v53 }
 0x1f9   : > { %v1143_v49 = vpop.f32.mrf.mxu1 }
 0x1fa   : > { %v1307_v37 = vpack.c.bf16 %v1257_v45, %v1255_v44  ;;  %v1144_v1 = vadd.f32 %v1143_v49, %v3611_v51  ;;  %v1258_v24 = vmax.f32 %v1142_v26, 0.0 }
 0x1fb   : > { %v1145_v2 = vpop.f32.mrf.mxu1 }
 0x1fc   : > { %v1146_v4 = vadd.f32 %v1145_v2, %v3614_v53  ;;  %1750 = vmatprep.mubr.bf16.mxu0 %v1307_v37  ;;  %v1259_v20 = vmax.f32 %v1144_v1, 0.0 }
 0x1fd   : > { %v1147_v7 = vpop.f32.mrf.mxu1  ;;  %1751 = vmatmul.mubr.bf16.gmra.mxu0 %v1306_v61 }
 0x1fe   : > { %v1148_v34 = vadd.f32 %v1147_v7, %v3611_v51  ;;  %v1260_v9 = vmax.f32 %v1146_v4, 0.0 }
 0x1ff   : > { %v1151_v19 = vpop.f32.mrf.mxu1 }
 0x200   : > { %v1261_v35 = vmax.f32 %v1148_v34, 0.0  ;;  %v1308_v25 = vpack.c.bf16 %v1260_v9, %v1258_v24  ;;  %v1152_v8 = vadd.f32 %v1151_v19, %v3614_v53 }
 0x201   : > { %v1153_v36 = vpop.f32.mrf.mxu1 }
 0x202   : > { %v1309_v60 = vpack.c.bf16 %v1261_v35, %v1259_v20  ;;  %v1154_v27 = vadd.f32 %v1153_v36, %v3611_v51  ;;  %v1262_v48 = vmax.f32 %v1152_v8, 0.0  ;;  %v2916_v8 = vld [vmem:[#allocation3 + $0x48] sm:$0xff]  }
 0x203   : > { %v1155_v3 = vpop.f32.mrf.mxu1  ;;  %2725 = vmatprep.subr.bf16.mxu1 %v2916_v8  ;;  %2619 = vmatprep.subr.bf16.mxu0 %v2916_v8 }
 0x204   : > { %v1156_v42 = vadd.f32 %v1155_v3, %v3614_v53  ;;  %1760 = vmatprep.mubr.bf16.mxu0 %v1309_v60  ;;  %v1263_v44 = vmax.f32 %v1154_v27, 0.0 }
 0x205   : > { %v1157_v43 = vpop.f32.mrf.mxu1  ;;  %1761 = vmatmul.mubr.bf16.gmra.mxu0 %v1308_v25 }
 0x206   : > { %v1158_v17 = vadd.f32 %v1157_v43, %v3611_v51  ;;  %v1264_v18 = vmax.f32 %v1156_v42, 0.0 }
 0x207   : > { %v1161_v10 = vpop.f32.mrf.mxu1 }
 0x208   : > { %v1265_v45 = vmax.f32 %v1158_v17, 0.0  ;;  %v1310_v61 = vpack.c.bf16 %v1264_v18, %v1262_v48  ;;  %v1162_v26 = vadd.f32 %v1161_v10, %v3614_v53  ;;  %v2917_v18 = vld [vmem:[#allocation3 + $0x8] sm:$0xff]  }
 0x209   : > { %v1163_v49 = vpop.f32.mrf.mxu1  ;;  %2733 = vmatpush3.bf16.msra.mxu1 %v2917_v18  ;;  %2620 = vmatpush3.bf16.msra.mxu0 %v2917_v18 }
 0x20a   : > { %v1311_v37 = vpack.c.bf16 %v1265_v45, %v1263_v44  ;;  %v1164_v1 = vadd.f32 %v1163_v49, %v3611_v51  ;;  %v1266_v24 = vmax.f32 %v1162_v26, 0.0 }
 0x20b   : > { %v1165_v2 = vpop.f32.mrf.mxu1 }
 0x20c   : > { %v1166_v4 = vadd.f32 %v1165_v2, %v3614_v53  ;;  %1770 = vmatprep.mubr.bf16.mxu0 %v1311_v37  ;;  %v1267_v20 = vmax.f32 %v1164_v1, 0.0  ;;  %v2918_v37 = vld [vmem:[#allocation3 + $0x40] sm:$0xff]  }
 0x20d   : > { %v1167_v7 = vpop.f32.mrf.mxu1  ;;  %1771 = vmatmul.mubr.bf16.gmra.mxu0 %v1310_v61  ;;  %v2919_v1 = vld [vmem:[#allocation3] sm:$0xff]   ;;  %2621 = vmatprep.subr.bf16.mxu0 %v2918_v37 }
 0x20e   : > { %v1168_v34 = vadd.f32 %v1167_v7, %v3611_v51  ;;  %v1268_v9 = vmax.f32 %v1166_v4, 0.0  ;;  %2726 = vmatprep.subr.bf16.mxu1 %v2918_v37  ;;  %2622 = vmatpush3.bf16.msra.mxu0 %v2919_v1 }
 0x20f   : > { %v1171_v19 = vpop.f32.mrf.mxu1  ;;  %2734 = vmatpush3.bf16.msra.mxu1 %v2919_v1 }
 0x210   : > { %v1269_v35 = vmax.f32 %v1168_v34, 0.0  ;;  %v1312_v25 = vpack.c.bf16 %v1268_v9, %v1266_v24  ;;  %v1172_v43 = vadd.f32 %v1171_v19, %v3614_v53 }
 0x211   : > { %v1173_v36 = vpop.f32.mrf.mxu1 }
 0x212   : > { %v1313_v60 = vpack.c.bf16 %v1269_v35, %v1267_v20  ;;  %v1174_v27 = vadd.f32 %v1173_v36, %v3611_v51  ;;  %v1270_v61 = vmax.f32 %v1172_v43, 0.0 }
 0x213   : > { %v1175_v3 = vpop.f32.mrf.mxu1 }
 0x214   : > { %v1176_v42 = vadd.f32 %v1175_v3, %v3614_v53  ;;  %1780 = vmatprep.mubr.bf16.mxu0 %v1313_v60  ;;  %v1271_v48 = vmax.f32 %v1174_v27, 0.0 }
 0x215   : > { %v1177_v17 = vpop.f32.mrf.mxu1  ;;  %1781 = vmatmul.mubr.bf16.gmra.mxu0 %v1312_v25 }
 0x216   : > { %v1178_v10 = vadd.f32 %v1177_v17, %v3611_v51  ;;  %v1272_v44 = vmax.f32 %v1176_v42, 0.0 }
 0x217   : > { %v1181_v45 = vpop.f32.mrf.mxu1 }
 0x218   : > { %v1273_v49 = vmax.f32 %v1178_v10, 0.0  ;;  %v1314_v26 = vpack.c.bf16 %v1272_v44, %v1270_v61  ;;  %v1182_v19 = vadd.f32 %v1181_v45, %v3614_v53 }
 0x219   : > { %v1183_v2 = vpop.f32.mrf.mxu1 }
 0x21a   : > { %v1315_v4 = vpack.c.bf16 %v1273_v49, %v1271_v48  ;;  %v1184_v34 = vadd.f32 %v1183_v2, %v3611_v51  ;;  %v1274_v3 = vmax.f32 %v1182_v19, 0.0 }
 0x21b   : > { %v1185_v7 = vpop.f32.mrf.mxu1 }
 0x21c   : > { %v1186_v9 = vadd.f32 %v1185_v7, %v3614_v53  ;;  %1790 = vmatprep.mubr.bf16.mxu0 %v1315_v4  ;;  %v1275_v60 = vmax.f32 %v1184_v34, 0.0 }
 0x21d   : > { %v1187_v20 = vpop.f32.mrf.mxu1  ;;  %1791 = vmatmul.mubr.bf16.gmra.mxu0 %v1314_v26 }
 0x21e   : > { %v1188_v35 = vadd.f32 %v1187_v20, %v3611_v51  ;;  %v1276_v24 = vmax.f32 %v1186_v9, 0.0 }
 0x21f   : > { %v1191_v36 = vpop.f32.mrf.mxu1 }
 0x220   : > { %v1277_v25 = vmax.f32 %v1188_v35, 0.0  ;;  %v1316_v8 = vpack.c.bf16 %v1276_v24, %v1274_v3  ;;  %v1192_v10 = vadd.f32 %v1191_v36, %v3614_v53 }
 0x221   : > { %v1193_v27 = vpop.f32.mrf.mxu1 }
 0x222   : > { %v1317_v42 = vpack.c.bf16 %v1277_v25, %v1275_v60  ;;  %v1194_v17 = vadd.f32 %v1193_v27, %v3611_v51  ;;  %v1278_v2 = vmax.f32 %v1192_v10, 0.0 }
 0x223   : > { %v1195_v43 = vpop.f32.mrf.mxu1 }
 0x224   : > { %v1196_v18 = vadd.f32 %v1195_v43, %v3614_v53  ;;  %1800 = vmatprep.mubr.bf16.mxu0 %v1317_v42  ;;  %v1279_v37 = vmax.f32 %v1194_v17, 0.0 }
 0x225   : > { %v1197_v44 = vpop.f32.mrf.mxu1  ;;  %1801 = vmatmul.mubr.bf16.gmra.mxu0 %v1316_v8 }
 0x226   : > { %v1198_v45 = vadd.f32 %v1197_v44, %v3611_v51  ;;  %v1280_v48 = vmax.f32 %v1196_v18, 0.0 }
 0x227   : > { %v1201_v49 = vpop.f32.mrf.mxu1 }
 0x228   : > { %v1281_v61 = vmax.f32 %v1198_v45, 0.0  ;;  %v1318_v26 = vpack.c.bf16 %v1280_v48, %v1278_v2  ;;  %v1202_v19 = vadd.f32 %v1201_v49, %v3614_v53 }
 0x229   : > { %v1203_v1 = vpop.f32.mrf.mxu1 }
 0x22a   : > { %v1319_v4 = vpack.c.bf16 %v1281_v61, %v1279_v37  ;;  %v1204_v34 = vadd.f32 %v1203_v1, %v3611_v51  ;;  %v1282_v3 = vmax.f32 %v1202_v19, 0.0 }
 0x22b   : > { %v1205_v7 = vpop.f32.mrf.mxu1 }
 0x22c   : > { %v1206_v9 = vadd.f32 %v1205_v7, %v3614_v53  ;;  %1810 = vmatprep.mubr.bf16.mxu0 %v1319_v4  ;;  %v1283_v60 = vmax.f32 %v1204_v34, 0.0 }
 0x22d   : > { %v1207_v20 = vpop.f32.mrf.mxu1  ;;  %1811 = vmatmul.mubr.bf16.gmra.mxu0 %v1318_v26 }
 0x22e   : > { %v1208_v35 = vadd.f32 %v1207_v20, %v3611_v51  ;;  %v1284_v24 = vmax.f32 %v1206_v9, 0.0 }
 0x22f   : > { %v1211_v36 = vpop.f32.mrf.mxu1 }
 0x230   : > { %v1285_v25 = vmax.f32 %v1208_v35, 0.0  ;;  %v1320_v8 = vpack.c.bf16 %v1284_v24, %v1282_v3  ;;  %v1212_v10 = vadd.f32 %v1211_v36, %v3614_v53 }
 0x231   : > { %v1213_v27 = vpop.f32.mrf.mxu1 }
 0x232   : > { %v1321_v42 = vpack.c.bf16 %v1285_v25, %v1283_v60  ;;  %v1214_v17 = vadd.f32 %v1213_v27, %v3611_v51  ;;  %v1286_v2 = vmax.f32 %v1212_v10, 0.0  ;;  %v1851_v10 = vld [vmem:[%s4000_s7] sm:$0x3] }
 0x233   : > { %v1215_v43 = vpop.f32.mrf.mxu1 }
 0x234   : > { %v1216_v18 = vadd.f32 %v1215_v43, %v3614_v53  ;;  %1820 = vmatprep.mubr.bf16.mxu0 %v1321_v42  ;;  %v1287_v37 = vmax.f32 %v1214_v17, 0.0  ;;  %v1358_v42 = vld [vmem:[%s3999_s6] sm:$0x3]  ;;  %v1359_v43 = vunpack.c.l.bf16 %v3408_v58  ;;  %v1361_v17 = vunpack.c.h.bf16 %v3408_v58 }
 0x235   : > { %v1217_v44 = vpop.f32.mrf.mxu1  ;;  %1821 = vmatmul.mubr.bf16.gmra.mxu0 %v1320_v8  ;;  %v1360_v8 = vunpack.c.l.bf16 %v3403_v56  ;;  %v3703_v58 = vrot.slane %v1851_v10, %v3370_v32 }
 0x236   : > { %v1218_v45 = vadd.f32 %v1217_v44, %v3611_v51  ;;  %v1288_v48 = vmax.f32 %v1216_v18, 0.0 }
 0x237   : > { %v1221_v49 = vpop.f32.mrf.mxu1 }
 0x238   : > { %v1289_v61 = vmax.f32 %v1218_v45, 0.0  ;;  %v1322_v26 = vpack.c.bf16 %v1288_v48, %v1286_v2  ;;  %v1222_v19 = vadd.f32 %v1221_v49, %v3614_v53  ;;  %v1362_v45 = vunpack.c.h.bf16 %v3403_v56 }
 0x239   : > { %v1223_v1 = vpop.f32.mrf.mxu1 }
 0x23a   : > { %v1323_v4 = vpack.c.bf16 %v1289_v61, %v1287_v37  ;;  %v1224_v34 = vadd.f32 %v1223_v1, %v3611_v51  ;;  %v1290_v25 = vmax.f32 %v1222_v19, 0.0  ;;  %v3699_v61 = vrot.slane %v1851_v10, %v3362_v29 }
 0x23b   : > { %v1225_v7 = vpop.f32.mrf.mxu1 }
 0x23c   : > { %v1226_v9 = vadd.f32 %v1225_v7, %v3614_v53  ;;  %1830 = vmatprep.mubr.bf16.mxu0 %v1323_v4  ;;  %v1291_v36 = vmax.f32 %v1224_v34, 0.0  ;;  %v3685_v53 = vrot.slane %v1358_v42, %v3362_v29  ;;  %v1364_v34 = vunpack.c.l.bf16 %v3425_v11 }
 0x23d   : > { %v1227_v20 = vpop.f32.mrf.mxu1  ;;  %1831 = vmatmul.mubr.bf16.gmra.mxu0 %v1322_v26 }
 0x23e   : > { %v1228_v35 = vadd.f32 %v1227_v20, %v3611_v51  ;;  %v1292_v24 = vmax.f32 %v1226_v9, 0.0  ;;  %v3689_v51 = vrot.slane %v1358_v42, %v3370_v32  ;;  %v1435_v44 = vmul.f32 %v3685_v53, %v1360_v8 }
 0x23f   : > { %v1437_v7 = vmul.f32 %v3685_v53, %v1362_v45  ;;  %v1363_v9 = vunpack.c.l.bf16 %v3430_v13 }
 0x240   : > { %v1293_v60 = vmax.f32 %v1228_v35, 0.0  ;;  %v1324_v27 = vpack.c.bf16 %v1292_v24, %v1290_v25  ;;  %v1434_v48 = vmul.f32 %v3689_v51, %v1359_v43  ;;  %v1436_v2 = vmul.f32 %v3689_v51, %v1361_v17 }
 0x241   : > { %v1365_v35 = vunpack.c.h.bf16 %v3430_v13  ;;  %v1366_v25 = vunpack.c.h.bf16 %v3425_v11 }
 0x242   : > { %v1325_v3 = vpack.c.bf16 %v1293_v60, %v1291_v36  ;;  %v1439_v60 = vmul.f32 %v3685_v53, %v1364_v34  ;;  %v1369_v34 = vunpack.c.h.bf16 %v3452_v31 }
 0x244   : > { %1840 = vmatprep.mubr.bf16.mxu0 %v1325_v3 }
 0x245   : > { %1841 = vmatmul.mubr.bf16.gmra.mxu0 %v1324_v27  ;;  %v1438_v27 = vmul.f32 %v3689_v51, %v1363_v9 }
 0x28d   : > { %v1692_v18 = vpop.f32.mrf.mxu0 }
 0x28e   : > { %v1693_v1 = vadd.f32 %v1692_v18, %v1434_v48  ;;  %v1440_v18 = vmul.f32 %v3689_v51, %v1365_v35  ;;  %v1441_v48 = vmul.f32 %v3685_v53, %v1366_v25 }
 0x28f   : > { %v1694_v49 = vpop.f32.mrf.mxu0 }
 0x290   : > { %v1695_v37 = vadd.f32 %v1694_v49, %v1435_v44  ;;  %v1863_v24 = vadd.f32 %v3703_v58, %v1693_v1  ;;  %v1367_v1 = vunpack.c.l.bf16 %v3452_v31 }
 0x291   : > { %v1696_v4 = vpop.f32.mrf.mxu0 }
 0x292   : > { %v1697_v26 = vadd.f32 %v1696_v4, %v1436_v2  ;;  %v1864_v19 = vadd.f32 %v3699_v61, %v1695_v37  ;;  %v1927_v10 = vmax.f32 %v1863_v24, 0.0  ;;  %v1368_v37 = vunpack.c.l.bf16 %v3447_v28 }
 0x293   : > { %v1698_v56 = vpop.f32.mrf.mxu0  ;;  %v1442_v24 = vmul.f32 %v3689_v51, %v1367_v1 }
 0x294   : > { %v1865_v29 = vadd.f32 %v3703_v58, %v1697_v26  ;;  %v1699_v20 = vadd.f32 %v1698_v56, %v1437_v7  ;;  %v1928_v8 = vmax.f32 %v1864_v19, 0.0 }
 0x295   : > { %v1702_v32 = vpop.f32.mrf.mxu0 }
 0x296   : > { %v1866_v36 = vadd.f32 %v3699_v61, %v1699_v20  ;;  %v1929_v3 = vmax.f32 %v1865_v29, 0.0  ;;  %v1703_v13 = vadd.f32 %v1702_v32, %v1438_v27  ;;  %v1443_v29 = vmul.f32 %v3685_v53, %v1368_v37 }
 0x297   : > { %v1704_v42 = vpop.f32.mrf.mxu0  ;;  %v1370_v20 = vunpack.c.h.bf16 %v3447_v28 }
 0x298   : > { %v1930_v43 = vmax.f32 %v1866_v36, 0.0  ;;  %v1705_v17 = vadd.f32 %v1704_v42, %v1439_v60  ;;  %v1991_v2 = vpack.c.bf16 %v1929_v3, %v1927_v10  ;;  %v1867_v56 = vadd.f32 %v3703_v58, %v1703_v13 }
 0x299   : > { %v1706_v44 = vpop.f32.mrf.mxu0  ;;  %v1444_v3 = vmul.f32 %v3689_v51, %v1369_v34  ;;  %v1371_v13 = vunpack.c.l.bf16 %v3474_v52 }
 0x29a   : > { %v1707_v45 = vadd.f32 %v1706_v44, %v1440_v18  ;;  %v1992_v49 = vpack.c.bf16 %v1930_v43, %v1928_v8  ;;  %v1868_v4 = vadd.f32 %v3699_v61, %v1705_v17  ;;  %v1931_v31 = vmax.f32 %v1867_v56, 0.0 }
 0x29b   : > { %v1708_v11 = vpop.f32.mrf.mxu0  ;;  %v1445_v43 = vmul.f32 %v3685_v53, %v1370_v20  ;;  %v1372_v18 = vunpack.c.l.bf16 %v3469_v50 }
 0x29c   : > { %v1869_v26 = vadd.f32 %v3703_v58, %v1707_v45  ;;  %v1709_v7 = vadd.f32 %v1708_v11, %v1441_v48  ;;  %2190 = vmatprep.mubr.bf16.mxu0 %v1992_v49  ;;  %v1932_v36 = vmax.f32 %v1868_v4, 0.0  ;;  %v1373_v49 = vunpack.c.h.bf16 %v3474_v52 }
 0x29d   : > { %v1712_v9 = vpop.f32.mrf.mxu0  ;;  %2191 = vmatmul.mubr.bf16.vlgmr.msra.gmra.mxu0 %v1991_v2  ;;  %v1447_v1 = vmul.f32 %v3685_v53, %v1372_v18  ;;  %v1374_v4 = vunpack.c.h.bf16 %v3469_v50 }
 0x29e   : > { %v1870_v19 = vadd.f32 %v3699_v61, %v1709_v7  ;;  %v1933_v35 = vmax.f32 %v1869_v26, 0.0  ;;  %v1713_v27 = vadd.f32 %v1712_v9, %v1442_v24  ;;  %v1446_v7 = vmul.f32 %v3689_v51, %v1371_v13 }
 0x29f   : > { %v1714_v32 = vpop.f32.mrf.mxu0 }
 0x2a0   : > { %v1934_v60 = vmax.f32 %v1870_v19, 0.0  ;;  %v1715_v25 = vadd.f32 %v1714_v32, %v1443_v29  ;;  %v1993_v10 = vpack.c.bf16 %v1933_v35, %v1931_v31  ;;  %v1871_v37 = vadd.f32 %v3703_v58, %v1713_v27 }
 0x2a1   : > { %v1716_v42 = vpop.f32.mrf.mxu0  ;;  %v1448_v29 = vmul.f32 %v3689_v51, %v1373_v49  ;;  %v1449_v32 = vmul.f32 %v3685_v53, %v1374_v4 }
 0x2a2   : > { %v1717_v8 = vadd.f32 %v1716_v42, %v1444_v3  ;;  %v1994_v17 = vpack.c.bf16 %v1934_v60, %v1932_v36  ;;  %v1872_v44 = vadd.f32 %v3699_v61, %v1715_v25  ;;  %v1935_v52 = vmax.f32 %v1871_v37, 0.0 }
 0x2a3   : > { %v1718_v28 = vpop.f32.mrf.mxu0  ;;  %v1376_v60 = vunpack.c.l.bf16 %v3485_v5  ;;  %v1375_v3 = vunpack.c.l.bf16 %v3487_v6 }
 0x2a4   : > { %v1873_v45 = vadd.f32 %v3703_v58, %v1717_v8  ;;  %v1719_v48 = vadd.f32 %v1718_v28, %v1445_v43  ;;  %2198 = vmatprep.mubr.bf16.mxu0 %v1994_v17  ;;  %v1936_v56 = vmax.f32 %v1872_v44, 0.0  ;;  %v1377_v8 = vunpack.c.h.bf16 %v3487_v6 }
 0x2a5   : > { %v1722_v2 = vpop.f32.mrf.mxu0  ;;  %2199 = vmatmul.mubr.bf16.gmra.mxu0 %v1993_v10  ;;  %v1451_v10 = vmul.f32 %v3685_v53, %v1376_v60  ;;  %v1378_v28 = vunpack.c.h.bf16 %v3485_v5  ;;  %v1450_v44 = vmul.f32 %v3689_v51, %v1375_v3  ;;  %v1382_v60 = vunpack.c.h.bf16 %v3495_v21 }
 0x2a6   : > { %v1874_v11 = vadd.f32 %v3699_v61, %v1719_v48  ;;  %v1937_v26 = vmax.f32 %v1873_v45, 0.0  ;;  %v1723_v20 = vadd.f32 %v1722_v2, %v1446_v7  ;;  %v1452_v2 = vmul.f32 %v3689_v51, %v1377_v8 }
 0x2a7   : > { %v1724_v34 = vpop.f32.mrf.mxu0 }
 0x2a8   : > { %v1938_v9 = vmax.f32 %v1874_v11, 0.0  ;;  %v1725_v19 = vadd.f32 %v1724_v34, %v1447_v1  ;;  %v1995_v25 = vpack.c.bf16 %v1937_v26, %v1935_v52  ;;  %v1875_v43 = vadd.f32 %v3703_v58, %v1723_v20 }
 0x2a9   : > { %v1726_v35 = vpop.f32.mrf.mxu0  ;;  %v1453_v26 = vmul.f32 %v3685_v53, %v1378_v28  ;;  %v1380_v34 = vunpack.c.l.bf16 %v3495_v21  ;;  %v1381_v20 = vunpack.c.h.bf16 %v3497_v22  ;;  %v1383_v21 = vunpack.c.l.bf16 %v3507_v41 }
 0x2aa   : > { %v1727_v24 = vadd.f32 %v1726_v35, %v1448_v29  ;;  %v1996_v36 = vpack.c.bf16 %v1938_v9, %v1936_v56  ;;  %v1876_v31 = vadd.f32 %v3699_v61, %v1725_v19  ;;  %v1939_v6 = vmax.f32 %v1875_v43, 0.0 }
 0x2ab   : > { %v1728_v50 = vpop.f32.mrf.mxu0  ;;  %v1379_v9 = vunpack.c.l.bf16 %v3497_v22  ;;  %v1456_v8 = vmul.f32 %v3689_v51, %v1381_v20 }
 0x2ac   : > { %v1877_v27 = vadd.f32 %v3703_v58, %v1727_v24  ;;  %v1729_v42 = vadd.f32 %v1728_v50, %v1449_v32  ;;  %2206 = vmatprep.mubr.bf16.mxu0 %v1996_v36  ;;  %v1940_v48 = vmax.f32 %v1876_v31, 0.0  ;;  %v1455_v36 = vmul.f32 %v3685_v53, %v1380_v34 }
 0x2ad   : > { %v1732_v17 = vpop.f32.mrf.mxu0  ;;  %2207 = vmatmul.mubr.bf16.gmra.mxu0 %v1995_v25  ;;  %v1454_v50 = vmul.f32 %v3689_v51, %v1379_v9  ;;  %v1458_v34 = vmul.f32 %v3689_v51, %v1383_v21 }
 0x2ae   : > { %v1878_v18 = vadd.f32 %v3699_v61, %v1729_v42  ;;  %v1941_v13 = vmax.f32 %v1877_v27, 0.0  ;;  %v1733_v11 = vadd.f32 %v1732_v17, %v1450_v44 }
 0x2af   : > { %v1734_v45 = vpop.f32.mrf.mxu0 }
 0x2b0   : > { %v1942_v49 = vmax.f32 %v1878_v18, 0.0  ;;  %v1735_v37 = vadd.f32 %v1734_v45, %v1451_v10  ;;  %v1997_v56 = vpack.c.bf16 %v1941_v13, %v1939_v6  ;;  %v1879_v35 = vadd.f32 %v3703_v58, %v1733_v11 }
 0x2b1   : > { %v1736_v1 = vpop.f32.mrf.mxu0  ;;  %v1457_v10 = vmul.f32 %v3685_v53, %v1382_v60  ;;  %v1384_v13 = vunpack.c.l.bf16 %v3505_v40 }
 0x2b2   : > { %v1737_v4 = vadd.f32 %v1736_v1, %v1452_v2  ;;  %v1998_v7 = vpack.c.bf16 %v1942_v49, %v1940_v48  ;;  %v1880_v19 = vadd.f32 %v3699_v61, %v1735_v37  ;;  %v1943_v22 = vmax.f32 %v1879_v35, 0.0 }
 0x2b3   : > { %v1738_v5 = vpop.f32.mrf.mxu0  ;;  %v1385_v2 = vunpack.c.h.bf16 %v3507_v41 }
 0x2b4   : > { %v1881_v29 = vadd.f32 %v3703_v58, %v1737_v4  ;;  %v1739_v52 = vadd.f32 %v1738_v5, %v1453_v26  ;;  %2214 = vmatprep.mubr.bf16.mxu1 %v1998_v7  ;;  %v1944_v31 = vmax.f32 %v1880_v19, 0.0  ;;  %v1459_v4 = vmul.f32 %v3685_v53, %v1384_v13 }
 0x2b5   : > { %v1742_v24 = vpop.f32.mrf.mxu0  ;;  %2215 = vmatmul.mubr.bf16.vlgmr.msra.gmra.mxu1 %v1997_v56  ;;  %v1386_v26 = vunpack.c.h.bf16 %v3505_v40  ;;  %v1387_v40 = vunpack.c.l.bf16 %v3517_v59 }
 0x2b6   : > { %v1882_v32 = vadd.f32 %v3699_v61, %v1739_v52  ;;  %v1945_v25 = vmax.f32 %v1881_v29, 0.0  ;;  %v1743_v43 = vadd.f32 %v1742_v24, %v1454_v50  ;;  %v1460_v29 = vmul.f32 %v3689_v51, %v1385_v2 }
 0x2b7   : > { %v1744_v3 = vpop.f32.mrf.mxu0  ;;  %v1461_v24 = vmul.f32 %v3685_v53, %v1386_v26 }
 0x2b8   : > { %v1946_v27 = vmax.f32 %v1882_v32, 0.0  ;;  %v1745_v42 = vadd.f32 %v1744_v3, %v1455_v36  ;;  %v1999_v45 = vpack.c.bf16 %v1945_v25, %v1943_v22  ;;  %v1883_v6 = vadd.f32 %v3703_v58, %v1743_v43 }
 0x2b9   : > { %v1746_v17 = vpop.f32.mrf.mxu0  ;;  %v1388_v36 = vunpack.c.l.bf16 %v3515_v57 }
 0x2ba   : > { %v1747_v18 = vadd.f32 %v1746_v17, %v1456_v8  ;;  %v2000_v28 = vpack.c.bf16 %v1946_v27, %v1944_v31  ;;  %v1884_v48 = vadd.f32 %v3699_v61, %v1745_v42  ;;  %v1947_v41 = vmax.f32 %v1883_v6, 0.0 }
 0x2bb   : > { %v1748_v44 = vpop.f32.mrf.mxu0  ;;  %v1389_v27 = vunpack.c.h.bf16 %v3517_v59  ;;  %v1463_v43 = vmul.f32 %v3685_v53, %v1388_v36  ;;  %v1390_v17 = vunpack.c.h.bf16 %v3515_v57  ;;  %v1391_v57 = vunpack.c.l.bf16 %v3527_v14 }
 0x2bc   : > { %v1885_v49 = vadd.f32 %v3703_v58, %v1747_v18  ;;  %v1749_v37 = vadd.f32 %v1748_v44, %v1457_v10  ;;  %2222 = vmatprep.mubr.bf16.mxu1 %v2000_v28  ;;  %v1948_v5 = vmax.f32 %v1884_v48, 0.0  ;;  %v1462_v10 = vmul.f32 %v3689_v51, %v1387_v40 }
 0x2bd   : > { %v1752_v11 = vpop.f32.mrf.mxu0  ;;  %2223 = vmatmul.mubr.bf16.gmra.mxu1 %v1999_v45  ;;  %v1464_v45 = vmul.f32 %v3689_v51, %v1389_v27  ;;  %v1465_v2 = vmul.f32 %v3685_v53, %v1390_v17  ;;  %v1396_v27 = vunpack.c.l.bf16 %v3535_v30 }
 0x2be   : > { %v1886_v1 = vadd.f32 %v3699_v61, %v1749_v37  ;;  %v1949_v7 = vmax.f32 %v1885_v49, 0.0  ;;  %v1753_v52 = vadd.f32 %v1752_v11, %v1458_v34  ;;  %v1392_v11 = vunpack.c.l.bf16 %v3525_v12 }
 0x2bf   : > { %v1754_v56 = vpop.f32.mrf.mxu0 }
 0x2c0   : > { %v1950_v9 = vmax.f32 %v1886_v1, 0.0  ;;  %v1755_v19 = vadd.f32 %v1754_v56, %v1459_v4  ;;  %v2001_v25 = vpack.c.bf16 %v1949_v7, %v1947_v41  ;;  %v1887_v42 = vadd.f32 %v3703_v58, %v1753_v52 }
 0x2c1   : > { %v1756_v20 = vpop.f32.mrf.mxu0  ;;  %v1393_v56 = vunpack.c.h.bf16 %v3527_v14  ;;  %v1394_v41 = vunpack.c.h.bf16 %v3525_v12  ;;  %v1395_v12 = vunpack.c.l.bf16 %v3537_v33 }
 0x2c2   : > { %v1757_v35 = vadd.f32 %v1756_v20, %v1460_v29  ;;  %v2002_v32 = vpack.c.bf16 %v1950_v9, %v1948_v5  ;;  %v1888_v50 = vadd.f32 %v3699_v61, %v1755_v19  ;;  %v1951_v59 = vmax.f32 %v1887_v42, 0.0 }
 0x2c3   : > { %v1758_v60 = vpop.f32.mrf.mxu0  ;;  %v1467_v29 = vmul.f32 %v3685_v53, %v1392_v11  ;;  %v1466_v20 = vmul.f32 %v3689_v51, %v1391_v57 }
 0x2c4   : > { %v1889_v3 = vadd.f32 %v3703_v58, %v1757_v35  ;;  %v1759_v31 = vadd.f32 %v1758_v60, %v1461_v24  ;;  %2230 = vmatprep.mubr.bf16.mxu1 %v2002_v32  ;;  %v1952_v13 = vmax.f32 %v1888_v50, 0.0  ;;  %v1468_v60 = vmul.f32 %v3689_v51, %v1393_v56 }
 0x2c5   : > { %v1762_v8 = vpop.f32.mrf.mxu0  ;;  %2231 = vmatmul.mubr.bf16.gmra.mxu1 %v2001_v25 }
 0x2c6   : > { %v1890_v22 = vadd.f32 %v3699_v61, %v1759_v31  ;;  %v1953_v18 = vmax.f32 %v1889_v3, 0.0  ;;  %v1763_v48 = vadd.f32 %v1762_v8, %v1462_v10  ;;  %v1469_v3 = vmul.f32 %v3685_v53, %v1394_v41 }
 0x2c7   : > { %v1764_v28 = vpop.f32.mrf.mxu0 }
 0x2c8   : > { %v1954_v44 = vmax.f32 %v1890_v22, 0.0  ;;  %v1765_v21 = vadd.f32 %v1764_v28, %v1463_v43  ;;  %v2003_v4 = vpack.c.bf16 %v1953_v18, %v1951_v59  ;;  %v1891_v5 = vadd.f32 %v3703_v58, %v1763_v48 }
 0x2c9   : > { %v1766_v49 = vpop.f32.mrf.mxu0  ;;  %v1397_v18 = vunpack.c.h.bf16 %v3537_v33  ;;  %v1470_v59 = vmul.f32 %v3689_v51, %v1395_v12 }
 0x2ca   : > { %v1767_v37 = vadd.f32 %v1766_v49, %v1464_v45  ;;  %v2004_v6 = vpack.c.bf16 %v1954_v44, %v1952_v13  ;;  %v1892_v26 = vadd.f32 %v3699_v61, %v1765_v21  ;;  %v1955_v14 = vmax.f32 %v1891_v5, 0.0 }
 0x2cb   : > { %v1768_v1 = vpop.f32.mrf.mxu0  ;;  %v1471_v44 = vmul.f32 %v3685_v53, %v1396_v27  ;;  %v1398_v21 = vunpack.c.h.bf16 %v3535_v30  ;;  %v1399_v30 = vunpack.c.l.bf16 %v3553_v55 }
 0x2cc   : > { %v1893_v7 = vadd.f32 %v3703_v58, %v1767_v37  ;;  %v1769_v34 = vadd.f32 %v1768_v1, %v1465_v2  ;;  %2238 = vmatprep.mubr.bf16.mxu1 %v2004_v6  ;;  %v1956_v24 = vmax.f32 %v1892_v26, 0.0  ;;  %v1472_v6 = vmul.f32 %v3689_v51, %v1397_v18 }
 0x2cd   : > { %v1772_v9 = vpop.f32.mrf.mxu0  ;;  %2239 = vmatmul.mubr.bf16.gmra.mxu1 %v2003_v4  ;;  %v1473_v4 = vmul.f32 %v3685_v53, %v1398_v21 }
 0x2ce   : > { %v1894_v19 = vadd.f32 %v3699_v61, %v1769_v34  ;;  %v1957_v52 = vmax.f32 %v1893_v7, 0.0  ;;  %v1773_v40 = vadd.f32 %v1772_v9, %v1466_v20  ;;  %v1400_v7 = vunpack.c.l.bf16 %v3551_v54 }
 0x2cf   : > { %v1774_v35 = vpop.f32.mrf.mxu0 }
 0x2d0   : > { %v1958_v32 = vmax.f32 %v1894_v19, 0.0  ;;  %v1775_v36 = vadd.f32 %v1774_v35, %v1467_v29  ;;  %v2005_v8 = vpack.c.bf16 %v1957_v52, %v1955_v14  ;;  %v1895_v10 = vadd.f32 %v3703_v58, %v1773_v40 }
 0x2d1   : > { %v1776_v25 = vpop.f32.mrf.mxu0  ;;  %v1401_v29 = vunpack.c.h.bf16 %v3553_v55  ;;  %v1475_v35 = vmul.f32 %v3685_v53, %v1400_v7 }
 0x2d2   : > { %v1777_v50 = vadd.f32 %v1776_v25, %v1468_v60  ;;  %v2006_v31 = vpack.c.bf16 %v1958_v32, %v1956_v24  ;;  %v1896_v22 = vadd.f32 %v3699_v61, %v1775_v36  ;;  %v1959_v33 = vmax.f32 %v1895_v10, 0.0 }
 0x2d3   : > { %v1778_v42 = vpop.f32.mrf.mxu0  ;;  %v1402_v24 = vunpack.c.h.bf16 %v3551_v54  ;;  %v1474_v36 = vmul.f32 %v3689_v51, %v1399_v30  ;;  %v1403_v54 = vunpack.c.l.bf16 %v3563_v16 }
 0x2d4   : > { %v1897_v43 = vadd.f32 %v3703_v58, %v1777_v50  ;;  %v1779_v17 = vadd.f32 %v1778_v42, %v1469_v3  ;;  %2246 = vmatprep.mubr.bf16.mxu1 %v2006_v31  ;;  %v1960_v49 = vmax.f32 %v1896_v22, 0.0  ;;  %v1476_v50 = vmul.f32 %v3689_v51, %v1401_v29 }
 0x2d5   : > { %v1782_v28 = vpop.f32.mrf.mxu0  ;;  %2247 = vmatmul.mubr.bf16.gmra.mxu1 %v2005_v8  ;;  %v1477_v42 = vmul.f32 %v3685_v53, %v1402_v24  ;;  %v1404_v8 = vunpack.c.l.bf16 %v3561_v15  ;;  %v1409_v29 = vunpack.c.h.bf16 %v3573_v39  ;;  %v1410_v24 = vunpack.c.h.bf16 %v3571_v38 }
 0x2d6   : > { %v1898_v13 = vadd.f32 %v3699_v61, %v1779_v17  ;;  %v1961_v45 = vmax.f32 %v1897_v43, 0.0  ;;  %v1783_v11 = vadd.f32 %v1782_v28, %v1470_v59  ;;  %v1405_v28 = vunpack.c.h.bf16 %v3563_v16 }
 0x2d7   : > { %v1784_v48 = vpop.f32.mrf.mxu0  ;;  %v1406_v59 = vunpack.c.h.bf16 %v3561_v15  ;;  %v1407_v15 = vunpack.c.l.bf16 %v3573_v39 }
 0x2d8   : > { %v1962_v37 = vmax.f32 %v1898_v13, 0.0  ;;  %v1785_v2 = vadd.f32 %v1784_v48, %v1471_v44  ;;  %v2007_v56 = vpack.c.bf16 %v1961_v45, %v1959_v33  ;;  %v1899_v41 = vadd.f32 %v3703_v58, %v1783_v11 }
 0x2d9   : > { %v1786_v1 = vpop.f32.mrf.mxu0  ;;  %v1479_v45 = vmul.f32 %v3685_v53, %v1404_v8  ;;  %v1480_v11 = vmul.f32 %v3689_v51, %v1405_v28 }
 0x2da   : > { %v1787_v57 = vadd.f32 %v1786_v1, %v1472_v6  ;;  %v2008_v26 = vpack.c.bf16 %v1962_v37, %v1960_v49  ;;  %v1900_v5 = vadd.f32 %v3699_v61, %v1785_v2  ;;  %v1963_v55 = vmax.f32 %v1899_v41, 0.0 }
 0x2db   : > { %v1788_v34 = vpop.f32.mrf.mxu0  ;;  %v1478_v49 = vmul.f32 %v3689_v51, %v1403_v54 }
 0x2dc   : > { %v1901_v9 = vadd.f32 %v3703_v58, %v1787_v57  ;;  %v1789_v19 = vadd.f32 %v1788_v34, %v1473_v4  ;;  %2254 = vmatprep.mubr.bf16.mxu1 %v2008_v26  ;;  %v1964_v14 = vmax.f32 %v1900_v5, 0.0  ;;  %v1481_v26 = vmul.f32 %v3685_v53, %v1406_v59 }
 0x2dd   : > { %v1792_v52 = vpop.f32.mrf.mxu0  ;;  %2255 = vmatmul.mubr.bf16.gmra.mxu1 %v2007_v56  ;;  %v1408_v34 = vunpack.c.l.bf16 %v3571_v38  ;;  %v1411_v38 = vunpack.c.l.bf16 %v3583_v63 }
 0x2de   : > { %v1902_v20 = vadd.f32 %v3699_v61, %v1789_v19  ;;  %v1965_v32 = vmax.f32 %v1901_v9, 0.0  ;;  %v1793_v3 = vadd.f32 %v1792_v52, %v1474_v36  ;;  %v1482_v36 = vmul.f32 %v3689_v51, %v1407_v15 }
 0x2df   : > { %v1794_v60 = vpop.f32.mrf.mxu0  ;;  %v1486_v59 = vmul.f32 %v3689_v51, %v1411_v38 }
 0x2e0   : > { %v1966_v40 = vmax.f32 %v1902_v20, 0.0  ;;  %v1795_v25 = vadd.f32 %v1794_v60, %v1475_v35  ;;  %v2009_v43 = vpack.c.bf16 %v1965_v32, %v1963_v55  ;;  %v1903_v13 = vadd.f32 %v3703_v58, %v1793_v3 }
 0x2e1   : > { %v1796_v31 = vpop.f32.mrf.mxu0  ;;  %v1483_v35 = vmul.f32 %v3685_v53, %v1408_v34 }
 0x2e2   : > { %v1797_v27 = vadd.f32 %v1796_v31, %v1476_v50  ;;  %v2010_v12 = vpack.c.bf16 %v1966_v40, %v1964_v14  ;;  %v1904_v17 = vadd.f32 %v3699_v61, %v1795_v25  ;;  %v1967_v16 = vmax.f32 %v1903_v13, 0.0 }
 0x2e3   : > { %v1798_v22 = vpop.f32.mrf.mxu0  ;;  %v1484_v50 = vmul.f32 %v3689_v51, %v1409_v29 }
 0x2e4   : > { %v1905_v18 = vadd.f32 %v3703_v58, %v1797_v27  ;;  %v1799_v10 = vadd.f32 %v1798_v22, %v1477_v42  ;;  %2262 = vmatprep.mubr.bf16.mxu1 %v2010_v12  ;;  %v1968_v2 = vmax.f32 %v1904_v17, 0.0  ;;  %v1485_v27 = vmul.f32 %v3685_v53, %v1410_v24 }
 0x2e5   : > { %v1802_v44 = vpop.f32.mrf.mxu0  ;;  %2263 = vmatmul.mubr.bf16.gmra.mxu1 %v2009_v43  ;;  %v1412_v12 = vunpack.c.l.bf16 %v3581_v62 }
 0x2e6   : > { %v1906_v21 = vadd.f32 %v3699_v61, %v1799_v10  ;;  %v1969_v48 = vmax.f32 %v1905_v18, 0.0  ;;  %v1803_v1 = vadd.f32 %v1802_v44, %v1478_v49  ;;  %v1413_v18 = vunpack.c.h.bf16 %v3583_v63 }
 0x2e7   : > { %v1804_v37 = vpop.f32.mrf.mxu0  ;;  %v1487_v44 = vmul.f32 %v3685_v53, %v1412_v12 }
 0x2e8   : > { %v1970_v6 = vmax.f32 %v1906_v21, 0.0  ;;  %v1805_v33 = vadd.f32 %v1804_v37, %v1479_v45  ;;  %v2011_v56 = vpack.c.bf16 %v1969_v48, %v1967_v16  ;;  %v1907_v41 = vadd.f32 %v3703_v58, %v1803_v1 }
 0x2e9   : > { %v1806_v57 = vpop.f32.mrf.mxu0  ;;  %v1414_v21 = vunpack.c.h.bf16 %v3581_v62  ;;  %v1415_v62 = vunpack.c.l.bf16 %v3593_v23 }
 0x2ea   : > { %v1807_v4 = vadd.f32 %v1806_v57, %v1480_v11  ;;  %v2012_v7 = vpack.c.bf16 %v1970_v6, %v1968_v2  ;;  %v1908_v5 = vadd.f32 %v3699_v61, %v1805_v33  ;;  %v1971_v39 = vmax.f32 %v1907_v41, 0.0 }
 0x2eb   : > { %v1808_v30 = vpop.f32.mrf.mxu0  ;;  %v1488_v6 = vmul.f32 %v3689_v51, %v1413_v18  ;;  %v1489_v1 = vmul.f32 %v3685_v53, %v1414_v21  ;;  %v1418_v41 = vunpack.c.h.bf16 %v3591_v0 }
 0x2ec   : > { %v1909_v9 = vadd.f32 %v3703_v58, %v1807_v4  ;;  %v1809_v19 = vadd.f32 %v1808_v30, %v1481_v26  ;;  %2270 = vmatprep.mubr.bf16.mxu1 %v2012_v7  ;;  %v1972_v14 = vmax.f32 %v1908_v5, 0.0  ;;  %v1416_v4 = vunpack.c.l.bf16 %v3591_v0 }
 0x2ed   : > { %v1812_v52 = vpop.f32.mrf.mxu0  ;;  %2271 = vmatmul.mubr.bf16.gmra.mxu1 %v2011_v56  ;;  %v1417_v56 = vunpack.c.h.bf16 %v3593_v23  ;;  %v1419_v0 = vunpack.c.l.bf16 %v3603_v47 }
 0x2ee   : > { %v1910_v20 = vadd.f32 %v3699_v61, %v1809_v19  ;;  %v1973_v32 = vmax.f32 %v1909_v9, 0.0  ;;  %v1813_v55 = vadd.f32 %v1812_v52, %v1482_v36  ;;  %v1491_v29 = vmul.f32 %v3685_v53, %v1416_v4 }
 0x2ef   : > { %v1814_v60 = vpop.f32.mrf.mxu0 }
 0x2f0   : > { %v1974_v40 = vmax.f32 %v1910_v20, 0.0  ;;  %v1815_v25 = vadd.f32 %v1814_v60, %v1483_v35  ;;  %v2013_v22 = vpack.c.bf16 %v1973_v32, %v1971_v39  ;;  %v1911_v10 = vadd.f32 %v3703_v58, %v1813_v55 }
 0x2f1   : > { %v1816_v3 = vpop.f32.mrf.mxu0  ;;  %v1490_v20 = vmul.f32 %v3689_v51, %v1415_v62  ;;  %v1492_v60 = vmul.f32 %v3689_v51, %v1417_v56  ;;  %v1420_v55 = vunpack.c.l.bf16 %v3601_v46 }
 0x2f2   : > { %v1817_v31 = vadd.f32 %v1816_v3, %v1484_v50  ;;  %v2014_v42 = vpack.c.bf16 %v1974_v40, %v1972_v14  ;;  %v1912_v54 = vadd.f32 %v3699_v61, %v1815_v25  ;;  %v1975_v63 = vmax.f32 %v1911_v10, 0.0 }
 0x2f3   : > { %v1818_v8 = vpop.f32.mrf.mxu0  ;;  %v1493_v50 = vmul.f32 %v3685_v53, %v1418_v41  ;;  %v1494_v10 = vmul.f32 %v3689_v51, %v1419_v0 }
 0x2f4   : > { %v1913_v43 = vadd.f32 %v3703_v58, %v1817_v31  ;;  %v1819_v17 = vadd.f32 %v1818_v8, %v1485_v27  ;;  %2278 = vmatprep.mubr.bf16.mxu1 %v2014_v42  ;;  %v1976_v49 = vmax.f32 %v1912_v54, 0.0  ;;  %v1421_v8 = vunpack.c.h.bf16 %v3603_v47 }
 0x2f5   : > { %v1822_v28 = vpop.f32.mrf.mxu0  ;;  %2279 = vmatmul.mubr.bf16.gmra.mxu1 %v2013_v22 }
 0x2f6   : > { %v1914_v13 = vadd.f32 %v3699_v61, %v1819_v17  ;;  %v1977_v45 = vmax.f32 %v1913_v43, 0.0  ;;  %v1823_v33 = vadd.f32 %v1822_v28, %v1486_v59  ;;  %v1495_v43 = vmul.f32 %v3685_v53, %v1420_v55 }
 0x2f7   : > { %v1824_v48 = vpop.f32.mrf.mxu0  ;;  %v1422_v17 = vunpack.c.h.bf16 %v3601_v46 }
 0x2f8   : > { %v1978_v37 = vmax.f32 %v1914_v13, 0.0  ;;  %v1825_v2 = vadd.f32 %v1824_v48, %v1487_v44  ;;  %v2015_v7 = vpack.c.bf16 %v1977_v45, %v1975_v63  ;;  %v1915_v5 = vadd.f32 %v3703_v58, %v1823_v33 }
 0x2f9   : > { %v1826_v11 = vpop.f32.mrf.mxu0  ;;  %v1496_v45 = vmul.f32 %v3689_v51, %v1421_v8 }
 0x2fa   : > { %v1827_v16 = vadd.f32 %v1826_v11, %v1488_v6  ;;  %v2016_v57 = vpack.c.bf16 %v1978_v37, %v1976_v49  ;;  %v1916_v34 = vadd.f32 %v3699_v61, %v1825_v2  ;;  %v1979_v23 = vmax.f32 %v1915_v5, 0.0 }
 0x2fb   : > { %v1828_v26 = vpop.f32.mrf.mxu0  ;;  %v1497_v37 = vmul.f32 %v3685_v53, %v1422_v17 }
 0x2fc   : > { %v1917_v30 = vadd.f32 %v3703_v58, %v1827_v16  ;;  %v1829_v15 = vadd.f32 %v1828_v26, %v1489_v1  ;;  %2286 = vmatprep.mubr.bf16.mxu1 %v2016_v57  ;;  %v1980_v24 = vmax.f32 %v1916_v34, 0.0 }
 0x2fd   : > { %v1832_v9 = vpop.f32.mrf.mxu0  ;;  %2287 = vmatmul.mubr.bf16.gmra.mxu1 %v2015_v7  ;;  %v3032_v7 = vmov 0.0  }
 0x2fe   : > { %v1918_v19 = vadd.f32 %v3699_v61, %v1829_v15  ;;  %v1981_v52 = vmax.f32 %v1917_v30, 0.0  ;;  %v1833_v14 = vadd.f32 %v1832_v9, %v1490_v20  ;;  %422 = vst [vmem:[#allocation2] sm:$0x1] %v3032_v7 }
 0x2ff   : > { %v1834_v35 = vpop.f32.mrf.mxu0 }
 0x300   : > { %v1982_v32 = vmax.f32 %v1918_v19, 0.0  ;;  %v1835_v36 = vadd.f32 %v1834_v35, %v1491_v29  ;;  %v2017_v31 = vpack.c.bf16 %v1981_v52, %v1979_v23  ;;  %v1919_v38 = vadd.f32 %v3703_v58, %v1833_v14 }
 0x301   : > { %v1836_v40 = vpop.f32.mrf.mxu0 }
 0x302   : > { %v1837_v25 = vadd.f32 %v1836_v40, %v1492_v60  ;;  %v2018_v39 = vpack.c.bf16 %v1982_v32, %v1980_v24  ;;  %v1920_v27 = vadd.f32 %v3699_v61, %v1835_v36  ;;  %v1983_v47 = vmax.f32 %v1919_v38, 0.0 }
 0x303   : > { %v1838_v3 = vpop.f32.mrf.mxu0 }
 0x304   : > { %v1921_v42 = vadd.f32 %v3703_v58, %v1837_v25  ;;  %v1839_v12 = vadd.f32 %v1838_v3, %v1493_v50  ;;  %2294 = vmatprep.mubr.bf16.mxu1 %v2018_v39  ;;  %v1984_v13 = vmax.f32 %v1920_v27, 0.0 }
 0x305   : > { %v1842_v22 = vpop.f32.mrf.mxu0  ;;  %2295 = vmatmul.mubr.bf16.gmra.mxu1 %v2017_v31 }
 0x306   : > { %v1922_v54 = vadd.f32 %v3699_v61, %v1839_v12  ;;  %v1985_v18 = vmax.f32 %v1921_v42, 0.0  ;;  %v1843_v59 = vadd.f32 %v1842_v22, %v1494_v10 }
 0x307   : > { %v1844_v28 = vpop.f32.mrf.mxu0 }
 0x308   : > { %v1986_v44 = vmax.f32 %v1922_v54, 0.0  ;;  %v1845_v21 = vadd.f32 %v1844_v28, %v1495_v43  ;;  %v2019_v63 = vpack.c.bf16 %v1985_v18, %v1983_v47  ;;  %v1923_v16 = vadd.f32 %v3703_v58, %v1843_v59  ;;  %v3903_v54 = vld [vmem:[%s4002_s9] ss:$0 sm:$0xff] }
 0x309   : > { %v1846_v48 = vpop.f32.mrf.mxu0 }
 0x30a   : > { %v1847_v49 = vadd.f32 %v1846_v48, %v1496_v45  ;;  %v2020_v2 = vpack.c.bf16 %v1986_v44, %v1984_v13  ;;  %v1924_v46 = vadd.f32 %v3699_v61, %v1845_v21  ;;  %v1987_v26 = vmax.f32 %v1923_v16, 0.0 }
 0x30b   : > { %v1848_v6 = vpop.f32.mrf.mxu0 }
 0x30c   : > { %v1925_v33 = vadd.f32 %v3703_v58, %v1847_v49  ;;  %v1849_v11 = vadd.f32 %v1848_v6, %v1497_v37  ;;  %2302 = vmatprep.mubr.bf16.mxu1 %v2020_v2  ;;  %v1988_v57 = vmax.f32 %v1924_v46, 0.0 }
 0x30d   : > { %2303 = vmatmul.mubr.bf16.gmra.mxu1 %v2019_v63 }
 0x30e   : > { %v1926_v51 = vadd.f32 %v3699_v61, %v1849_v11  ;;  %v1989_v1 = vmax.f32 %v1925_v33, 0.0 }
 0x310   : > { %v1990_v4 = vmax.f32 %v1926_v51, 0.0  ;;  %v2021_v53 = vpack.c.bf16 %v1989_v1, %v1987_v26 }
 0x312   : > { %v2022_v62 = vpack.c.bf16 %v1990_v4, %v1988_v57 }
 0x314   : > { %2310 = vmatprep.mubr.bf16.mxu1 %v2022_v62 }
 0x315   : > { %2311 = vmatmul.mubr.bf16.gmra.mxu1 %v2021_v53 }
 0x35d   : > { %v2623_v34 = vpop.f32.mrf.mxu0 }
 0x35f   : > { %v2624_v15 = vpop.f32.mrf.mxu0 }
 0x360   : > { %v2625_v38 = vadd.f32 %v2624_v15, %v2623_v34 }
 0x361   : > { %v2626_v9 = vpop.f32.mrf.mxu0 }
 0x362   : > { %v2193_v13 = vadd.f32 %v2625_v38, %v3903_v54 }
 0x363   : > { %v2627_v29 = vpop.f32.mrf.mxu0 }
 0x364   : > { %v2628_v42 = vadd.f32 %v2627_v29, %v2626_v9  ;;  %v2319_v37 = vmax.f32 %v2193_v13, 0.0 }
 0x365   : > { %v2629_v52 = vpop.f32.mrf.mxu0 }
 0x366   : > { %v2196_v17 = vadd.f32 %v2628_v42, %v3903_v54 }
 0x367   : > { %v2630_v24 = vpop.f32.mrf.mxu0 }
 0x368   : > { %v2631_v22 = vadd.f32 %v2630_v24, %v2629_v52  ;;  %v2320_v47 = vmax.f32 %v2196_v17, 0.0 }
 0x369   : > { %v2632_v60 = vpop.f32.mrf.mxu0 }
 0x36a   : > { %v2201_v44 = vadd.f32 %v2631_v22, %v3903_v54  ;;  %v2352_v33 = vadd.f32 %v2320_v47, %v2319_v37 }
 0x36b   : > { %v2633_v40 = vpop.f32.mrf.mxu0 }
 0x36c   : > { %v2634_v18 = vadd.f32 %v2633_v40, %v2632_v60  ;;  %v2321_v2 = vmax.f32 %v2201_v44, 0.0 }
 0x36d   : > { %v2635_v39 = vpop.f32.mrf.mxu0 }
 0x36e   : > { %v2204_v59 = vadd.f32 %v2634_v18, %v3903_v54  ;;  %v2353_v57 = vadd.f32 %v2352_v33, %v2321_v2 }
 0x36f   : > { %v2636_v0 = vpop.f32.mrf.mxu0 }
 0x370   : > { %v2637_v21 = vadd.f32 %v2636_v0, %v2635_v39  ;;  %v2322_v11 = vmax.f32 %v2204_v59, 0.0 }
 0x371   : > { %v2638_v12 = vpop.f32.mrf.mxu0 }
 0x372   : > { %v2209_v6 = vadd.f32 %v2637_v21, %v3903_v54  ;;  %v2354_v7 = vadd.f32 %v2353_v57, %v2322_v11 }
 0x373   : > { %v2639_v10 = vpop.f32.mrf.mxu0 }
 0x374   : > { %v2640_v48 = vadd.f32 %v2639_v10, %v2638_v12  ;;  %v2323_v4 = vmax.f32 %v2209_v6, 0.0 }
 0x375   : > { %v2641_v30 = vpop.f32.mrf.mxu1 }
 0x376   : > { %v2212_v16 = vadd.f32 %v2640_v48, %v3903_v54 }
 0x377   : > { %v2642_v56 = vpop.f32.mrf.mxu1 }
 0x378   : > { %v2643_v63 = vadd.f32 %v2642_v56, %v2641_v30  ;;  %v2324_v34 = vmax.f32 %v2212_v16, 0.0  ;;  %v2355_v30 = vadd.f32 %v2354_v7, %v2323_v4 }
 0x379   : > { %v2644_v5 = vpop.f32.mrf.mxu1 }
 0x37a   : > { %v2217_v26 = vadd.f32 %v2643_v63, %v3903_v54 }
 0x37b   : > { %v2645_v58 = vpop.f32.mrf.mxu1 }
 0x37c   : > { %v2646_v51 = vadd.f32 %v2645_v58, %v2644_v5  ;;  %v2325_v56 = vmax.f32 %v2217_v26, 0.0  ;;  %v2356_v5 = vadd.f32 %v2355_v30, %v2324_v34 }
 0x37d   : > { %v2647_v19 = vpop.f32.mrf.mxu1 }
 0x37e   : > { %v2220_v15 = vadd.f32 %v2646_v51, %v3903_v54 }
 0x37f   : > { %v2648_v61 = vpop.f32.mrf.mxu1 }
 0x380   : > { %v2649_v62 = vadd.f32 %v2648_v61, %v2647_v19  ;;  %v2326_v58 = vmax.f32 %v2220_v15, 0.0  ;;  %v2357_v19 = vadd.f32 %v2356_v5, %v2325_v56 }
 0x381   : > { %v2650_v41 = vpop.f32.mrf.mxu1 }
 0x382   : > { %v2225_v52 = vadd.f32 %v2649_v62, %v3903_v54 }
 0x383   : > { %v2651_v20 = vpop.f32.mrf.mxu1 }
 0x384   : > { %v2652_v9 = vadd.f32 %v2651_v20, %v2650_v41  ;;  %v2327_v61 = vmax.f32 %v2225_v52, 0.0  ;;  %v2358_v41 = vadd.f32 %v2357_v19, %v2326_v58 }
 0x385   : > { %v2653_v35 = vpop.f32.mrf.mxu1 }
 0x386   : > { %v2228_v40 = vadd.f32 %v2652_v9, %v3903_v54 }
 0x387   : > { %v2654_v32 = vpop.f32.mrf.mxu1 }
 0x388   : > { %v2655_v24 = vadd.f32 %v2654_v32, %v2653_v35  ;;  %v2328_v20 = vmax.f32 %v2228_v40, 0.0  ;;  %v2359_v32 = vadd.f32 %v2358_v41, %v2327_v61 }
 0x389   : > { %v2656_v36 = vpop.f32.mrf.mxu1 }
 0x38a   : > { %v2233_v42 = vadd.f32 %v2655_v24, %v3903_v54  ;;  %v2360_v13 = vadd.f32 %v2359_v32, %v2328_v20 }
 0x38b   : > { %v2657_v23 = vpop.f32.mrf.mxu1 }
 0x38c   : > { %v2658_v39 = vadd.f32 %v2657_v23, %v2656_v36  ;;  %v2329_v18 = vmax.f32 %v2233_v42, 0.0 }
 0x38d   : > { %v2659_v14 = vpop.f32.mrf.mxu1 }
 0x38e   : > { %v2236_v22 = vadd.f32 %v2658_v39, %v3903_v54  ;;  %v2361_v47 = vadd.f32 %v2360_v13, %v2329_v18 }
 0x38f   : > { %v2660_v25 = vpop.f32.mrf.mxu1 }
 0x390   : > { %v2661_v12 = vadd.f32 %v2660_v25, %v2659_v14  ;;  %v2330_v44 = vmax.f32 %v2236_v22, 0.0 }
 0x391   : > { %v3890_v50 = vpop.f32.mrf.mxu1 }
 0x392   : > { %v2241_v10 = vadd.f32 %v2661_v12, %v3903_v54  ;;  %v2362_v37 = vadd.f32 %v2361_v47, %v2330_v44 }
 0x393   : > { %v2663_v55 = vpop.f32.mrf.mxu1 }
 0x394   : > { %v2664_v17 = vadd.f32 %v2663_v55, %v3890_v50  ;;  %v2331_v59 = vmax.f32 %v2241_v10, 0.0 }
 0x395   : > { %v3892_v3 = vpop.f32.mrf.mxu1 }
 0x396   : > { %v2244_v14 = vadd.f32 %v2664_v17, %v3903_v54  ;;  %v2363_v63 = vadd.f32 %v2362_v37, %v2331_v59 }
 0x397   : > { %v3894_v31 = vpop.f32.mrf.mxu1 }
 0x398   : > { %v2667_v36 = vadd.f32 %v3894_v31, %v3892_v3  ;;  %v2332_v2 = vmax.f32 %v2244_v14, 0.0 }
 0x399   : > { %v3896_v27 = vpop.f32.mrf.mxu1 }
 0x39a   : > { %v2249_v50 = vadd.f32 %v2667_v36, %v3903_v54  ;;  %v2364_v16 = vadd.f32 %v2363_v63, %v2332_v2 }
 0x39b   : > { %v3898_v8 = vpop.f32.mrf.mxu1 }
 0x39c   : > { %v2670_v25 = vadd.f32 %v3898_v8, %v3896_v27  ;;  %v2333_v33 = vmax.f32 %v2249_v50, 0.0 }
 0x39d   : > { %v3905_v43 = vpop.f32.mrf.mxu1 }
 0x39e   : > { %v2252_v3 = vadd.f32 %v2670_v25, %v3903_v54 }
 0x39f   : > { %v2672_v28 = vpop.f32.mrf.mxu1 }
 0x3a0   : > { %v2673_v55 = vadd.f32 %v2672_v28, %v3905_v43  ;;  %v2334_v51 = vmax.f32 %v2252_v3, 0.0  ;;  %v2365_v28 = vadd.f32 %v2364_v16, %v2333_v33 }
 0x3a1   : > { %v3910_v45 = vpop.f32.mrf.mxu1 }
 0x3a2   : > { %v2257_v11 = vadd.f32 %v2673_v55, %v3903_v54 }
 0x3a3   : > { %v2675_v49 = vpop.f32.mrf.mxu1 }
 0x3a4   : > { %v2676_v31 = vadd.f32 %v2675_v49, %v3910_v45  ;;  %v2335_v26 = vmax.f32 %v2257_v11, 0.0  ;;  %v2366_v45 = vadd.f32 %v2365_v28, %v2334_v51 }
 0x3a5   : > { %v2677_v46 = vpop.f32.mrf.mxu1 }
 0x3a6   : > { %v2260_v57 = vadd.f32 %v2676_v31, %v3903_v54 }
 0x3a7   : > { %v2678_v1 = vpop.f32.mrf.mxu1 }
 0x3a8   : > { %v2679_v27 = vadd.f32 %v2678_v1, %v2677_v46  ;;  %v2336_v49 = vmax.f32 %v2260_v57, 0.0  ;;  %v2367_v46 = vadd.f32 %v2366_v45, %v2335_v26 }
 0x3a9   : > { %v2680_v53 = vpop.f32.mrf.mxu1 }
 0x3aa   : > { %v2265_v62 = vadd.f32 %v2679_v27, %v3903_v54 }
 0x3ab   : > { %v2681_v29 = vpop.f32.mrf.mxu1 }
 0x3ac   : > { %v2682_v4 = vadd.f32 %v2681_v29, %v2680_v53  ;;  %v2337_v1 = vmax.f32 %v2265_v62, 0.0  ;;  %v2368_v53 = vadd.f32 %v2367_v46, %v2336_v49 }
 0x3ad   : > { %v2683_v60 = vpop.f32.mrf.mxu1 }
 0x3ae   : > { %v2268_v15 = vadd.f32 %v2682_v4, %v3903_v54 }
 0x3af   : > { %v2684_v0 = vpop.f32.mrf.mxu1 }
 0x3b0   : > { %v2685_v7 = vadd.f32 %v2684_v0, %v2683_v60  ;;  %v2338_v29 = vmax.f32 %v2268_v15, 0.0  ;;  %v2369_v60 = vadd.f32 %v2368_v53, %v2337_v1 }
 0x3b1   : > { %v2686_v38 = vpop.f32.mrf.mxu1 }
 0x3b2   : > { %v2273_v56 = vadd.f32 %v2685_v7, %v3903_v54  ;;  %v2370_v42 = vadd.f32 %v2369_v60, %v2338_v29  ;;  %v2351_v29 = vld [vmem:[#allocation2] sm:$0x1] }
 0x3b3   : > { %v2687_v35 = vpop.f32.mrf.mxu1 }
 0x3b4   : > { %v2688_v9 = vadd.f32 %v2687_v35, %v2686_v38  ;;  %v2339_v39 = vmax.f32 %v2273_v56, 0.0 }
 0x3b5   : > { %v2689_v23 = vpop.f32.mrf.mxu1 }
 0x3b6   : > { %v2276_v5 = vadd.f32 %v2688_v9, %v3903_v54  ;;  %v2371_v22 = vadd.f32 %v2370_v42, %v2339_v39 }
 0x3b7   : > { %v2690_v21 = vpop.f32.mrf.mxu1 }
 0x3b8   : > { %v2691_v52 = vadd.f32 %v2690_v21, %v2689_v23  ;;  %v2340_v12 = vmax.f32 %v2276_v5, 0.0 }
 0x3b9   : > { %v2692_v48 = vpop.f32.mrf.mxu1 }
 0x3ba   : > { %v2281_v0 = vadd.f32 %v2691_v52, %v3903_v54  ;;  %v2372_v10 = vadd.f32 %v2371_v22, %v2340_v12 }
 0x3bb   : > { %v2693_v6 = vpop.f32.mrf.mxu1 }
 0x3bc   : > { %v2694_v58 = vadd.f32 %v2693_v6, %v2692_v48  ;;  %v2341_v17 = vmax.f32 %v2281_v0, 0.0 }
 0x3bd   : > { %v2695_v8 = vpop.f32.mrf.mxu1 }
 0x3be   : > { %v2284_v38 = vadd.f32 %v2694_v58, %v3903_v54  ;;  %v2373_v14 = vadd.f32 %v2372_v10, %v2341_v17 }
 0x3bf   : > { %v2696_v43 = vpop.f32.mrf.mxu1 }
 0x3c0   : > { %v2697_v19 = vadd.f32 %v2696_v43, %v2695_v8  ;;  %v2342_v36 = vmax.f32 %v2284_v38, 0.0 }
 0x3c1   : > { %v2698_v34 = vpop.f32.mrf.mxu1 }
 0x3c2   : > { %v2289_v35 = vadd.f32 %v2697_v19, %v3903_v54  ;;  %v2374_v50 = vadd.f32 %v2373_v14, %v2342_v36 }
 0x3c3   : > { %v2699_v30 = vpop.f32.mrf.mxu1 }
 0x3c4   : > { %v2700_v41 = vadd.f32 %v2699_v30, %v2698_v34  ;;  %v2343_v25 = vmax.f32 %v2289_v35, 0.0 }
 0x3c5   : > { %v2701_v24 = vpop.f32.mrf.mxu1 }
 0x3c6   : > { %v2292_v23 = vadd.f32 %v2700_v41, %v3903_v54  ;;  %v2375_v2 = vadd.f32 %v2374_v50, %v2343_v25 }
 0x3c7   : > { %v2702_v40 = vpop.f32.mrf.mxu1 }
 0x3c8   : > { %v2703_v32 = vadd.f32 %v2702_v40, %v2701_v24  ;;  %v2344_v55 = vmax.f32 %v2292_v23, 0.0 }
 0x3c9   : > { %v2704_v61 = vpop.f32.mrf.mxu1 }
 0x3ca   : > { %v2297_v21 = vadd.f32 %v2703_v32, %v3903_v54  ;;  %v2376_v33 = vadd.f32 %v2375_v2, %v2344_v55 }
 0x3cb   : > { %v2705_v20 = vpop.f32.mrf.mxu1 }
 0x3cc   : > { %v2706_v13 = vadd.f32 %v2705_v20, %v2704_v61  ;;  %v2345_v3 = vmax.f32 %v2297_v21, 0.0 }
 0x3cd   : > { %v2707_v18 = vpop.f32.mrf.mxu1 }
 0x3ce   : > { %v2300_v48 = vadd.f32 %v2706_v13, %v3903_v54  ;;  %v2377_v16 = vadd.f32 %v2376_v33, %v2345_v3 }
 0x3cf   : > { %v2708_v44 = vpop.f32.mrf.mxu1 }
 0x3d0   : > { %v2709_v47 = vadd.f32 %v2708_v44, %v2707_v18  ;;  %v2346_v11 = vmax.f32 %v2300_v48, 0.0 }
 0x3d1   : > { %v2710_v59 = vpop.f32.mrf.mxu1 }
 0x3d2   : > { %v2305_v31 = vadd.f32 %v2709_v47, %v3903_v54  ;;  %v2378_v43 = vadd.f32 %v2377_v16, %v2346_v11 }
 0x3d3   : > { %v2711_v37 = vpop.f32.mrf.mxu1 }
 0x3d4   : > { %v2712_v6 = vadd.f32 %v2711_v37, %v2710_v59  ;;  %v2347_v51 = vmax.f32 %v2305_v31, 0.0 }
 0x3d5   : > { %v2713_v63 = vpop.f32.mrf.mxu1 }
 0x3d6   : > { %v2308_v27 = vadd.f32 %v2712_v6, %v3903_v54  ;;  %v2379_v7 = vadd.f32 %v2378_v43, %v2347_v51 }
 0x3d7   : > { %v2714_v8 = vpop.f32.mrf.mxu1 }
 0x3d8   : > { %v2715_v57 = vadd.f32 %v2714_v8, %v2713_v63  ;;  %v2348_v28 = vmax.f32 %v2308_v27, 0.0 }
 0x3d9   : > { %v2716_v4 = vpop.f32.mrf.mxu1 }
 0x3da   : > { %v2313_v26 = vadd.f32 %v2715_v57, %v3903_v54  ;;  %v2380_v49 = vadd.f32 %v2379_v7, %v2348_v28 }
 0x3db   : > { %v2717_v62 = vpop.f32.mrf.mxu1 }
 0x3dc   : > { %v2349_v34 = vmax.f32 %v2313_v26, 0.0  ;;  %v2718_v45 = vadd.f32 %v2717_v62, %v2716_v4 }
 0x3de   : > { %v2316_v15 = vadd.f32 %v2718_v45, %v3903_v54  ;;  %v2381_v9 = vadd.f32 %v2380_v49, %v2349_v34 }
 0x3e0   : > { %v2350_v30 = vmax.f32 %v2316_v15, 0.0 }
 0x3e2   : > { %v2382_v46 = vadd.f32 %v2381_v9, %v2350_v30 }
 0x3e4   : > { %v2383_v1 = vrot.slane %v2382_v46, 4 }
 0x3e6   : > { %v2384_v56 = vadd.f32 %v2383_v1, %v2382_v46 }
 0x3e8   : > { %v2385_v52 = vrot.slane %v2384_v56, 2 }
 0x3ea   : > { %v2386_v24 = vadd.f32 %v2385_v52, %v2384_v56 }
 0x3ec   : > { %v2387_v53 = vrot.slane %v2386_v24, 1 }
 0x3ee   : > { %v2388_v5 = vadd.f32 %v2387_v53, %v2386_v24 }
 0x3f0   : > { %v2389_v58 = vadd.f32 %v2388_v5, %v2351_v29 }
 0x3f2   : > { %2390 = vst [vmem:[#allocation2] sm:$0x1] %v2389_v58 }
 0x3f9   : > { %v2394_v54 = vld [vmem:[#allocation2] sm:$0x1] }
 0x3fa   : > { %2395 = vst [vmem:[%s403_s28] sm:$0x1] %v2394_v54 }
 0x3fb   : > { %2959 = shalt.err (!%p2956_p3)
}
 0x3fc   : > { %s2960_s12 = scalar_lea.hbm %s3953_s24, 16  ;;  %s2964_s30 = scalar_lea.hbm %s4003_s10, 32 }
 0x3fd   : > { %p2961_p5 = scmp.ne.s32.totalorder %s3953_s24, %s2960_s12  ;;  %p2965_p9 = scmp.lt.s32.totalorder %s3953_s24, %s4003_s10 }
 0x3fe   : > { %p2966_p12 = scmp.lt.s32.totalorder %s2964_s30, %s2960_s12 }
 0x3ff   : > { %p2962_p6 = pnand %p2961_p5, %p3129_p4 }
 0x400   : > { %p2967_p10 = por %p2966_p12, %p2965_p9 }
 0x401   : > { %p2963_p7 = pneg %p2962_p6 }
 0x403   : > { %p2968_p11 = pnand %p2967_p10, %p2963_p7 }
 0x405   : > { %2971 = shalt.err (!%p2968_p11)
}
 0x406   : > { %2739 = dma.vmem_to_hbm [thread:$0]  (%p3129_p4), %s2411_s19, 16, %s3953_s24, %s2397_s29  }
 0x407 PF: > { %p2751_p13 = scmp.ge.s32.totalorder %s3026_s18, 2  ;;  %s2422_s0 = sand.u32 1, %s3006_s13  }
 0x408   : > { %s2423_s11 = scalar_lea.sflag [#allocation5], %s2422_s0 }
 0x409   : > { %p2746_p0 = pnand %p2751_p13, %p3136_p8 }
 0x40b   : > { %p2747_p1 = pneg %p2746_p0 }
 0x40d   : > { %3001 = dma.done.wait (%p2747_p1), %s2423_s11, 16  }
 0x40e   : > { %3003 = vsyncadd (%p2747_p1), %s2423_s11, 4294967280  ;;  %s24_s18 = sadd.s32 1, %s3026_s18   ;;  %s4010_s13 = smov %s3010_s14 }
 0x40f   : > { %p21_p2 = scmp.ge.s32.totalorder %s24_s18, 4   ;;  %s4011_s14 = smov %s3014_s15 }
 0x410   : > { %s4012_s15 = smov %s3142_s26  ;;  %s4013_s16 = smov %s3022_s17 }
 0x411   : > { %s4014_s17 = smov %s4016_s21  ;;  %23 = sbr.rel (!%p21_p2) target bundleno = 7 (0x7), region = 108 }
 0x416   :  { %2427 = vsyncpa [#allocation4], 1 }
 0x417   :  { %2429 = vsyncpa [#allocation4 + $0x1], 1 }
 0x418   :  { %2430 = vsyncpa [#allocation5], 1 }
 0x419   :  { %2432 = vsyncpa [#allocation5 + $0x1], 1 }

// kernel: tpu_custom_call.1
= control target key start
LH: loop header
LB: loop body
LE: loop exit
PB: predicated region body
PF: predicated region fallthrough
CT: control target
= control target key end

     0   :  { %s3993_s0 = inlined_call_operand.vmem [shape: f32[2,256,16], index: 0, kind: input, shape index: {}]   ;;  %s3994_s1 = inlined_call_operand.vmem [shape: bf16[16,256], index: 1, kind: input, shape index: {}]   ;;  %s3995_s2 = inlined_call_operand.vmem [shape: f32[1,256], index: 2, kind: input, shape index: {}]   ;;  %s3996_s3 = inlined_call_operand.vmem [shape: bf16[256,256], index: 3, kind: input, shape index: {}]   ;;  %s3997_s4 = inlined_call_operand.vmem [shape: f32[1,256], index: 4, kind: input, shape index: {}]   ;;  %s3998_s5 = inlined_call_operand.vmem [shape: bf16[256,256], index: 5, kind: input, shape index: {}]   ;;  %s3999_s6 = inlined_call_operand.vmem [shape: f32[1,256], index: 6, kind: input, shape index: {}]   ;;  %s4000_s7 = inlined_call_operand.vmem [shape: f32[1,256], index: 7, kind: input, shape index: {}]   ;;  %s4001_s8 = inlined_call_operand.hbm [shape: bf16[256,128], index: 8, kind: input, shape index: {}]   ;;  %s4002_s9 = inlined_call_operand.vmem [shape: f32[1,128], index: 9, kind: input, shape index: {}]   ;;  %s4003_s10 = inlined_call_operand.hbm [shape: f32[2,1,128], index: 10, kind: output, shape index: {}]  }
   0x1   :  { %4004 = sst [smem:[#allocation9_spill]] %s3993_s0 }
   0x2   :  { %15 = vsyncpa [#allocation4], 0 }
   0x3   :  { %16 = vsyncpa [#allocation5], 0 }
   0x4   :  { %18 = vsyncpa [#allocation5 + $0x1], 0  ;;  %s3089_s13 = smov 0   ;;  %s3091_s14 = smov 0  }
   0x5   :  { %s3093_s15 = smov 0   ;;  %s3095_s16 = smov 0  }
   0x6   :  { %s3097_s17 = smov 0   ;;  %s3099_s18 = smov 0  }
   0x7 LB: > { %s2495_s19 = sadd.s32 4294967295, %s3026_s18   ;;  %s2496_s20 = sadd.s32 4294967294, %s3026_s18   ;;  %s3026_s18 = sphi %s3099_s18, %s24_s18   ;;  %s3022_s17 = sphi %s3097_s17, %s4014_s17   ;;  %s3018_s16 = sphi %s3095_s16, %s4013_s16   ;;  %s3014_s15 = sphi %s3093_s15, %s4012_s15   ;;  %s3010_s14 = sphi %s3091_s14, %s4011_s14   ;;  %s3006_s13 = sphi %s3089_s13, %s4010_s13  }
   0x8   : > { %s43_s21 = sadd.s32 1, %s3022_s17  ;;  %s271_s22 = sadd.s32 1, %s3014_s15 }
   0x9   : > { %p45_p0 = scmp.ge.s32.totalorder %s43_s21, 2  ;;  %p281_p1 = scmp.ne.s32.totalorder %s3014_s15, %s3010_s14 }
   0xa   : > { %p282_p2 = scmp.eq.s32.totalorder %s2495_s19, 1  ;;  %p287_p3 = scmp.ne.s32.totalorder %s3010_s14, %s3006_s13 }
   0xb   : > { %s4016_s21 = smov (%p45_p0, %s43_s21), 0  ;;  %p288_p5 = scmp.eq.s32.totalorder %s2496_s20, 1 }
   0xc   : > { %p3129_p4 = por %p282_p2, %p281_p1  ;;  %s268_s24 = ssub.s32 %s3022_s17, %s4016_s21 }
   0xd   : > { %p2497_p6 = scmp.ge.s32.totalorder %s3026_s18, 1  ;;  %p269_p7 = scmp.eq.s32.totalorder %s268_s24, 0 }
   0xe   : > { %p3136_p8 = por %p288_p5, %p287_p3  ;;  %p295_p9 = scmp.lt.s32.totalorder %s3026_s18, 3 }
   0xf   : > { %s3142_s26 = scalar_select %p269_p7, %s3014_s15, %s271_s22  }
  0x10   : > { %p3144_p10 = pnand %p2497_p6, %p295_p9  ;;  %p3148_p11 = scmp.eq.s32.totalorder %s2495_s19, 0 }
  0x11   : > { %s3028_s29 = smov [#allocation3]  }
  0x12   : > { %p2741_p12 = pneg %p3144_p10  ;;  %s328_s30 = sshll.u32 %s3028_s29, 4  ;;  %s329_s30 = int_to_ptr.vmem [resolvable:$true] %s328_s30 }
  0x13   : > { %s2931_s11 = scalar_lea.vmem %s329_s30, 2048  ;;  %p2939_p5 = scmp.lt.s32.totalorder %s329_s30, %s329_s30 }
  0x14   : > { %p2742_p13 = pnand %p3148_p11, %p2741_p12  ;;  %p2932_p1 = scmp.ne.s32.totalorder %s329_s30, %s2931_s11 }
  0x15   : > { %p2940_p6 = scmp.lt.s32.totalorder %s2931_s11, %s2931_s11 }
  0x16   : > { %p2922_p0 = pneg %p2742_p13 }
  0x17   : > { %p2941_p7 = por %p2940_p6, %p2939_p5 }
  0x18   : > { %p2934_p2 = pnand %p2932_p1, %p2922_p0 }
  0x1a   : > { %p2935_p3 = pneg %p2934_p2 }
  0x1c   : > { %p2942_p9 = pnand %p2941_p7, %p2935_p3 }
  0x1e   : > { %2945 = shalt.err (!%p2942_p9)
}
  0x1f   : > { %s3029_s12 = smov 64   ;;  %s3030_s19 = smov 4  }
  0x20   : > { %2744 = dma.hbm_to_vmem [thread:$0]  (!%p2742_p13), %s4001_s8, 2048, %s329_s30, [#allocation4], %s3029_s12, %s3029_s12, %s3030_s19  }
  0x21   : > { %362 = sbr.rel (%p3144_p10) target bundleno = 1031 (0x407), region = 60 }
  0x26   : > { %2997 = dma.done.wait (%p3148_p11), [#allocation4], 2048  }
  0x27   : > { %2999 = vsyncadd (%p3148_p11), [#allocation4], 4294965248  ;;  %p406_p12 = scmp.lt.s32.totalorder %s3018_s16, 1  ;;  %v3031_v0 = vmov 0   ;;  %s4009_s0 = sld [smem:[#allocation9_spill]]  ;;  %vm495_vm0 = vcmask 130048  }
  0x28   : > { %576 = vmatprep.mubr.bf16.mxu0 %v3031_v0  ;;  %v2805_v1 = vld [vmem:[%s3994_s1 + $0x4] ss:$8 sps:$4 sm:$0xff]   ;;  %v2807_v2 = vld [vmem:[%s3994_s1] ss:$8 sps:$4 sm:$0xff]   ;;  %v2808_v9 = vld [vmem:[%s3996_s3 + $0x74] ss:$8 sps:$4 sm:$0xff]  }
  0x29   : > { %s407_s24 = scalar_select %p406_p12, %s3018_s16, 1  ;;  %558 = vmatprep.subr.bf16.mxu0 %v2805_v1  ;;  %v2810_v10 = vld [vmem:[%s3996_s3 + $0x70] ss:$8 sps:$4 sm:$0xff]   ;;  %1037 = vmatprep.subr.bf16.mxu1 %v2808_v9  ;;  %v2811_v12 = vld [vmem:[%s3996_s3 + $0x64] ss:$8 sps:$4 sm:$0xff]  }
  0x2a   : > { %559 = vmatpush1.bf16.msra.mxu0 %v2807_v2  ;;  %1038 = vmatpush1.bf16.msra.mxu1 %v2810_v10  ;;  %v2813_v14 = vld [vmem:[%s3996_s3 + $0x60] ss:$8 sps:$4 sm:$0xff]   ;;  %v2814_v15 = vld [vmem:[%s3996_s3 + $0x54] ss:$8 sps:$4 sm:$0xff]   ;;  %v2816_v17 = vld [vmem:[%s3996_s3 + $0x50] ss:$8 sps:$4 sm:$0xff]  }
  0x2b   : > { %s2606_s29 = sshll.u32 %s407_s24, 8  ;;  %1039 = vmatprep.subr.bf16.mxu1 %v2811_v12  ;;  %v2817_v18 = vld [vmem:[%s3996_s3 + $0x44] ss:$8 sps:$4 sm:$0xff]   ;;  %v2819_v21 = vld [vmem:[%s3996_s3 + $0x40] ss:$8 sps:$4 sm:$0xff]   ;;  %s402_s27 = sand.u32 1, %s3010_s14  }
  0x2c   : > { %v2820_v22 = vld [vmem:[%s3996_s3 + $0x34] ss:$8 sps:$4 sm:$0xff]   ;;  %v2822_v24 = vld [vmem:[%s3996_s3 + $0x30] ss:$8 sps:$4 sm:$0xff]   ;;  %v2823_v25 = vld [vmem:[%s3996_s3 + $0x24] ss:$8 sps:$4 sm:$0xff]  }
  0x2d   : > { %s3171_s30 = scalar_lea.vmem %s4009_s0, %s2606_s29  ;;  %v2825_v28 = vld [vmem:[%s3996_s3 + $0x20] ss:$8 sps:$4 sm:$0xff]   ;;  %v2826_v29 = vld [vmem:[%s3996_s3 + $0x14] ss:$8 sps:$4 sm:$0xff]   ;;  %v2828_v30 = vld [vmem:[%s3996_s3 + $0x10] ss:$8 sps:$4 sm:$0xff]  }
  0x2e   : > { %v423_v3 = vld [vmem:[%s3171_s30] sm:$0xff]  ;;  %v424_v4 = vld [vmem:[%s3171_s30 + $0x8] sm:$0xff]  ;;  %v425_v6 = vld [vmem:[%s3171_s30 + $0x10] sm:$0xff]  ;;  %1040 = vmatpush1.bf16.msra.mxu1 %v2813_v14  ;;  %s2603_s12 = sshll.u32 %s3018_s16, 4  ;;  %s403_s28 = scalar_lea.vmem [#allocation6], %s402_s27 }
  0x2f   : > { %v455_v5 = vpack.c.bf16 %v424_v4, %v423_v3  ;;  %v426_v7 = vld [vmem:[%s3171_s30 + $0x18] sm:$0xff]  ;;  %v427_v11 = vld [vmem:[%s3171_s30 + $0x20] sm:$0xff]  ;;  %v428_v13 = vld [vmem:[%s3171_s30 + $0x28] sm:$0xff]  ;;  %1041 = vmatprep.subr.bf16.mxu1 %v2814_v15  ;;  %s2410_s19 = sshll.u32 %s403_s28, 4  ;;  %s3953_s24 = scalar_lea.hbm %s4003_s10, %s2603_s12  ;;  %s2411_s19 = int_to_ptr.vmem [resolvable:$true] %s2410_s19 }
  0x30   : > { %v456_v8 = vpack.c.bf16 %v426_v7, %v425_v6  ;;  %v457_v16 = vpack.c.bf16 %v428_v13, %v427_v11  ;;  %v429_v19 = vld [vmem:[%s3171_s30 + $0x30] sm:$0xff]  ;;  %v430_v20 = vld [vmem:[%s3171_s30 + $0x38] sm:$0xff]  ;;  %v431_v26 = vld [vmem:[%s3171_s30 + $0x40] sm:$0xff]  ;;  %s2397_s29 = scalar_lea.sflag [#allocation5], %s402_s27  ;;  %s2946_s11 = scalar_lea.vmem %s2411_s19, 16 }
  0x31   : > { %2506 = vmatmul.mubr.msk.bf16.vlgmr.msra.gmra.mxu0 %vm495_vm0, %v455_v5  ;;  %v458_v23 = vpack.c.bf16 %v430_v20, %v429_v19  ;;  %v432_v27 = vld [vmem:[%s3171_s30 + $0x48] sm:$0xff]  ;;  %v433_v33 = vld [vmem:[%s3171_s30 + $0x50] sm:$0xff]  ;;  %v434_v34 = vld [vmem:[%s3171_s30 + $0x58] sm:$0xff]  ;;  %p2947_p10 = scmp.ne.s32.totalorder %s2411_s19, %s2946_s11  ;;  %s3033_s20 = smov [#allocation6]  }
  0x32   : > { %586 = vmatprep.mubr.bf16.mxu0 %v3031_v0  ;;  %1042 = vmatpush1.bf16.msra.mxu1 %v2816_v17  ;;  %v459_v31 = vpack.c.bf16 %v432_v27, %v431_v26  ;;  %v2829_v32 = vld [vmem:[%s3996_s3 + $0x4] ss:$8 sps:$4 sm:$0xff]   ;;  %v2831_v35 = vld [vmem:[%s3996_s3] ss:$8 sps:$4 sm:$0xff]   ;;  %v2832_v36 = vld [vmem:[%s3996_s3 + $0xf4] ss:$8 sps:$4 sm:$0xff]   ;;  %v460_v38 = vpack.c.bf16 %v434_v34, %v433_v33  ;;  %v475_v27 = vlaneseq }
  0x33   : > { %1043 = vmatprep.subr.bf16.mxu1 %v2817_v18  ;;  %v2834_v37 = vld [vmem:[%s3996_s3 + $0xf0] ss:$8 sps:$4 sm:$0xff]   ;;  %v2835_v39 = vld [vmem:[%s3996_s3 + $0xe4] ss:$8 sps:$4 sm:$0xff]   ;;  %v2837_v42 = vld [vmem:[%s3996_s3 + $0xe0] ss:$8 sps:$4 sm:$0xff]   ;;  %p2948_p11 = pnand %p2947_p10, %p3129_p4 }
  0x34   : > { %v435_v40 = vld [vmem:[%s3171_s30 + $0x60] sm:$0xff]  ;;  %v436_v41 = vld [vmem:[%s3171_s30 + $0x68] sm:$0xff]  ;;  %v2838_v43 = vld [vmem:[%s3996_s3 + $0xd4] ss:$8 sps:$4 sm:$0xff]   ;;  %s2950_s0 = sshll.u32 %s3033_s20, 4  ;;  %s2951_s0 = int_to_ptr.vmem [resolvable:$false] %s2950_s0 }
  0x35   : > { %v2840_v44 = vld [vmem:[%s3996_s3 + $0xd0] ss:$8 sps:$4 sm:$0xff]   ;;  %v461_v45 = vpack.c.bf16 %v436_v41, %v435_v40  ;;  %v2841_v46 = vld [vmem:[%s3996_s3 + $0xc4] ss:$8 sps:$4 sm:$0xff]   ;;  %v2843_v49 = vld [vmem:[%s3996_s3 + $0xc0] ss:$8 sps:$4 sm:$0xff]   ;;  %p2949_p13 = pneg %p2948_p11  ;;  %p2953_p0 = scmp.lt.s32.totalorder %s2411_s19, %s2951_s0 }
  0x36   : > { %1044 = vmatpush1.bf16.msra.mxu1 %v2819_v21  ;;  %v437_v47 = vld [vmem:[%s3171_s30 + $0x70] sm:$0xff]  ;;  %v438_v48 = vld [vmem:[%s3171_s30 + $0x78] sm:$0xff]  ;;  %v439_v53 = vld [vmem:[%s3171_s30 + $0x80] sm:$0xff]  ;;  %s2952_s16 = scalar_lea.vmem %s2951_s0, 32 }
  0x37   : > { %1045 = vmatprep.subr.bf16.mxu1 %v2820_v22  ;;  %v2844_v50 = vld [vmem:[%s3996_s3 + $0xb4] ss:$8 sps:$4 sm:$0xff]   ;;  %v462_v51 = vpack.c.bf16 %v438_v48, %v437_v47  ;;  %v2846_v52 = vld [vmem:[%s3996_s3 + $0xb0] ss:$8 sps:$4 sm:$0xff]   ;;  %v440_v54 = vld [vmem:[%s3171_s30 + $0x88] sm:$0xff]  ;;  %p2954_p1 = scmp.lt.s32.totalorder %s2952_s16, %s2946_s11 }
  0x38   : > { %v463_v55 = vpack.c.bf16 %v440_v54, %v439_v53  ;;  %v2847_v56 = vld [vmem:[%s3996_s3 + $0xa4] ss:$8 sps:$4 sm:$0xff]   ;;  %v441_v57 = vld [vmem:[%s3171_s30 + $0x90] sm:$0xff]  ;;  %v442_v58 = vld [vmem:[%s3171_s30 + $0x98] sm:$0xff] }
  0x39   : > { %2507 = vmatmul.mubr.msk.bf16.gmra.mxu0 %vm495_vm0, %v456_v8  ;;  %v2849_v59 = vld [vmem:[%s3996_s3 + $0xa0] ss:$8 sps:$4 sm:$0xff]   ;;  %v464_v60 = vpack.c.bf16 %v442_v58, %v441_v57  ;;  %v2850_v61 = vld [vmem:[%s3996_s3 + $0x94] ss:$8 sps:$4 sm:$0xff]   ;;  %v2852_v62 = vld [vmem:[%s3996_s3 + $0x90] ss:$8 sps:$4 sm:$0xff]   ;;  %p2955_p2 = por %p2954_p1, %p2953_p0 }
  0x3a   : > { %596 = vmatprep.mubr.bf16.mxu0 %v3031_v0  ;;  %1046 = vmatpush1.bf16.msra.mxu1 %v2822_v24  ;;  %v2853_v63 = vld [vmem:[%s3996_s3 + $0x84] ss:$8 sps:$4 sm:$0xff]   ;;  %v2855_v3 = vld [vmem:[%s3996_s3 + $0x80] ss:$8 sps:$4 sm:$0xff]   ;;  %v445_v5 = vld [vmem:[%s3171_s30 + $0xb0] sm:$0xff] }
  0x3b   : > { %1047 = vmatprep.subr.bf16.mxu1 %v2823_v25  ;;  %v443_v1 = vld [vmem:[%s3171_s30 + $0xa0] sm:$0xff]  ;;  %v444_v2 = vld [vmem:[%s3171_s30 + $0xa8] sm:$0xff]  ;;  %v446_v6 = vld [vmem:[%s3171_s30 + $0xb8] sm:$0xff]  ;;  %p2956_p3 = pnand %p2955_p2, %p2949_p13 }
  0x3c   : > { %v465_v4 = vpack.c.bf16 %v444_v2, %v443_v1  ;;  %v466_v7 = vpack.c.bf16 %v446_v6, %v445_v5  ;;  %v447_v8 = vld [vmem:[%s3171_s30 + $0xc0] sm:$0xff]  ;;  %v448_v9 = vld [vmem:[%s3171_s30 + $0xc8] sm:$0xff]  ;;  %v449_v11 = vld [vmem:[%s3171_s30 + $0xd0] sm:$0xff] }
  0x3d   : > { %v467_v10 = vpack.c.bf16 %v448_v9, %v447_v8  ;;  %v450_v12 = vld [vmem:[%s3171_s30 + $0xd8] sm:$0xff]  ;;  %v451_v14 = vld [vmem:[%s3171_s30 + $0xe0] sm:$0xff]  ;;  %v452_v15 = vld [vmem:[%s3171_s30 + $0xe8] sm:$0xff] }
  0x3e   : > { %1048 = vmatpush1.bf16.msra.mxu1 %v2825_v28  ;;  %v468_v13 = vpack.c.bf16 %v450_v12, %v449_v11  ;;  %v453_v17 = vld [vmem:[%s3171_s30 + $0xf0] sm:$0xff]  ;;  %v454_v18 = vld [vmem:[%s3171_s30 + $0xf8] sm:$0xff]  ;;  %v2859_v22 = vld [vmem:[%s3998_s5 + $0x60] ss:$8 sps:$4 sm:$0xff]   ;;  %v476_v28 = vshrl.u32 %v475_v27, 7 }
  0x3f   : > { %1049 = vmatprep.subr.bf16.mxu1 %v2826_v29  ;;  %v470_v19 = vpack.c.bf16 %v454_v18, %v453_v17  ;;  %v2856_v20 = vld [vmem:[%s3998_s5 + $0x70] ss:$8 sps:$4 sm:$0xff]   ;;  %v2858_v21 = vld [vmem:[%s3998_s5 + $0x74] ss:$8 sps:$4 sm:$0xff]   ;;  %v2865_v25 = vld [vmem:[%s3998_s5 + $0x40] ss:$8 sps:$4 sm:$0xff]  }
  0x40   : > { %1658 = vmatprep.subr.bf16.mxu0 %v2858_v21  ;;  %v2864_v24 = vld [vmem:[%s3998_s5 + $0x54] ss:$8 sps:$4 sm:$0xff]   ;;  %v2867_v26 = vld [vmem:[%s3998_s5 + $0x44] ss:$8 sps:$4 sm:$0xff]   ;;  %v3362_v29 = vsub.s32 1, %v476_v28 }
  0x41   : > { %2508 = vmatmul.mubr.msk.bf16.gmra.mxu0 %vm495_vm0, %v457_v16  ;;  %v469_v16 = vpack.c.bf16 %v452_v15, %v451_v14  ;;  %v473_v33 = vld [vmem:[%s3995_s2] sm:$0x3]  ;;  %v2879_v48 = vld [vmem:[%s3998_s5 + $0x4] ss:$8 sps:$4 sm:$0xff]   ;;  %v2882_v57 = vld [vmem:[%s3998_s5 + $0xf4] ss:$8 sps:$4 sm:$0xff]  }
  0x42   : > { %606 = vmatprep.mubr.bf16.mxu0 %v3031_v0  ;;  %1050 = vmatpush1.bf16.msra.mxu1 %v2828_v30  ;;  %v2868_v30 = vld [vmem:[%s3998_s5 + $0x30] ss:$8 sps:$4 sm:$0xff]   ;;  %v2888_v12 = vld [vmem:[%s3998_s5 + $0xd4] ss:$8 sps:$4 sm:$0xff]   ;;  %v2891_v21 = vld [vmem:[%s3998_s5 + $0xc4] ss:$8 sps:$4 sm:$0xff]  }
  0x43   : > { %1051 = vmatprep.subr.bf16.mxu1 %v2829_v32  ;;  %1659 = vmatpush1.bf16.msra.mxu0 %v2856_v20  ;;  %v3370_v32 = vsub.s32 0, %v476_v28  ;;  %v2880_v1 = vld [vmem:[%s3998_s5 + $0xf0] ss:$8 sps:$4 sm:$0xff]   ;;  %v2889_v27 = vld [vmem:[%s3998_s5 + $0xc0] ss:$8 sps:$4 sm:$0xff]  }
  0x46   : > { %1052 = vmatpush1.bf16.msra.mxu1 %v2831_v35  ;;  %v3376_v35 = vrot.slane %v473_v33, %v3362_v29 }
  0x47   : > { %1053 = vmatprep.subr.bf16.mxu1 %v2832_v36  ;;  %v3379_v36 = vrot.slane %v473_v33, %v3370_v32 }
  0x49   : > { %2509 = vmatmul.mubr.msk.bf16.gmra.mxu0 %vm495_vm0, %v458_v23  ;;  %v2862_v23 = vld [vmem:[%s3998_s5 + $0x50] ss:$8 sps:$4 sm:$0xff]  }
  0x4a   : > { %616 = vmatprep.mubr.bf16.mxu0 %v3031_v0  ;;  %1054 = vmatpush2.bf16.msra.mxu1 %v2834_v37 }
  0x4b   : > { %1055 = vmatprep.subr.bf16.mxu1 %v2835_v39  ;;  %v2873_v39 = vld [vmem:[%s3998_s5 + $0x24] ss:$8 sps:$4 sm:$0xff]  }
  0x4e   : > { %1056 = vmatpush2.bf16.msra.mxu1 %v2837_v42 }
  0x4f   : > { %1057 = vmatprep.subr.bf16.mxu1 %v2838_v43 }
  0x51   : > { %2510 = vmatmul.mubr.msk.bf16.gmra.mxu0 %vm495_vm0, %v459_v31  ;;  %v2870_v31 = vld [vmem:[%s3998_s5 + $0x34] ss:$8 sps:$4 sm:$0xff]  }
  0x52   : > { %626 = vmatprep.mubr.bf16.mxu0 %v3031_v0  ;;  %1058 = vmatpush2.bf16.msra.mxu1 %v2840_v44 }
  0x53   : > { %1059 = vmatprep.subr.bf16.mxu1 %v2841_v46  ;;  %v2876_v46 = vld [vmem:[%s3998_s5 + $0x14] ss:$8 sps:$4 sm:$0xff]  }
  0x56   : > { %1060 = vmatpush2.bf16.msra.mxu1 %v2843_v49 }
  0x57   : > { %1061 = vmatprep.subr.bf16.mxu1 %v2844_v50 }
  0x59   : > { %2511 = vmatmul.mubr.msk.bf16.gmra.mxu0 %vm495_vm0, %v460_v38  ;;  %v2871_v38 = vld [vmem:[%s3998_s5 + $0x20] ss:$8 sps:$4 sm:$0xff]  }
  0x5a   : > { %636 = vmatprep.mubr.bf16.mxu0 %v3031_v0  ;;  %1062 = vmatpush2.bf16.msra.mxu1 %v2846_v52 }
  0x5b   : > { %1063 = vmatprep.subr.bf16.mxu1 %v2847_v56 }
  0x5e   : > { %1064 = vmatpush2.bf16.msra.mxu1 %v2849_v59 }
  0x5f   : > { %1065 = vmatprep.subr.bf16.mxu1 %v2850_v61 }
  0x61   : > { %2512 = vmatmul.mubr.msk.bf16.gmra.mxu0 %vm495_vm0, %v461_v45  ;;  %v2874_v45 = vld [vmem:[%s3998_s5 + $0x10] ss:$8 sps:$4 sm:$0xff]  }
  0x62   : > { %646 = vmatprep.mubr.bf16.mxu0 %v3031_v0  ;;  %1066 = vmatpush2.bf16.msra.mxu1 %v2852_v62 }
  0x63   : > { %1067 = vmatprep.subr.bf16.mxu1 %v2853_v63 }
  0x66   : > { %1068 = vmatpush2.bf16.msra.mxu1 %v2855_v3  ;;  %v2885_v3 = vld [vmem:[%s3998_s5 + $0xe4] ss:$8 sps:$4 sm:$0xff]  }
  0x69   : > { %2513 = vmatmul.mubr.msk.bf16.gmra.mxu0 %vm495_vm0, %v462_v51 }
  0x6a   : > { %656 = vmatprep.mubr.bf16.mxu0 %v3031_v0 }
  0x71   : > { %2514 = vmatmul.mubr.msk.bf16.gmra.mxu0 %vm495_vm0, %v463_v55  ;;  %v2877_v55 = vld [vmem:[%s3998_s5] ss:$8 sps:$4 sm:$0xff]  }
  0x72   : > { %666 = vmatprep.mubr.bf16.mxu0 %v3031_v0 }
  0x79   : > { %2515 = vmatmul.mubr.msk.bf16.gmra.mxu0 %vm495_vm0, %v464_v60 }
  0x7a   : > { %676 = vmatprep.mubr.bf16.mxu0 %v3031_v0 }
  0x81   : > { %2516 = vmatmul.mubr.msk.bf16.gmra.mxu0 %vm495_vm0, %v465_v4 }
  0x82   : > { %686 = vmatprep.mubr.bf16.mxu0 %v3031_v0 }
  0x89   : > { %2517 = vmatmul.mubr.msk.bf16.gmra.mxu0 %vm495_vm0, %v466_v7 }
  0x8a   : > { %696 = vmatprep.mubr.bf16.mxu0 %v3031_v0 }
  0x91   : > { %2518 = vmatmul.mubr.msk.bf16.gmra.mxu0 %vm495_vm0, %v467_v10  ;;  %v2883_v10 = vld [vmem:[%s3998_s5 + $0xe0] ss:$8 sps:$4 sm:$0xff]  }
  0x92   : > { %706 = vmatprep.mubr.bf16.mxu0 %v3031_v0 }
  0x99   : > { %2519 = vmatmul.mubr.msk.bf16.gmra.mxu0 %vm495_vm0, %v468_v13 }
  0x9a   : > { %716 = vmatprep.mubr.bf16.mxu0 %v3031_v0 }
  0xa1   : > { %2520 = vmatmul.mubr.msk.bf16.gmra.mxu0 %vm495_vm0, %v469_v16 }
  0xa2   : > { %726 = vmatprep.mubr.bf16.mxu0 %v3031_v0  ;;  %v2861_v0 = vld [vmem:[%s3998_s5 + $0x64] ss:$8 sps:$4 sm:$0xff]  }
  0xa3   : > { %1660 = vmatprep.subr.bf16.mxu0 %v2861_v0 }
  0xa4   : > { %1661 = vmatpush1.bf16.msra.mxu0 %v2859_v22 }
  0xa5   : > { %1662 = vmatprep.subr.bf16.mxu0 %v2864_v24 }
  0xa8   : > { %1663 = vmatpush1.bf16.msra.mxu0 %v2862_v23 }
  0xa9   : > { %2521 = vmatmul.mubr.msk.bf16.gmra.mxu0 %vm495_vm0, %v470_v19  ;;  %1664 = vmatprep.subr.bf16.mxu0 %v2867_v26  ;;  %v2886_v19 = vld [vmem:[%s3998_s5 + $0xd0] ss:$8 sps:$4 sm:$0xff]  }
  0xac   : > { %1665 = vmatpush1.bf16.msra.mxu0 %v2865_v25 }
  0xad   : > { %1666 = vmatprep.subr.bf16.mxu0 %v2870_v31 }
  0xb0   : > { %1667 = vmatpush1.bf16.msra.mxu0 %v2868_v30  ;;  %v2894_v30 = vld [vmem:[%s3998_s5 + $0xb4] ss:$8 sps:$4 sm:$0xff]  }
  0xb1   : > { %1668 = vmatprep.subr.bf16.mxu0 %v2873_v39 }
  0xb4   : > { %1669 = vmatpush1.bf16.msra.mxu0 %v2871_v38 }
  0xb5   : > { %1670 = vmatprep.subr.bf16.mxu0 %v2876_v46 }
  0xb8   : > { %1671 = vmatpush1.bf16.msra.mxu0 %v2874_v45 }
  0xb9   : > { %1672 = vmatprep.subr.bf16.mxu0 %v2879_v48 }
  0xbc   : > { %1673 = vmatpush1.bf16.msra.mxu0 %v2877_v55 }
  0xbd   : > { %1674 = vmatprep.subr.bf16.mxu0 %v2882_v57 }
  0xc0   : > { %1675 = vmatpush2.bf16.msra.mxu0 %v2880_v1 }
  0xc1   : > { %1676 = vmatprep.subr.bf16.mxu0 %v2885_v3 }
  0xc4   : > { %1677 = vmatpush2.bf16.msra.mxu0 %v2883_v10 }
  0xc5   : > { %1678 = vmatprep.subr.bf16.mxu0 %v2888_v12 }
  0xc8   : > { %1679 = vmatpush2.bf16.msra.mxu0 %v2886_v19 }
  0xc9   : > { %1680 = vmatprep.subr.bf16.mxu0 %v2891_v21 }
  0xcc   : > { %1681 = vmatpush2.bf16.msra.mxu0 %v2889_v27 }
  0xcd   : > { %1682 = vmatprep.subr.bf16.mxu0 %v2894_v30 }
  0xf1   : > { %v578_v34 = vpop.f32.mrf.mxu0 }
  0xf2   : > { %v579_v43 = vadd.f32 %v578_v34, %v3379_v36 }
  0xf3   : > { %v580_v37 = vpop.f32.mrf.mxu0 }
  0xf4   : > { %v581_v41 = vadd.f32 %v580_v37, %v3376_v35  ;;  %v737_v53 = vmax.f32 %v579_v43, 0.0 }
  0xf5   : > { %v582_v40 = vpop.f32.mrf.mxu0 }
  0xf6   : > { %v583_v42 = vadd.f32 %v582_v40, %v3379_v36  ;;  %v738_v51 = vmax.f32 %v581_v41, 0.0  ;;  %v2892_v40 = vld [vmem:[%s3998_s5 + $0xb0] ss:$8 sps:$4 sm:$0xff]  }
  0xf7   : > { %v584_v44 = vpop.f32.mrf.mxu0  ;;  %1683 = vmatpush2.bf16.msra.mxu0 %v2892_v40 }
  0xf8   : > { %v585_v47 = vadd.f32 %v584_v44, %v3376_v35  ;;  %v739_v49 = vmax.f32 %v583_v42, 0.0  ;;  %v2897_v42 = vld [vmem:[%s3998_s5 + $0xa4] ss:$8 sps:$4 sm:$0xff]  }
  0xf9   : > { %v588_v50 = vpop.f32.mrf.mxu0  ;;  %1684 = vmatprep.subr.bf16.mxu0 %v2897_v42 }
  0xfa   : > { %v740_v52 = vmax.f32 %v585_v47, 0.0  ;;  %v3408_v58 = vpack.c.bf16 %v739_v49, %v737_v53  ;;  %v589_v62 = vadd.f32 %v588_v50, %v3379_v36  ;;  %v2895_v49 = vld [vmem:[%s3998_s5 + $0xa0] ss:$8 sps:$4 sm:$0xff]  }
  0xfb   : > { %v590_v54 = vpop.f32.mrf.mxu0  ;;  %1685 = vmatpush2.bf16.msra.mxu0 %v2895_v49 }
  0xfc   : > { %v3403_v56 = vpack.c.bf16 %v740_v52, %v738_v51  ;;  %v591_v60 = vadd.f32 %v590_v54, %v3376_v35  ;;  %v741_v8 = vmax.f32 %v589_v62, 0.0  ;;  %v2900_v51 = vld [vmem:[%s3998_s5 + $0x94] ss:$8 sps:$4 sm:$0xff]  }
  0xfd   : > { %v592_v59 = vpop.f32.mrf.mxu0  ;;  %1686 = vmatprep.subr.bf16.mxu0 %v2900_v51 }
  0xfe   : > { %v593_v61 = vadd.f32 %v592_v59, %v3379_v36  ;;  %1069 = vmatprep.mubr.bf16.mxu1 %v3403_v56  ;;  %v742_v6 = vmax.f32 %v591_v60, 0.0  ;;  %v2898_v60 = vld [vmem:[%s3998_s5 + $0x90] ss:$8 sps:$4 sm:$0xff]  }
  0xff   : > { %v594_v63 = vpop.f32.mrf.mxu0  ;;  %1070 = vmatmul.mubr.bf16.vlgmr.msra.gmra.mxu1 %v3408_v58  ;;  %1687 = vmatpush2.bf16.msra.mxu0 %v2898_v60 }
 0x100   : > { %v595_v2 = vadd.f32 %v594_v63, %v3376_v35  ;;  %v743_v4 = vmax.f32 %v593_v61, 0.0 }
 0x101   : > { %v598_v5 = vpop.f32.mrf.mxu0 }
 0x102   : > { %v744_v7 = vmax.f32 %v595_v2, 0.0  ;;  %v3430_v13 = vpack.c.bf16 %v743_v4, %v741_v8  ;;  %v599_v17 = vadd.f32 %v598_v5, %v3379_v36 }
 0x103   : > { %v600_v9 = vpop.f32.mrf.mxu0 }
 0x104   : > { %v3425_v11 = vpack.c.bf16 %v744_v7, %v742_v6  ;;  %v601_v15 = vadd.f32 %v600_v9, %v3376_v35  ;;  %v745_v25 = vmax.f32 %v599_v17, 0.0 }
 0x105   : > { %v602_v14 = vpop.f32.mrf.mxu0 }
 0x106   : > { %v603_v16 = vadd.f32 %v602_v14, %v3379_v36  ;;  %1079 = vmatprep.mubr.bf16.mxu1 %v3425_v11  ;;  %v746_v23 = vmax.f32 %v601_v15, 0.0 }
 0x107   : > { %v604_v18 = vpop.f32.mrf.mxu0  ;;  %1080 = vmatmul.mubr.bf16.gmra.mxu1 %v3430_v13 }
 0x108   : > { %v605_v20 = vadd.f32 %v604_v18, %v3376_v35  ;;  %v747_v22 = vmax.f32 %v603_v16, 0.0 }
 0x109   : > { %v608_v0 = vpop.f32.mrf.mxu0 }
 0x10a   : > { %v748_v24 = vmax.f32 %v605_v20, 0.0  ;;  %v3452_v31 = vpack.c.bf16 %v747_v22, %v745_v25  ;;  %v609_v38 = vadd.f32 %v608_v0, %v3379_v36 }
 0x10b   : > { %v610_v26 = vpop.f32.mrf.mxu0 }
 0x10c   : > { %v3447_v28 = vpack.c.bf16 %v748_v24, %v746_v23  ;;  %v611_v34 = vadd.f32 %v610_v26, %v3376_v35  ;;  %v749_v47 = vmax.f32 %v609_v38, 0.0 }
 0x10d   : > { %v612_v33 = vpop.f32.mrf.mxu0 }
 0x10e   : > { %v613_v37 = vadd.f32 %v612_v33, %v3379_v36  ;;  %1089 = vmatprep.mubr.bf16.mxu1 %v3447_v28  ;;  %v750_v45 = vmax.f32 %v611_v34, 0.0 }
 0x10f   : > { %v614_v39 = vpop.f32.mrf.mxu0  ;;  %1090 = vmatmul.mubr.bf16.gmra.mxu1 %v3452_v31 }
 0x110   : > { %v615_v41 = vadd.f32 %v614_v39, %v3376_v35  ;;  %v751_v43 = vmax.f32 %v613_v37, 0.0 }
 0x111   : > { %v618_v44 = vpop.f32.mrf.mxu0 }
 0x112   : > { %v752_v46 = vmax.f32 %v615_v41, 0.0  ;;  %v3474_v52 = vpack.c.bf16 %v751_v43, %v749_v47  ;;  %v619_v57 = vadd.f32 %v618_v44, %v3379_v36 }
 0x113   : > { %v620_v48 = vpop.f32.mrf.mxu0 }
 0x114   : > { %v3469_v50 = vpack.c.bf16 %v752_v46, %v750_v45  ;;  %v621_v54 = vadd.f32 %v620_v48, %v3376_v35  ;;  %v753_v3 = vmax.f32 %v619_v57, 0.0 }
 0x115   : > { %v622_v53 = vpop.f32.mrf.mxu0 }
 0x116   : > { %v623_v55 = vadd.f32 %v622_v53, %v3379_v36  ;;  %1099 = vmatprep.mubr.bf16.mxu1 %v3469_v50  ;;  %v754_v1 = vmax.f32 %v621_v54, 0.0 }
 0x117   : > { %v624_v59 = vpop.f32.mrf.mxu0  ;;  %1100 = vmatmul.mubr.bf16.gmra.mxu1 %v3474_v52 }
 0x118   : > { %v625_v61 = vadd.f32 %v624_v59, %v3376_v35  ;;  %v755_v62 = vmax.f32 %v623_v55, 0.0 }
 0x119   : > { %v628_v63 = vpop.f32.mrf.mxu0 }
 0x11a   : > { %v756_v2 = vmax.f32 %v625_v61, 0.0  ;;  %v3487_v6 = vpack.c.bf16 %v755_v62, %v753_v3  ;;  %v629_v10 = vadd.f32 %v628_v63, %v3379_v36 }
 0x11b   : > { %v630_v4 = vpop.f32.mrf.mxu0 }
 0x11c   : > { %v3485_v5 = vpack.c.bf16 %v756_v2, %v754_v1  ;;  %v631_v8 = vadd.f32 %v630_v4, %v3376_v35  ;;  %v757_v19 = vmax.f32 %v629_v10, 0.0 }
 0x11d   : > { %v632_v7 = vpop.f32.mrf.mxu0 }
 0x11e   : > { %v633_v9 = vadd.f32 %v632_v7, %v3379_v36  ;;  %1109 = vmatprep.mubr.bf16.mxu1 %v3485_v5  ;;  %v758_v17 = vmax.f32 %v631_v8, 0.0 }
 0x11f   : > { %v634_v12 = vpop.f32.mrf.mxu0  ;;  %1110 = vmatmul.mubr.bf16.gmra.mxu1 %v3487_v6 }
 0x120   : > { %v635_v14 = vadd.f32 %v634_v12, %v3376_v35  ;;  %v759_v15 = vmax.f32 %v633_v9, 0.0 }
 0x121   : > { %v638_v16 = vpop.f32.mrf.mxu0 }
 0x122   : > { %v760_v18 = vmax.f32 %v635_v14, 0.0  ;;  %v3497_v22 = vpack.c.bf16 %v759_v15, %v757_v19  ;;  %v639_v25 = vadd.f32 %v638_v16, %v3379_v36 }
 0x123   : > { %v640_v20 = vpop.f32.mrf.mxu0 }
 0x124   : > { %v3495_v21 = vpack.c.bf16 %v760_v18, %v758_v17  ;;  %v641_v23 = vadd.f32 %v640_v20, %v3376_v35  ;;  %v761_v38 = vmax.f32 %v639_v25, 0.0 }
 0x125   : > { %v642_v0 = vpop.f32.mrf.mxu0 }
 0x126   : > { %v643_v24 = vadd.f32 %v642_v0, %v3379_v36  ;;  %1119 = vmatprep.mubr.bf16.mxu1 %v3495_v21  ;;  %v762_v34 = vmax.f32 %v641_v23, 0.0 }
 0x127   : > { %v644_v26 = vpop.f32.mrf.mxu0  ;;  %1120 = vmatmul.mubr.bf16.gmra.mxu1 %v3497_v22 }
 0x128   : > { %v645_v27 = vadd.f32 %v644_v26, %v3376_v35  ;;  %v763_v30 = vmax.f32 %v643_v24, 0.0 }
 0x129   : > { %v648_v33 = vpop.f32.mrf.mxu0 }
 0x12a   : > { %v764_v37 = vmax.f32 %v645_v27, 0.0  ;;  %v3507_v41 = vpack.c.bf16 %v763_v30, %v761_v38  ;;  %v649_v45 = vadd.f32 %v648_v33, %v3379_v36 }
 0x12b   : > { %v650_v39 = vpop.f32.mrf.mxu0 }
 0x12c   : > { %v3505_v40 = vpack.c.bf16 %v764_v37, %v762_v34  ;;  %v651_v43 = vadd.f32 %v650_v39, %v3376_v35  ;;  %v765_v54 = vmax.f32 %v649_v45, 0.0  ;;  %v2901_v45 = vld [vmem:[%s3998_s5 + $0x80] ss:$8 sps:$4 sm:$0xff]  }
 0x12d   : > { %v652_v42 = vpop.f32.mrf.mxu0 }
 0x12e   : > { %v653_v44 = vadd.f32 %v652_v42, %v3379_v36  ;;  %1129 = vmatprep.mubr.bf16.mxu1 %v3505_v40  ;;  %v766_v51 = vmax.f32 %v651_v43, 0.0  ;;  %v2903_v43 = vld [vmem:[%s3998_s5 + $0x84] ss:$8 sps:$4 sm:$0xff]  }
 0x12f   : > { %v654_v46 = vpop.f32.mrf.mxu0  ;;  %1130 = vmatmul.mubr.bf16.gmra.mxu1 %v3507_v41  ;;  %1688 = vmatprep.subr.bf16.mxu0 %v2903_v43 }
 0x130   : > { %v655_v47 = vadd.f32 %v654_v46, %v3376_v35  ;;  %v767_v48 = vmax.f32 %v653_v44, 0.0  ;;  %1689 = vmatpush2.bf16.msra.mxu0 %v2901_v45 }
 0x131   : > { %v658_v49 = vpop.f32.mrf.mxu0 }
 0x132   : > { %v768_v53 = vmax.f32 %v655_v47, 0.0  ;;  %v3517_v59 = vpack.c.bf16 %v767_v48, %v765_v54  ;;  %v659_v63 = vadd.f32 %v658_v49, %v3379_v36 }
 0x133   : > { %v660_v55 = vpop.f32.mrf.mxu0 }
 0x134   : > { %v3515_v57 = vpack.c.bf16 %v768_v53, %v766_v51  ;;  %v661_v61 = vadd.f32 %v660_v55, %v3376_v35  ;;  %v769_v9 = vmax.f32 %v659_v63, 0.0 }
 0x135   : > { %v662_v60 = vpop.f32.mrf.mxu0 }
 0x136   : > { %v663_v62 = vadd.f32 %v662_v60, %v3379_v36  ;;  %1139 = vmatprep.mubr.bf16.mxu1 %v3515_v57  ;;  %v770_v7 = vmax.f32 %v661_v61, 0.0 }
 0x137   : > { %v664_v1 = vpop.f32.mrf.mxu0  ;;  %1140 = vmatmul.mubr.bf16.gmra.mxu1 %v3517_v59 }
 0x138   : > { %v665_v2 = vadd.f32 %v664_v1, %v3376_v35  ;;  %v771_v3 = vmax.f32 %v663_v62, 0.0 }
 0x139   : > { %v668_v4 = vpop.f32.mrf.mxu0 }
 0x13a   : > { %v772_v8 = vmax.f32 %v665_v2, 0.0  ;;  %v3527_v14 = vpack.c.bf16 %v771_v3, %v769_v9  ;;  %v669_v18 = vadd.f32 %v668_v4, %v3379_v36 }
 0x13b   : > { %v670_v10 = vpop.f32.mrf.mxu0 }
 0x13c   : > { %v3525_v12 = vpack.c.bf16 %v772_v8, %v770_v7  ;;  %v671_v16 = vadd.f32 %v670_v10, %v3376_v35  ;;  %v773_v26 = vmax.f32 %v669_v18, 0.0 }
 0x13d   : > { %v672_v15 = vpop.f32.mrf.mxu0 }
 0x13e   : > { %v673_v17 = vadd.f32 %v672_v15, %v3379_v36  ;;  %1149 = vmatprep.mubr.bf16.mxu1 %v3525_v12  ;;  %v774_v24 = vmax.f32 %v671_v16, 0.0 }
 0x13f   : > { %v674_v19 = vpop.f32.mrf.mxu0  ;;  %1150 = vmatmul.mubr.bf16.gmra.mxu1 %v3527_v14 }
 0x140   : > { %v675_v20 = vadd.f32 %v674_v19, %v3376_v35  ;;  %v775_v0 = vmax.f32 %v673_v17, 0.0 }
 0x141   : > { %v678_v23 = vpop.f32.mrf.mxu0 }
 0x142   : > { %v776_v25 = vmax.f32 %v675_v20, 0.0  ;;  %v3537_v33 = vpack.c.bf16 %v775_v0, %v773_v26  ;;  %v679_v39 = vadd.f32 %v678_v23, %v3379_v36 }
 0x143   : > { %v680_v27 = vpop.f32.mrf.mxu0 }
 0x144   : > { %v3535_v30 = vpack.c.bf16 %v776_v25, %v774_v24  ;;  %v681_v37 = vadd.f32 %v680_v27, %v3376_v35  ;;  %v777_v51 = vmax.f32 %v679_v39, 0.0 }
 0x145   : > { %v682_v34 = vpop.f32.mrf.mxu0 }
 0x146   : > { %v683_v38 = vadd.f32 %v682_v34, %v3379_v36  ;;  %1159 = vmatprep.mubr.bf16.mxu1 %v3535_v30  ;;  %v778_v48 = vmax.f32 %v681_v37, 0.0 }
 0x147   : > { %v684_v42 = vpop.f32.mrf.mxu0  ;;  %1160 = vmatmul.mubr.bf16.gmra.mxu1 %v3537_v33 }
 0x148   : > { %v685_v44 = vadd.f32 %v684_v42, %v3376_v35  ;;  %v779_v46 = vmax.f32 %v683_v38, 0.0 }
 0x149   : > { %v688_v47 = vpop.f32.mrf.mxu0 }
 0x14a   : > { %v780_v49 = vmax.f32 %v685_v44, 0.0  ;;  %v3553_v55 = vpack.c.bf16 %v779_v46, %v777_v51  ;;  %v689_v63 = vadd.f32 %v688_v47, %v3379_v36 }
 0x14b   : > { %v690_v53 = vpop.f32.mrf.mxu0 }
 0x14c   : > { %v3551_v54 = vpack.c.bf16 %v780_v49, %v778_v48  ;;  %v691_v61 = vadd.f32 %v690_v53, %v3376_v35  ;;  %v781_v9 = vmax.f32 %v689_v63, 0.0 }
 0x14d   : > { %v692_v60 = vpop.f32.mrf.mxu0 }
 0x14e   : > { %v693_v62 = vadd.f32 %v692_v60, %v3379_v36  ;;  %1169 = vmatprep.mubr.bf16.mxu1 %v3551_v54  ;;  %v782_v7 = vmax.f32 %v691_v61, 0.0 }
 0x14f   : > { %v694_v1 = vpop.f32.mrf.mxu0  ;;  %1170 = vmatmul.mubr.bf16.gmra.mxu1 %v3553_v55 }
 0x150   : > { %v695_v2 = vadd.f32 %v694_v1, %v3376_v35  ;;  %v783_v3 = vmax.f32 %v693_v62, 0.0 }
 0x151   : > { %v698_v4 = vpop.f32.mrf.mxu0 }
 0x152   : > { %v784_v8 = vmax.f32 %v695_v2, 0.0  ;;  %v3563_v16 = vpack.c.bf16 %v783_v3, %v781_v9  ;;  %v699_v20 = vadd.f32 %v698_v4, %v3379_v36 }
 0x153   : > { %v700_v10 = vpop.f32.mrf.mxu0 }
 0x154   : > { %v3561_v15 = vpack.c.bf16 %v784_v8, %v782_v7  ;;  %v701_v18 = vadd.f32 %v700_v10, %v3376_v35  ;;  %v785_v34 = vmax.f32 %v699_v20, 0.0 }
 0x155   : > { %v702_v17 = vpop.f32.mrf.mxu0 }
 0x156   : > { %v703_v19 = vadd.f32 %v702_v17, %v3379_v36  ;;  %1179 = vmatprep.mubr.bf16.mxu1 %v3561_v15  ;;  %v786_v26 = vmax.f32 %v701_v18, 0.0 }
 0x157   : > { %v704_v0 = vpop.f32.mrf.mxu0  ;;  %1180 = vmatmul.mubr.bf16.gmra.mxu1 %v3563_v16 }
 0x158   : > { %v705_v23 = vadd.f32 %v704_v0, %v3376_v35  ;;  %v787_v24 = vmax.f32 %v703_v19, 0.0 }
 0x159   : > { %v708_v25 = vpop.f32.mrf.mxu0 }
 0x15a   : > { %v788_v27 = vmax.f32 %v705_v23, 0.0  ;;  %v3573_v39 = vpack.c.bf16 %v787_v24, %v785_v34  ;;  %v709_v45 = vadd.f32 %v708_v25, %v3379_v36 }
 0x15b   : > { %v710_v37 = vpop.f32.mrf.mxu0 }
 0x15c   : > { %v3571_v38 = vpack.c.bf16 %v788_v27, %v786_v26  ;;  %v711_v43 = vadd.f32 %v710_v37, %v3376_v35  ;;  %v789_v60 = vmax.f32 %v709_v45, 0.0 }
 0x15d   : > { %v712_v42 = vpop.f32.mrf.mxu0 }
 0x15e   : > { %v713_v44 = vadd.f32 %v712_v42, %v3379_v36  ;;  %1189 = vmatprep.mubr.bf16.mxu1 %v3571_v38  ;;  %v790_v51 = vmax.f32 %v711_v43, 0.0 }
 0x15f   : > { %v714_v46 = vpop.f32.mrf.mxu0  ;;  %1190 = vmatmul.mubr.bf16.gmra.mxu1 %v3573_v39 }
 0x160   : > { %v715_v47 = vadd.f32 %v714_v46, %v3376_v35  ;;  %v791_v48 = vmax.f32 %v713_v44, 0.0 }
 0x161   : > { %v718_v49 = vpop.f32.mrf.mxu0 }
 0x162   : > { %v792_v53 = vmax.f32 %v715_v47, 0.0  ;;  %v3583_v63 = vpack.c.bf16 %v791_v48, %v789_v60  ;;  %v719_v4 = vadd.f32 %v718_v49, %v3379_v36  ;;  %v2904_v48 = vld [vmem:[#allocation3 + $0x78] sm:$0xff]  }
 0x163   : > { %v720_v61 = vpop.f32.mrf.mxu0  ;;  %2719 = vmatprep.subr.bf16.mxu1 %v2904_v48  ;;  %2607 = vmatprep.subr.bf16.mxu0 %v2904_v48 }
 0x164   : > { %v3581_v62 = vpack.c.bf16 %v792_v53, %v790_v51  ;;  %v721_v2 = vadd.f32 %v720_v61, %v3376_v35  ;;  %v793_v19 = vmax.f32 %v719_v4, 0.0 }
 0x165   : > { %v722_v1 = vpop.f32.mrf.mxu0 }
 0x166   : > { %v723_v3 = vadd.f32 %v722_v1, %v3379_v36  ;;  %1199 = vmatprep.mubr.bf16.mxu1 %v3581_v62  ;;  %v794_v17 = vmax.f32 %v721_v2, 0.0 }
 0x167   : > { %v724_v7 = vpop.f32.mrf.mxu0  ;;  %1200 = vmatmul.mubr.bf16.gmra.mxu1 %v3583_v63 }
 0x168   : > { %v725_v8 = vadd.f32 %v724_v7, %v3376_v35  ;;  %v795_v9 = vmax.f32 %v723_v3, 0.0  ;;  %v2906_v3 = vld [vmem:[#allocation3 + $0x70] sm:$0xff]  }
 0x169   : > { %v728_v10 = vpop.f32.mrf.mxu0 }
 0x16a   : > { %v796_v18 = vmax.f32 %v725_v8, 0.0  ;;  %v3593_v23 = vpack.c.bf16 %v795_v9, %v793_v19  ;;  %v729_v27 = vadd.f32 %v728_v10, %v3379_v36  ;;  %v2907_v8 = vld [vmem:[#allocation3 + $0x30] sm:$0xff]   ;;  %v2908_v10 = vld [vmem:[#allocation3 + $0x68] sm:$0xff]  }
 0x16b   : > { %v730_v20 = vpop.f32.mrf.mxu0 }
 0x16c   : > { %v3591_v0 = vpack.c.bf16 %v796_v18, %v794_v17  ;;  %v731_v25 = vadd.f32 %v730_v20, %v3376_v35  ;;  %v797_v45 = vmax.f32 %v729_v27, 0.0 }
 0x16d   : > { %v732_v24 = vpop.f32.mrf.mxu0 }
 0x16e   : > { %v733_v26 = vadd.f32 %v732_v24, %v3379_v36  ;;  %1209 = vmatprep.mubr.bf16.mxu1 %v3591_v0  ;;  %v798_v43 = vmax.f32 %v731_v25, 0.0  ;;  %v2905_v36 = vld [vmem:[#allocation3 + $0x38] sm:$0xff]  }
 0x16f   : > { %v734_v34 = vpop.f32.mrf.mxu0  ;;  %1210 = vmatmul.mubr.bf16.gmra.mxu1 %v3593_v23 }
 0x170   : > { %v735_v37 = vadd.f32 %v734_v34, %v3376_v35  ;;  %v799_v42 = vmax.f32 %v733_v26, 0.0  ;;  %2727 = vmatpush3.bf16.msra.mxu1 %v2905_v36  ;;  %v865_v35 = vld [vmem:[%s3997_s4] sm:$0x3]  ;;  %v2909_v26 = vld [vmem:[#allocation3 + $0x28] sm:$0xff]  }
 0x171   : > { %v3611_v51 = vrot.slane %v865_v35, %v3362_v29  ;;  %v3614_v53 = vrot.slane %v865_v35, %v3370_v32  ;;  %2720 = vmatprep.subr.bf16.mxu1 %v2906_v3  ;;  %v2910_v34 = vld [vmem:[#allocation3 + $0x60] sm:$0xff]  }
 0x172   : > { %v800_v44 = vmax.f32 %v735_v37, 0.0  ;;  %v3603_v47 = vpack.c.bf16 %v799_v42, %v797_v45  ;;  %v2911_v35 = vld [vmem:[#allocation3 + $0x20] sm:$0xff]  }
 0x174   : > { %v3601_v46 = vpack.c.bf16 %v800_v44, %v798_v43  ;;  %2728 = vmatpush3.bf16.msra.mxu1 %v2907_v8 }
 0x175   : > { %2721 = vmatprep.subr.bf16.mxu1 %v2908_v10 }
 0x176   : > { %1219 = vmatprep.mubr.bf16.mxu1 %v3601_v46 }
 0x177   : > { %1220 = vmatmul.mubr.bf16.gmra.mxu1 %v3603_v47 }
 0x178   : > { %2729 = vmatpush3.bf16.msra.mxu1 %v2909_v26 }
 0x179   : > { %2722 = vmatprep.subr.bf16.mxu1 %v2910_v34 }
 0x17c   : > { %2730 = vmatpush3.bf16.msra.mxu1 %v2911_v35 }
 0x1bf   : > { %v1071_v49 = vpop.f32.mrf.mxu1 }
 0x1c0   : > { %v1072_v4 = vadd.f32 %v1071_v49, %v3614_v53 }
 0x1c1   : > { %v1073_v60 = vpop.f32.mrf.mxu1 }
 0x1c2   : > { %v1074_v1 = vadd.f32 %v1073_v60, %v3611_v51  ;;  %v1230_v24 = vmax.f32 %v1072_v4, 0.0  ;;  %v2912_v60 = vld [vmem:[#allocation3 + $0x58] sm:$0xff]  }
 0x1c3   : > { %v1075_v61 = vpop.f32.mrf.mxu1  ;;  %2723 = vmatprep.subr.bf16.mxu1 %v2912_v60 }
 0x1c4   : > { %v1076_v2 = vadd.f32 %v1075_v61, %v3614_v53  ;;  %v1231_v19 = vmax.f32 %v1074_v1, 0.0 }
 0x1c5   : > { %v1077_v7 = vpop.f32.mrf.mxu1 }
 0x1c6   : > { %v1078_v9 = vadd.f32 %v1077_v7, %v3611_v51  ;;  %v1232_v17 = vmax.f32 %v1076_v2, 0.0 }
 0x1c7   : > { %v1081_v18 = vpop.f32.mrf.mxu1 }
 0x1c8   : > { %v1233_v20 = vmax.f32 %v1078_v9, 0.0  ;;  %v1294_v37 = vpack.c.bf16 %v1232_v17, %v1230_v24  ;;  %v1082_v45 = vadd.f32 %v1081_v18, %v3614_v53  ;;  %v2913_v17 = vld [vmem:[#allocation3 + $0x18] sm:$0xff]   ;;  %v2914_v18 = vld [vmem:[#allocation3 + $0x50] sm:$0xff]  }
 0x1c9   : > { %v1083_v25 = vpop.f32.mrf.mxu1  ;;  %2731 = vmatpush3.bf16.msra.mxu1 %v2913_v17 }
 0x1ca   : > { %v1295_v27 = vpack.c.bf16 %v1233_v20, %v1231_v19  ;;  %v1084_v43 = vadd.f32 %v1083_v25, %v3611_v51  ;;  %v1234_v7 = vmax.f32 %v1082_v45, 0.0  ;;  %2724 = vmatprep.subr.bf16.mxu1 %v2914_v18 }
 0x1cb   : > { %v1085_v42 = vpop.f32.mrf.mxu1 }
 0x1cc   : > { %v1086_v44 = vadd.f32 %v1085_v42, %v3614_v53  ;;  %1690 = vmatprep.mubr.bf16.mxu0 %v1295_v27  ;;  %v1235_v2 = vmax.f32 %v1084_v43, 0.0 }
 0x1cd   : > { %v1087_v48 = vpop.f32.mrf.mxu1  ;;  %1691 = vmatmul.mubr.bf16.vlgmr.msra.gmra.mxu0 %v1294_v37  ;;  %v2915_v37 = vld [vmem:[#allocation3 + $0x10] sm:$0xff]  }
 0x1ce   : > { %v1088_v49 = vadd.f32 %v1087_v48, %v3611_v51  ;;  %2608 = vmatpush3.bf16.msra.mxu0 %v2905_v36  ;;  %v1236_v61 = vmax.f32 %v1086_v44, 0.0  ;;  %2732 = vmatpush3.bf16.msra.mxu1 %v2915_v37 }
 0x1cf   : > { %v1091_v1 = vpop.f32.mrf.mxu1  ;;  %2609 = vmatprep.subr.bf16.mxu0 %v2906_v3 }
 0x1d0   : > { %v1237_v4 = vmax.f32 %v1088_v49, 0.0  ;;  %v1296_v20 = vpack.c.bf16 %v1236_v61, %v1234_v7  ;;  %v1092_v3 = vadd.f32 %v1091_v1, %v3614_v53 }
 0x1d1   : > { %v1093_v9 = vpop.f32.mrf.mxu1 }
 0x1d2   : > { %v1297_v19 = vpack.c.bf16 %v1237_v4, %v1235_v2  ;;  %2610 = vmatpush3.bf16.msra.mxu0 %v2907_v8  ;;  %v1094_v36 = vadd.f32 %v1093_v9, %v3611_v51  ;;  %v1238_v45 = vmax.f32 %v1092_v3, 0.0 }
 0x1d3   : > { %v1095_v24 = vpop.f32.mrf.mxu1  ;;  %2611 = vmatprep.subr.bf16.mxu0 %v2908_v10 }
 0x1d4   : > { %v1096_v25 = vadd.f32 %v1095_v24, %v3614_v53  ;;  %1700 = vmatprep.mubr.bf16.mxu0 %v1297_v19  ;;  %v1239_v10 = vmax.f32 %v1094_v36, 0.0 }
 0x1d5   : > { %v1097_v27 = vpop.f32.mrf.mxu1  ;;  %1701 = vmatmul.mubr.bf16.gmra.mxu0 %v1296_v20 }
 0x1d6   : > { %v1098_v42 = vadd.f32 %v1097_v27, %v3611_v51  ;;  %2612 = vmatpush3.bf16.msra.mxu0 %v2909_v26  ;;  %v1240_v8 = vmax.f32 %v1096_v25, 0.0 }
 0x1d7   : > { %v1101_v43 = vpop.f32.mrf.mxu1  ;;  %2613 = vmatprep.subr.bf16.mxu0 %v2910_v34 }
 0x1d8   : > { %v1241_v44 = vmax.f32 %v1098_v42, 0.0  ;;  %v1298_v61 = vpack.c.bf16 %v1240_v8, %v1238_v45  ;;  %v1102_v26 = vadd.f32 %v1101_v43, %v3614_v53 }
 0x1d9   : > { %v1103_v48 = vpop.f32.mrf.mxu1 }
 0x1da   : > { %v1299_v49 = vpack.c.bf16 %v1241_v44, %v1239_v10  ;;  %2614 = vmatpush3.bf16.msra.mxu0 %v2911_v35  ;;  %v1104_v1 = vadd.f32 %v1103_v48, %v3611_v51  ;;  %v1242_v24 = vmax.f32 %v1102_v26, 0.0 }
 0x1db   : > { %v1105_v2 = vpop.f32.mrf.mxu1  ;;  %2615 = vmatprep.subr.bf16.mxu0 %v2912_v60 }
 0x1dc   : > { %v1106_v4 = vadd.f32 %v1105_v2, %v3614_v53  ;;  %1710 = vmatprep.mubr.bf16.mxu0 %v1299_v49  ;;  %v1243_v20 = vmax.f32 %v1104_v1, 0.0 }
 0x1dd   : > { %v1107_v7 = vpop.f32.mrf.mxu1  ;;  %1711 = vmatmul.mubr.bf16.gmra.mxu0 %v1298_v61 }
 0x1de   : > { %v1108_v34 = vadd.f32 %v1107_v7, %v3611_v51  ;;  %2616 = vmatpush3.bf16.msra.mxu0 %v2913_v17  ;;  %v1244_v9 = vmax.f32 %v1106_v4, 0.0 }
 0x1df   : > { %v1111_v19 = vpop.f32.mrf.mxu1  ;;  %2617 = vmatprep.subr.bf16.mxu0 %v2914_v18 }
 0x1e0   : > { %v1245_v35 = vmax.f32 %v1108_v34, 0.0  ;;  %v1300_v25 = vpack.c.bf16 %v1244_v9, %v1242_v24  ;;  %v1112_v8 = vadd.f32 %v1111_v19, %v3614_v53 }
 0x1e1   : > { %v1113_v36 = vpop.f32.mrf.mxu1 }
 0x1e2   : > { %v1301_v60 = vpack.c.bf16 %v1245_v35, %v1243_v20  ;;  %2618 = vmatpush3.bf16.msra.mxu0 %v2915_v37  ;;  %v1114_v27 = vadd.f32 %v1113_v36, %v3611_v51  ;;  %v1246_v48 = vmax.f32 %v1112_v8, 0.0 }
 0x1e3   : > { %v1115_v3 = vpop.f32.mrf.mxu1 }
 0x1e4   : > { %v1116_v42 = vadd.f32 %v1115_v3, %v3614_v53  ;;  %1720 = vmatprep.mubr.bf16.mxu0 %v1301_v60  ;;  %v1247_v44 = vmax.f32 %v1114_v27, 0.0 }
 0x1e5   : > { %v1117_v43 = vpop.f32.mrf.mxu1  ;;  %1721 = vmatmul.mubr.bf16.gmra.mxu0 %v1300_v25 }
 0x1e6   : > { %v1118_v17 = vadd.f32 %v1117_v43, %v3611_v51  ;;  %v1248_v18 = vmax.f32 %v1116_v42, 0.0 }
 0x1e7   : > { %v1121_v10 = vpop.f32.mrf.mxu1 }
 0x1e8   : > { %v1249_v45 = vmax.f32 %v1118_v17, 0.0  ;;  %v1302_v61 = vpack.c.bf16 %v1248_v18, %v1246_v48  ;;  %v1122_v26 = vadd.f32 %v1121_v10, %v3614_v53 }
 0x1e9   : > { %v1123_v49 = vpop.f32.mrf.mxu1 }
 0x1ea   : > { %v1303_v37 = vpack.c.bf16 %v1249_v45, %v1247_v44  ;;  %v1124_v1 = vadd.f32 %v1123_v49, %v3611_v51  ;;  %v1250_v24 = vmax.f32 %v1122_v26, 0.0 }
 0x1eb   : > { %v1125_v2 = vpop.f32.mrf.mxu1 }
 0x1ec   : > { %v1126_v4 = vadd.f32 %v1125_v2, %v3614_v53  ;;  %1730 = vmatprep.mubr.bf16.mxu0 %v1303_v37  ;;  %v1251_v20 = vmax.f32 %v1124_v1, 0.0 }
 0x1ed   : > { %v1127_v7 = vpop.f32.mrf.mxu1  ;;  %1731 = vmatmul.mubr.bf16.gmra.mxu0 %v1302_v61 }
 0x1ee   : > { %v1128_v34 = vadd.f32 %v1127_v7, %v3611_v51  ;;  %v1252_v9 = vmax.f32 %v1126_v4, 0.0 }
 0x1ef   : > { %v1131_v19 = vpop.f32.mrf.mxu1 }
 0x1f0   : > { %v1253_v35 = vmax.f32 %v1128_v34, 0.0  ;;  %v1304_v25 = vpack.c.bf16 %v1252_v9, %v1250_v24  ;;  %v1132_v8 = vadd.f32 %v1131_v19, %v3614_v53 }
 0x1f1   : > { %v1133_v36 = vpop.f32.mrf.mxu1 }
 0x1f2   : > { %v1305_v60 = vpack.c.bf16 %v1253_v35, %v1251_v20  ;;  %v1134_v27 = vadd.f32 %v1133_v36, %v3611_v51  ;;  %v1254_v48 = vmax.f32 %v1132_v8, 0.0 }
 0x1f3   : > { %v1135_v3 = vpop.f32.mrf.mxu1 }
 0x1f4   : > { %v1136_v42 = vadd.f32 %v1135_v3, %v3614_v53  ;;  %1740 = vmatprep.mubr.bf16.mxu0 %v1305_v60  ;;  %v1255_v44 = vmax.f32 %v1134_v27, 0.0 }
 0x1f5   : > { %v1137_v43 = vpop.f32.mrf.mxu1  ;;  %1741 = vmatmul.mubr.bf16.gmra.mxu0 %v1304_v25 }
 0x1f6   : > { %v1138_v17 = vadd.f32 %v1137_v43, %v3611_v51  ;;  %v1256_v18 = vmax.f32 %v1136_v42, 0.0 }
 0x1f7   : > { %v1141_v10 = vpop.f32.mrf.mxu1 }
 0x1f8   : > { %v1257_v45 = vmax.f32 %v1138_v17, 0.0  ;;  %v1306_v61 = vpack.c.bf16 %v1256_v18, %v1254_v48  ;;  %v1142_v26 = vadd.f32 %v1141_v10, %v3614_v53 }
 0x1f9   : > { %v1143_v49 = vpop.f32.mrf.mxu1 }
 0x1fa   : > { %v1307_v37 = vpack.c.bf16 %v1257_v45, %v1255_v44  ;;  %v1144_v1 = vadd.f32 %v1143_v49, %v3611_v51  ;;  %v1258_v24 = vmax.f32 %v1142_v26, 0.0 }
 0x1fb   : > { %v1145_v2 = vpop.f32.mrf.mxu1 }
 0x1fc   : > { %v1146_v4 = vadd.f32 %v1145_v2, %v3614_v53  ;;  %1750 = vmatprep.mubr.bf16.mxu0 %v1307_v37  ;;  %v1259_v20 = vmax.f32 %v1144_v1, 0.0 }
 0x1fd   : > { %v1147_v7 = vpop.f32.mrf.mxu1  ;;  %1751 = vmatmul.mubr.bf16.gmra.mxu0 %v1306_v61 }
 0x1fe   : > { %v1148_v34 = vadd.f32 %v1147_v7, %v3611_v51  ;;  %v1260_v9 = vmax.f32 %v1146_v4, 0.0 }
 0x1ff   : > { %v1151_v19 = vpop.f32.mrf.mxu1 }
 0x200   : > { %v1261_v35 = vmax.f32 %v1148_v34, 0.0  ;;  %v1308_v25 = vpack.c.bf16 %v1260_v9, %v1258_v24  ;;  %v1152_v8 = vadd.f32 %v1151_v19, %v3614_v53 }
 0x201   : > { %v1153_v36 = vpop.f32.mrf.mxu1 }
 0x202   : > { %v1309_v60 = vpack.c.bf16 %v1261_v35, %v1259_v20  ;;  %v1154_v27 = vadd.f32 %v1153_v36, %v3611_v51  ;;  %v1262_v48 = vmax.f32 %v1152_v8, 0.0  ;;  %v2916_v8 = vld [vmem:[#allocation3 + $0x48] sm:$0xff]  }
 0x203   : > { %v1155_v3 = vpop.f32.mrf.mxu1  ;;  %2725 = vmatprep.subr.bf16.mxu1 %v2916_v8  ;;  %2619 = vmatprep.subr.bf16.mxu0 %v2916_v8 }
 0x204   : > { %v1156_v42 = vadd.f32 %v1155_v3, %v3614_v53  ;;  %1760 = vmatprep.mubr.bf16.mxu0 %v1309_v60  ;;  %v1263_v44 = vmax.f32 %v1154_v27, 0.0 }
 0x205   : > { %v1157_v43 = vpop.f32.mrf.mxu1  ;;  %1761 = vmatmul.mubr.bf16.gmra.mxu0 %v1308_v25 }
 0x206   : > { %v1158_v17 = vadd.f32 %v1157_v43, %v3611_v51  ;;  %v1264_v18 = vmax.f32 %v1156_v42, 0.0 }
 0x207   : > { %v1161_v10 = vpop.f32.mrf.mxu1 }
 0x208   : > { %v1265_v45 = vmax.f32 %v1158_v17, 0.0  ;;  %v1310_v61 = vpack.c.bf16 %v1264_v18, %v1262_v48  ;;  %v1162_v26 = vadd.f32 %v1161_v10, %v3614_v53  ;;  %v2917_v18 = vld [vmem:[#allocation3 + $0x8] sm:$0xff]  }
 0x209   : > { %v1163_v49 = vpop.f32.mrf.mxu1  ;;  %2733 = vmatpush3.bf16.msra.mxu1 %v2917_v18  ;;  %2620 = vmatpush3.bf16.msra.mxu0 %v2917_v18 }
 0x20a   : > { %v1311_v37 = vpack.c.bf16 %v1265_v45, %v1263_v44  ;;  %v1164_v1 = vadd.f32 %v1163_v49, %v3611_v51  ;;  %v1266_v24 = vmax.f32 %v1162_v26, 0.0 }
 0x20b   : > { %v1165_v2 = vpop.f32.mrf.mxu1 }
 0x20c   : > { %v1166_v4 = vadd.f32 %v1165_v2, %v3614_v53  ;;  %1770 = vmatprep.mubr.bf16.mxu0 %v1311_v37  ;;  %v1267_v20 = vmax.f32 %v1164_v1, 0.0  ;;  %v2918_v37 = vld [vmem:[#allocation3 + $0x40] sm:$0xff]  }
 0x20d   : > { %v1167_v7 = vpop.f32.mrf.mxu1  ;;  %1771 = vmatmul.mubr.bf16.gmra.mxu0 %v1310_v61  ;;  %v2919_v1 = vld [vmem:[#allocation3] sm:$0xff]   ;;  %2621 = vmatprep.subr.bf16.mxu0 %v2918_v37 }
 0x20e   : > { %v1168_v34 = vadd.f32 %v1167_v7, %v3611_v51  ;;  %v1268_v9 = vmax.f32 %v1166_v4, 0.0  ;;  %2726 = vmatprep.subr.bf16.mxu1 %v2918_v37  ;;  %2622 = vmatpush3.bf16.msra.mxu0 %v2919_v1 }
 0x20f   : > { %v1171_v19 = vpop.f32.mrf.mxu1  ;;  %2734 = vmatpush3.bf16.msra.mxu1 %v2919_v1 }
 0x210   : > { %v1269_v35 = vmax.f32 %v1168_v34, 0.0  ;;  %v1312_v25 = vpack.c.bf16 %v1268_v9, %v1266_v24  ;;  %v1172_v43 = vadd.f32 %v1171_v19, %v3614_v53 }
 0x211   : > { %v1173_v36 = vpop.f32.mrf.mxu1 }
 0x212   : > { %v1313_v60 = vpack.c.bf16 %v1269_v35, %v1267_v20  ;;  %v1174_v27 = vadd.f32 %v1173_v36, %v3611_v51  ;;  %v1270_v61 = vmax.f32 %v1172_v43, 0.0 }
 0x213   : > { %v1175_v3 = vpop.f32.mrf.mxu1 }
 0x214   : > { %v1176_v42 = vadd.f32 %v1175_v3, %v3614_v53  ;;  %1780 = vmatprep.mubr.bf16.mxu0 %v1313_v60  ;;  %v1271_v48 = vmax.f32 %v1174_v27, 0.0 }
 0x215   : > { %v1177_v17 = vpop.f32.mrf.mxu1  ;;  %1781 = vmatmul.mubr.bf16.gmra.mxu0 %v1312_v25 }
 0x216   : > { %v1178_v10 = vadd.f32 %v1177_v17, %v3611_v51  ;;  %v1272_v44 = vmax.f32 %v1176_v42, 0.0 }
 0x217   : > { %v1181_v45 = vpop.f32.mrf.mxu1 }
 0x218   : > { %v1273_v49 = vmax.f32 %v1178_v10, 0.0  ;;  %v1314_v26 = vpack.c.bf16 %v1272_v44, %v1270_v61  ;;  %v1182_v19 = vadd.f32 %v1181_v45, %v3614_v53 }
 0x219   : > { %v1183_v2 = vpop.f32.mrf.mxu1 }
 0x21a   : > { %v1315_v4 = vpack.c.bf16 %v1273_v49, %v1271_v48  ;;  %v1184_v34 = vadd.f32 %v1183_v2, %v3611_v51  ;;  %v1274_v3 = vmax.f32 %v1182_v19, 0.0 }
 0x21b   : > { %v1185_v7 = vpop.f32.mrf.mxu1 }
 0x21c   : > { %v1186_v9 = vadd.f32 %v1185_v7, %v3614_v53  ;;  %1790 = vmatprep.mubr.bf16.mxu0 %v1315_v4  ;;  %v1275_v60 = vmax.f32 %v1184_v34, 0.0 }
 0x21d   : > { %v1187_v20 = vpop.f32.mrf.mxu1  ;;  %1791 = vmatmul.mubr.bf16.gmra.mxu0 %v1314_v26 }
 0x21e   : > { %v1188_v35 = vadd.f32 %v1187_v20, %v3611_v51  ;;  %v1276_v24 = vmax.f32 %v1186_v9, 0.0 }
 0x21f   : > { %v1191_v36 = vpop.f32.mrf.mxu1 }
 0x220   : > { %v1277_v25 = vmax.f32 %v1188_v35, 0.0  ;;  %v1316_v8 = vpack.c.bf16 %v1276_v24, %v1274_v3  ;;  %v1192_v10 = vadd.f32 %v1191_v36, %v3614_v53 }
 0x221   : > { %v1193_v27 = vpop.f32.mrf.mxu1 }
 0x222   : > { %v1317_v42 = vpack.c.bf16 %v1277_v25, %v1275_v60  ;;  %v1194_v17 = vadd.f32 %v1193_v27, %v3611_v51  ;;  %v1278_v2 = vmax.f32 %v1192_v10, 0.0 }
 0x223   : > { %v1195_v43 = vpop.f32.mrf.mxu1 }
 0x224   : > { %v1196_v18 = vadd.f32 %v1195_v43, %v3614_v53  ;;  %1800 = vmatprep.mubr.bf16.mxu0 %v1317_v42  ;;  %v1279_v37 = vmax.f32 %v1194_v17, 0.0 }
 0x225   : > { %v1197_v44 = vpop.f32.mrf.mxu1  ;;  %1801 = vmatmul.mubr.bf16.gmra.mxu0 %v1316_v8 }
 0x226   : > { %v1198_v45 = vadd.f32 %v1197_v44, %v3611_v51  ;;  %v1280_v48 = vmax.f32 %v1196_v18, 0.0 }
 0x227   : > { %v1201_v49 = vpop.f32.mrf.mxu1 }
 0x228   : > { %v1281_v61 = vmax.f32 %v1198_v45, 0.0  ;;  %v1318_v26 = vpack.c.bf16 %v1280_v48, %v1278_v2  ;;  %v1202_v19 = vadd.f32 %v1201_v49, %v3614_v53 }
 0x229   : > { %v1203_v1 = vpop.f32.mrf.mxu1 }
 0x22a   : > { %v1319_v4 = vpack.c.bf16 %v1281_v61, %v1279_v37  ;;  %v1204_v34 = vadd.f32 %v1203_v1, %v3611_v51  ;;  %v1282_v3 = vmax.f32 %v1202_v19, 0.0 }
 0x22b   : > { %v1205_v7 = vpop.f32.mrf.mxu1 }
 0x22c   : > { %v1206_v9 = vadd.f32 %v1205_v7, %v3614_v53  ;;  %1810 = vmatprep.mubr.bf16.mxu0 %v1319_v4  ;;  %v1283_v60 = vmax.f32 %v1204_v34, 0.0 }
 0x22d   : > { %v1207_v20 = vpop.f32.mrf.mxu1  ;;  %1811 = vmatmul.mubr.bf16.gmra.mxu0 %v1318_v26 }
 0x22e   : > { %v1208_v35 = vadd.f32 %v1207_v20, %v3611_v51  ;;  %v1284_v24 = vmax.f32 %v1206_v9, 0.0 }
 0x22f   : > { %v1211_v36 = vpop.f32.mrf.mxu1 }
 0x230   : > { %v1285_v25 = vmax.f32 %v1208_v35, 0.0  ;;  %v1320_v8 = vpack.c.bf16 %v1284_v24, %v1282_v3  ;;  %v1212_v10 = vadd.f32 %v1211_v36, %v3614_v53 }
 0x231   : > { %v1213_v27 = vpop.f32.mrf.mxu1 }
 0x232   : > { %v1321_v42 = vpack.c.bf16 %v1285_v25, %v1283_v60  ;;  %v1214_v17 = vadd.f32 %v1213_v27, %v3611_v51  ;;  %v1286_v2 = vmax.f32 %v1212_v10, 0.0  ;;  %v1851_v10 = vld [vmem:[%s4000_s7] sm:$0x3] }
 0x233   : > { %v1215_v43 = vpop.f32.mrf.mxu1 }
 0x234   : > { %v1216_v18 = vadd.f32 %v1215_v43, %v3614_v53  ;;  %1820 = vmatprep.mubr.bf16.mxu0 %v1321_v42  ;;  %v1287_v37 = vmax.f32 %v1214_v17, 0.0  ;;  %v1358_v42 = vld [vmem:[%s3999_s6] sm:$0x3]  ;;  %v1359_v43 = vunpack.c.l.bf16 %v3408_v58  ;;  %v1361_v17 = vunpack.c.h.bf16 %v3408_v58 }
 0x235   : > { %v1217_v44 = vpop.f32.mrf.mxu1  ;;  %1821 = vmatmul.mubr.bf16.gmra.mxu0 %v1320_v8  ;;  %v1360_v8 = vunpack.c.l.bf16 %v3403_v56  ;;  %v3703_v58 = vrot.slane %v1851_v10, %v3370_v32 }
 0x236   : > { %v1218_v45 = vadd.f32 %v1217_v44, %v3611_v51  ;;  %v1288_v48 = vmax.f32 %v1216_v18, 0.0 }
 0x237   : > { %v1221_v49 = vpop.f32.mrf.mxu1 }
 0x238   : > { %v1289_v61 = vmax.f32 %v1218_v45, 0.0  ;;  %v1322_v26 = vpack.c.bf16 %v1288_v48, %v1286_v2  ;;  %v1222_v19 = vadd.f32 %v1221_v49, %v3614_v53  ;;  %v1362_v45 = vunpack.c.h.bf16 %v3403_v56 }
 0x239   : > { %v1223_v1 = vpop.f32.mrf.mxu1 }
 0x23a   : > { %v1323_v4 = vpack.c.bf16 %v1289_v61, %v1287_v37  ;;  %v1224_v34 = vadd.f32 %v1223_v1, %v3611_v51  ;;  %v1290_v25 = vmax.f32 %v1222_v19, 0.0  ;;  %v3699_v61 = vrot.slane %v1851_v10, %v3362_v29 }
 0x23b   : > { %v1225_v7 = vpop.f32.mrf.mxu1 }
 0x23c   : > { %v1226_v9 = vadd.f32 %v1225_v7, %v3614_v53  ;;  %1830 = vmatprep.mubr.bf16.mxu0 %v1323_v4  ;;  %v1291_v36 = vmax.f32 %v1224_v34, 0.0  ;;  %v3685_v53 = vrot.slane %v1358_v42, %v3362_v29  ;;  %v1364_v34 = vunpack.c.l.bf16 %v3425_v11 }
 0x23d   : > { %v1227_v20 = vpop.f32.mrf.mxu1  ;;  %1831 = vmatmul.mubr.bf16.gmra.mxu0 %v1322_v26 }
 0x23e   : > { %v1228_v35 = vadd.f32 %v1227_v20, %v3611_v51  ;;  %v1292_v24 = vmax.f32 %v1226_v9, 0.0  ;;  %v3689_v51 = vrot.slane %v1358_v42, %v3370_v32  ;;  %v1435_v44 = vmul.f32 %v3685_v53, %v1360_v8 }
 0x23f   : > { %v1437_v7 = vmul.f32 %v3685_v53, %v1362_v45  ;;  %v1363_v9 = vunpack.c.l.bf16 %v3430_v13 }
 0x240   : > { %v1293_v60 = vmax.f32 %v1228_v35, 0.0  ;;  %v1324_v27 = vpack.c.bf16 %v1292_v24, %v1290_v25  ;;  %v1434_v48 = vmul.f32 %v3689_v51, %v1359_v43  ;;  %v1436_v2 = vmul.f32 %v3689_v51, %v1361_v17 }
 0x241   : > { %v1365_v35 = vunpack.c.h.bf16 %v3430_v13  ;;  %v1366_v25 = vunpack.c.h.bf16 %v3425_v11 }
 0x242   : > { %v1325_v3 = vpack.c.bf16 %v1293_v60, %v1291_v36  ;;  %v1439_v60 = vmul.f32 %v3685_v53, %v1364_v34  ;;  %v1369_v34 = vunpack.c.h.bf16 %v3452_v31 }
 0x244   : > { %1840 = vmatprep.mubr.bf16.mxu0 %v1325_v3 }
 0x245   : > { %1841 = vmatmul.mubr.bf16.gmra.mxu0 %v1324_v27  ;;  %v1438_v27 = vmul.f32 %v3689_v51, %v1363_v9 }
 0x28d   : > { %v1692_v18 = vpop.f32.mrf.mxu0 }
 0x28e   : > { %v1693_v1 = vadd.f32 %v1692_v18, %v1434_v48  ;;  %v1440_v18 = vmul.f32 %v3689_v51, %v1365_v35  ;;  %v1441_v48 = vmul.f32 %v3685_v53, %v1366_v25 }
 0x28f   : > { %v1694_v49 = vpop.f32.mrf.mxu0 }
 0x290   : > { %v1695_v37 = vadd.f32 %v1694_v49, %v1435_v44  ;;  %v1863_v24 = vadd.f32 %v3703_v58, %v1693_v1  ;;  %v1367_v1 = vunpack.c.l.bf16 %v3452_v31 }
 0x291   : > { %v1696_v4 = vpop.f32.mrf.mxu0 }
 0x292   : > { %v1697_v26 = vadd.f32 %v1696_v4, %v1436_v2  ;;  %v1864_v19 = vadd.f32 %v3699_v61, %v1695_v37  ;;  %v1927_v10 = vmax.f32 %v1863_v24, 0.0  ;;  %v1368_v37 = vunpack.c.l.bf16 %v3447_v28 }
 0x293   : > { %v1698_v56 = vpop.f32.mrf.mxu0  ;;  %v1442_v24 = vmul.f32 %v3689_v51, %v1367_v1 }
 0x294   : > { %v1865_v29 = vadd.f32 %v3703_v58, %v1697_v26  ;;  %v1699_v20 = vadd.f32 %v1698_v56, %v1437_v7  ;;  %v1928_v8 = vmax.f32 %v1864_v19, 0.0 }
 0x295   : > { %v1702_v32 = vpop.f32.mrf.mxu0 }
 0x296   : > { %v1866_v36 = vadd.f32 %v3699_v61, %v1699_v20  ;;  %v1929_v3 = vmax.f32 %v1865_v29, 0.0  ;;  %v1703_v13 = vadd.f32 %v1702_v32, %v1438_v27  ;;  %v1443_v29 = vmul.f32 %v3685_v53, %v1368_v37 }
 0x297   : > { %v1704_v42 = vpop.f32.mrf.mxu0  ;;  %v1370_v20 = vunpack.c.h.bf16 %v3447_v28 }
 0x298   : > { %v1930_v43 = vmax.f32 %v1866_v36, 0.0  ;;  %v1705_v17 = vadd.f32 %v1704_v42, %v1439_v60  ;;  %v1991_v2 = vpack.c.bf16 %v1929_v3, %v1927_v10  ;;  %v1867_v56 = vadd.f32 %v3703_v58, %v1703_v13 }
 0x299   : > { %v1706_v44 = vpop.f32.mrf.mxu0  ;;  %v1444_v3 = vmul.f32 %v3689_v51, %v1369_v34  ;;  %v1371_v13 = vunpack.c.l.bf16 %v3474_v52 }
 0x29a   : > { %v1707_v45 = vadd.f32 %v1706_v44, %v1440_v18  ;;  %v1992_v49 = vpack.c.bf16 %v1930_v43, %v1928_v8  ;;  %v1868_v4 = vadd.f32 %v3699_v61, %v1705_v17  ;;  %v1931_v31 = vmax.f32 %v1867_v56, 0.0 }
 0x29b   : > { %v1708_v11 = vpop.f32.mrf.mxu0  ;;  %v1445_v43 = vmul.f32 %v3685_v53, %v1370_v20  ;;  %v1372_v18 = vunpack.c.l.bf16 %v3469_v50 }
 0x29c   : > { %v1869_v26 = vadd.f32 %v3703_v58, %v1707_v45  ;;  %v1709_v7 = vadd.f32 %v1708_v11, %v1441_v48  ;;  %2190 = vmatprep.mubr.bf16.mxu0 %v1992_v49  ;;  %v1932_v36 = vmax.f32 %v1868_v4, 0.0  ;;  %v1373_v49 = vunpack.c.h.bf16 %v3474_v52 }
 0x29d   : > { %v1712_v9 = vpop.f32.mrf.mxu0  ;;  %2191 = vmatmul.mubr.bf16.vlgmr.msra.gmra.mxu0 %v1991_v2  ;;  %v1447_v1 = vmul.f32 %v3685_v53, %v1372_v18  ;;  %v1374_v4 = vunpack.c.h.bf16 %v3469_v50 }
 0x29e   : > { %v1870_v19 = vadd.f32 %v3699_v61, %v1709_v7  ;;  %v1933_v35 = vmax.f32 %v1869_v26, 0.0  ;;  %v1713_v27 = vadd.f32 %v1712_v9, %v1442_v24  ;;  %v1446_v7 = vmul.f32 %v3689_v51, %v1371_v13 }
 0x29f   : > { %v1714_v32 = vpop.f32.mrf.mxu0 }
 0x2a0   : > { %v1934_v60 = vmax.f32 %v1870_v19, 0.0  ;;  %v1715_v25 = vadd.f32 %v1714_v32, %v1443_v29  ;;  %v1993_v10 = vpack.c.bf16 %v1933_v35, %v1931_v31  ;;  %v1871_v37 = vadd.f32 %v3703_v58, %v1713_v27 }
 0x2a1   : > { %v1716_v42 = vpop.f32.mrf.mxu0  ;;  %v1448_v29 = vmul.f32 %v3689_v51, %v1373_v49  ;;  %v1449_v32 = vmul.f32 %v3685_v53, %v1374_v4 }
 0x2a2   : > { %v1717_v8 = vadd.f32 %v1716_v42, %v1444_v3  ;;  %v1994_v17 = vpack.c.bf16 %v1934_v60, %v1932_v36  ;;  %v1872_v44 = vadd.f32 %v3699_v61, %v1715_v25  ;;  %v1935_v52 = vmax.f32 %v1871_v37, 0.0 }
 0x2a3   : > { %v1718_v28 = vpop.f32.mrf.mxu0  ;;  %v1376_v60 = vunpack.c.l.bf16 %v3485_v5  ;;  %v1375_v3 = vunpack.c.l.bf16 %v3487_v6 }
 0x2a4   : > { %v1873_v45 = vadd.f32 %v3703_v58, %v1717_v8  ;;  %v1719_v48 = vadd.f32 %v1718_v28, %v1445_v43  ;;  %2198 = vmatprep.mubr.bf16.mxu0 %v1994_v17  ;;  %v1936_v56 = vmax.f32 %v1872_v44, 0.0  ;;  %v1377_v8 = vunpack.c.h.bf16 %v3487_v6 }
 0x2a5   : > { %v1722_v2 = vpop.f32.mrf.mxu0  ;;  %2199 = vmatmul.mubr.bf16.gmra.mxu0 %v1993_v10  ;;  %v1451_v10 = vmul.f32 %v3685_v53, %v1376_v60  ;;  %v1378_v28 = vunpack.c.h.bf16 %v3485_v5  ;;  %v1450_v44 = vmul.f32 %v3689_v51, %v1375_v3  ;;  %v1382_v60 = vunpack.c.h.bf16 %v3495_v21 }
 0x2a6   : > { %v1874_v11 = vadd.f32 %v3699_v61, %v1719_v48  ;;  %v1937_v26 = vmax.f32 %v1873_v45, 0.0  ;;  %v1723_v20 = vadd.f32 %v1722_v2, %v1446_v7  ;;  %v1452_v2 = vmul.f32 %v3689_v51, %v1377_v8 }
 0x2a7   : > { %v1724_v34 = vpop.f32.mrf.mxu0 }
 0x2a8   : > { %v1938_v9 = vmax.f32 %v1874_v11, 0.0  ;;  %v1725_v19 = vadd.f32 %v1724_v34, %v1447_v1  ;;  %v1995_v25 = vpack.c.bf16 %v1937_v26, %v1935_v52  ;;  %v1875_v43 = vadd.f32 %v3703_v58, %v1723_v20 }
 0x2a9   : > { %v1726_v35 = vpop.f32.mrf.mxu0  ;;  %v1453_v26 = vmul.f32 %v3685_v53, %v1378_v28  ;;  %v1380_v34 = vunpack.c.l.bf16 %v3495_v21  ;;  %v1381_v20 = vunpack.c.h.bf16 %v3497_v22  ;;  %v1383_v21 = vunpack.c.l.bf16 %v3507_v41 }
 0x2aa   : > { %v1727_v24 = vadd.f32 %v1726_v35, %v1448_v29  ;;  %v1996_v36 = vpack.c.bf16 %v1938_v9, %v1936_v56  ;;  %v1876_v31 = vadd.f32 %v3699_v61, %v1725_v19  ;;  %v1939_v6 = vmax.f32 %v1875_v43, 0.0 }
 0x2ab   : > { %v1728_v50 = vpop.f32.mrf.mxu0  ;;  %v1379_v9 = vunpack.c.l.bf16 %v3497_v22  ;;  %v1456_v8 = vmul.f32 %v3689_v51, %v1381_v20 }
 0x2ac   : > { %v1877_v27 = vadd.f32 %v3703_v58, %v1727_v24  ;;  %v1729_v42 = vadd.f32 %v1728_v50, %v1449_v32  ;;  %2206 = vmatprep.mubr.bf16.mxu0 %v1996_v36  ;;  %v1940_v48 = vmax.f32 %v1876_v31, 0.0  ;;  %v1455_v36 = vmul.f32 %v3685_v53, %v1380_v34 }
 0x2ad   : > { %v1732_v17 = vpop.f32.mrf.mxu0  ;;  %2207 = vmatmul.mubr.bf16.gmra.mxu0 %v1995_v25  ;;  %v1454_v50 = vmul.f32 %v3689_v51, %v1379_v9  ;;  %v1458_v34 = vmul.f32 %v3689_v51, %v1383_v21 }
 0x2ae   : > { %v1878_v18 = vadd.f32 %v3699_v61, %v1729_v42  ;;  %v1941_v13 = vmax.f32 %v1877_v27, 0.0  ;;  %v1733_v11 = vadd.f32 %v1732_v17, %v1450_v44 }
 0x2af   : > { %v1734_v45 = vpop.f32.mrf.mxu0 }
 0x2b0   : > { %v1942_v49 = vmax.f32 %v1878_v18, 0.0  ;;  %v1735_v37 = vadd.f32 %v1734_v45, %v1451_v10  ;;  %v1997_v56 = vpack.c.bf16 %v1941_v13, %v1939_v6  ;;  %v1879_v35 = vadd.f32 %v3703_v58, %v1733_v11 }
 0x2b1   : > { %v1736_v1 = vpop.f32.mrf.mxu0  ;;  %v1457_v10 = vmul.f32 %v3685_v53, %v1382_v60  ;;  %v1384_v13 = vunpack.c.l.bf16 %v3505_v40 }
 0x2b2   : > { %v1737_v4 = vadd.f32 %v1736_v1, %v1452_v2  ;;  %v1998_v7 = vpack.c.bf16 %v1942_v49, %v1940_v48  ;;  %v1880_v19 = vadd.f32 %v3699_v61, %v1735_v37  ;;  %v1943_v22 = vmax.f32 %v1879_v35, 0.0 }
 0x2b3   : > { %v1738_v5 = vpop.f32.mrf.mxu0  ;;  %v1385_v2 = vunpack.c.h.bf16 %v3507_v41 }
 0x2b4   : > { %v1881_v29 = vadd.f32 %v3703_v58, %v1737_v4  ;;  %v1739_v52 = vadd.f32 %v1738_v5, %v1453_v26  ;;  %2214 = vmatprep.mubr.bf16.mxu1 %v1998_v7  ;;  %v1944_v31 = vmax.f32 %v1880_v19, 0.0  ;;  %v1459_v4 = vmul.f32 %v3685_v53, %v1384_v13 }
 0x2b5   : > { %v1742_v24 = vpop.f32.mrf.mxu0  ;;  %2215 = vmatmul.mubr.bf16.vlgmr.msra.gmra.mxu1 %v1997_v56  ;;  %v1386_v26 = vunpack.c.h.bf16 %v3505_v40  ;;  %v1387_v40 = vunpack.c.l.bf16 %v3517_v59 }
 0x2b6   : > { %v1882_v32 = vadd.f32 %v3699_v61, %v1739_v52  ;;  %v1945_v25 = vmax.f32 %v1881_v29, 0.0  ;;  %v1743_v43 = vadd.f32 %v1742_v24, %v1454_v50  ;;  %v1460_v29 = vmul.f32 %v3689_v51, %v1385_v2 }
 0x2b7   : > { %v1744_v3 = vpop.f32.mrf.mxu0  ;;  %v1461_v24 = vmul.f32 %v3685_v53, %v1386_v26 }
 0x2b8   : > { %v1946_v27 = vmax.f32 %v1882_v32, 0.0  ;;  %v1745_v42 = vadd.f32 %v1744_v3, %v1455_v36  ;;  %v1999_v45 = vpack.c.bf16 %v1945_v25, %v1943_v22  ;;  %v1883_v6 = vadd.f32 %v3703_v58, %v1743_v43 }
 0x2b9   : > { %v1746_v17 = vpop.f32.mrf.mxu0  ;;  %v1388_v36 = vunpack.c.l.bf16 %v3515_v57 }
 0x2ba   : > { %v1747_v18 = vadd.f32 %v1746_v17, %v1456_v8  ;;  %v2000_v28 = vpack.c.bf16 %v1946_v27, %v1944_v31  ;;  %v1884_v48 = vadd.f32 %v3699_v61, %v1745_v42  ;;  %v1947_v41 = vmax.f32 %v1883_v6, 0.0 }
 0x2bb   : > { %v1748_v44 = vpop.f32.mrf.mxu0  ;;  %v1389_v27 = vunpack.c.h.bf16 %v3517_v59  ;;  %v1463_v43 = vmul.f32 %v3685_v53, %v1388_v36  ;;  %v1390_v17 = vunpack.c.h.bf16 %v3515_v57  ;;  %v1391_v57 = vunpack.c.l.bf16 %v3527_v14 }
 0x2bc   : > { %v1885_v49 = vadd.f32 %v3703_v58, %v1747_v18  ;;  %v1749_v37 = vadd.f32 %v1748_v44, %v1457_v10  ;;  %2222 = vmatprep.mubr.bf16.mxu1 %v2000_v28  ;;  %v1948_v5 = vmax.f32 %v1884_v48, 0.0  ;;  %v1462_v10 = vmul.f32 %v3689_v51, %v1387_v40 }
 0x2bd   : > { %v1752_v11 = vpop.f32.mrf.mxu0  ;;  %2223 = vmatmul.mubr.bf16.gmra.mxu1 %v1999_v45  ;;  %v1464_v45 = vmul.f32 %v3689_v51, %v1389_v27  ;;  %v1465_v2 = vmul.f32 %v3685_v53, %v1390_v17  ;;  %v1396_v27 = vunpack.c.l.bf16 %v3535_v30 }
 0x2be   : > { %v1886_v1 = vadd.f32 %v3699_v61, %v1749_v37  ;;  %v1949_v7 = vmax.f32 %v1885_v49, 0.0  ;;  %v1753_v52 = vadd.f32 %v1752_v11, %v1458_v34  ;;  %v1392_v11 = vunpack.c.l.bf16 %v3525_v12 }
 0x2bf   : > { %v1754_v56 = vpop.f32.mrf.mxu0 }
 0x2c0   : > { %v1950_v9 = vmax.f32 %v1886_v1, 0.0  ;;  %v1755_v19 = vadd.f32 %v1754_v56, %v1459_v4  ;;  %v2001_v25 = vpack.c.bf16 %v1949_v7, %v1947_v41  ;;  %v1887_v42 = vadd.f32 %v3703_v58, %v1753_v52 }
 0x2c1   : > { %v1756_v20 = vpop.f32.mrf.mxu0  ;;  %v1393_v56 = vunpack.c.h.bf16 %v3527_v14  ;;  %v1394_v41 = vunpack.c.h.bf16 %v3525_v12  ;;  %v1395_v12 = vunpack.c.l.bf16 %v3537_v33 }
 0x2c2   : > { %v1757_v35 = vadd.f32 %v1756_v20, %v1460_v29  ;;  %v2002_v32 = vpack.c.bf16 %v1950_v9, %v1948_v5  ;;  %v1888_v50 = vadd.f32 %v3699_v61, %v1755_v19  ;;  %v1951_v59 = vmax.f32 %v1887_v42, 0.0 }
 0x2c3   : > { %v1758_v60 = vpop.f32.mrf.mxu0  ;;  %v1467_v29 = vmul.f32 %v3685_v53, %v1392_v11  ;;  %v1466_v20 = vmul.f32 %v3689_v51, %v1391_v57 }
 0x2c4   : > { %v1889_v3 = vadd.f32 %v3703_v58, %v1757_v35  ;;  %v1759_v31 = vadd.f32 %v1758_v60, %v1461_v24  ;;  %2230 = vmatprep.mubr.bf16.mxu1 %v2002_v32  ;;  %v1952_v13 = vmax.f32 %v1888_v50, 0.0  ;;  %v1468_v60 = vmul.f32 %v3689_v51, %v1393_v56 }
 0x2c5   : > { %v1762_v8 = vpop.f32.mrf.mxu0  ;;  %2231 = vmatmul.mubr.bf16.gmra.mxu1 %v2001_v25 }
 0x2c6   : > { %v1890_v22 = vadd.f32 %v3699_v61, %v1759_v31  ;;  %v1953_v18 = vmax.f32 %v1889_v3, 0.0  ;;  %v1763_v48 = vadd.f32 %v1762_v8, %v1462_v10  ;;  %v1469_v3 = vmul.f32 %v3685_v53, %v1394_v41 }
 0x2c7   : > { %v1764_v28 = vpop.f32.mrf.mxu0 }
 0x2c8   : > { %v1954_v44 = vmax.f32 %v1890_v22, 0.0  ;;  %v1765_v21 = vadd.f32 %v1764_v28, %v1463_v43  ;;  %v2003_v4 = vpack.c.bf16 %v1953_v18, %v1951_v59  ;;  %v1891_v5 = vadd.f32 %v3703_v58, %v1763_v48 }
 0x2c9   : > { %v1766_v49 = vpop.f32.mrf.mxu0  ;;  %v1397_v18 = vunpack.c.h.bf16 %v3537_v33  ;;  %v1470_v59 = vmul.f32 %v3689_v51, %v1395_v12 }
 0x2ca   : > { %v1767_v37 = vadd.f32 %v1766_v49, %v1464_v45  ;;  %v2004_v6 = vpack.c.bf16 %v1954_v44, %v1952_v13  ;;  %v1892_v26 = vadd.f32 %v3699_v61, %v1765_v21  ;;  %v1955_v14 = vmax.f32 %v1891_v5, 0.0 }
 0x2cb   : > { %v1768_v1 = vpop.f32.mrf.mxu0  ;;  %v1471_v44 = vmul.f32 %v3685_v53, %v1396_v27  ;;  %v1398_v21 = vunpack.c.h.bf16 %v3535_v30  ;;  %v1399_v30 = vunpack.c.l.bf16 %v3553_v55 }
 0x2cc   : > { %v1893_v7 = vadd.f32 %v3703_v58, %v1767_v37  ;;  %v1769_v34 = vadd.f32 %v1768_v1, %v1465_v2  ;;  %2238 = vmatprep.mubr.bf16.mxu1 %v2004_v6  ;;  %v1956_v24 = vmax.f32 %v1892_v26, 0.0  ;;  %v1472_v6 = vmul.f32 %v3689_v51, %v1397_v18 }
 0x2cd   : > { %v1772_v9 = vpop.f32.mrf.mxu0  ;;  %2239 = vmatmul.mubr.bf16.gmra.mxu1 %v2003_v4  ;;  %v1473_v4 = vmul.f32 %v3685_v53, %v1398_v21 }
 0x2ce   : > { %v1894_v19 = vadd.f32 %v3699_v61, %v1769_v34  ;;  %v1957_v52 = vmax.f32 %v1893_v7, 0.0  ;;  %v1773_v40 = vadd.f32 %v1772_v9, %v1466_v20  ;;  %v1400_v7 = vunpack.c.l.bf16 %v3551_v54 }
 0x2cf   : > { %v1774_v35 = vpop.f32.mrf.mxu0 }
 0x2d0   : > { %v1958_v32 = vmax.f32 %v1894_v19, 0.0  ;;  %v1775_v36 = vadd.f32 %v1774_v35, %v1467_v29  ;;  %v2005_v8 = vpack.c.bf16 %v1957_v52, %v1955_v14  ;;  %v1895_v10 = vadd.f32 %v3703_v58, %v1773_v40 }
 0x2d1   : > { %v1776_v25 = vpop.f32.mrf.mxu0  ;;  %v1401_v29 = vunpack.c.h.bf16 %v3553_v55  ;;  %v1475_v35 = vmul.f32 %v3685_v53, %v1400_v7 }
 0x2d2   : > { %v1777_v50 = vadd.f32 %v1776_v25, %v1468_v60  ;;  %v2006_v31 = vpack.c.bf16 %v1958_v32, %v1956_v24  ;;  %v1896_v22 = vadd.f32 %v3699_v61, %v1775_v36  ;;  %v1959_v33 = vmax.f32 %v1895_v10, 0.0 }
 0x2d3   : > { %v1778_v42 = vpop.f32.mrf.mxu0  ;;  %v1402_v24 = vunpack.c.h.bf16 %v3551_v54  ;;  %v1474_v36 = vmul.f32 %v3689_v51, %v1399_v30  ;;  %v1403_v54 = vunpack.c.l.bf16 %v3563_v16 }
 0x2d4   : > { %v1897_v43 = vadd.f32 %v3703_v58, %v1777_v50  ;;  %v1779_v17 = vadd.f32 %v1778_v42, %v1469_v3  ;;  %2246 = vmatprep.mubr.bf16.mxu1 %v2006_v31  ;;  %v1960_v49 = vmax.f32 %v1896_v22, 0.0  ;;  %v1476_v50 = vmul.f32 %v3689_v51, %v1401_v29 }
 0x2d5   : > { %v1782_v28 = vpop.f32.mrf.mxu0  ;;  %2247 = vmatmul.mubr.bf16.gmra.mxu1 %v2005_v8  ;;  %v1477_v42 = vmul.f32 %v3685_v53, %v1402_v24  ;;  %v1404_v8 = vunpack.c.l.bf16 %v3561_v15  ;;  %v1409_v29 = vunpack.c.h.bf16 %v3573_v39  ;;  %v1410_v24 = vunpack.c.h.bf16 %v3571_v38 }
 0x2d6   : > { %v1898_v13 = vadd.f32 %v3699_v61, %v1779_v17  ;;  %v1961_v45 = vmax.f32 %v1897_v43, 0.0  ;;  %v1783_v11 = vadd.f32 %v1782_v28, %v1470_v59  ;;  %v1405_v28 = vunpack.c.h.bf16 %v3563_v16 }
 0x2d7   : > { %v1784_v48 = vpop.f32.mrf.mxu0  ;;  %v1406_v59 = vunpack.c.h.bf16 %v3561_v15  ;;  %v1407_v15 = vunpack.c.l.bf16 %v3573_v39 }
 0x2d8   : > { %v1962_v37 = vmax.f32 %v1898_v13, 0.0  ;;  %v1785_v2 = vadd.f32 %v1784_v48, %v1471_v44  ;;  %v2007_v56 = vpack.c.bf16 %v1961_v45, %v1959_v33  ;;  %v1899_v41 = vadd.f32 %v3703_v58, %v1783_v11 }
 0x2d9   : > { %v1786_v1 = vpop.f32.mrf.mxu0  ;;  %v1479_v45 = vmul.f32 %v3685_v53, %v1404_v8  ;;  %v1480_v11 = vmul.f32 %v3689_v51, %v1405_v28 }
 0x2da   : > { %v1787_v57 = vadd.f32 %v1786_v1, %v1472_v6  ;;  %v2008_v26 = vpack.c.bf16 %v1962_v37, %v1960_v49  ;;  %v1900_v5 = vadd.f32 %v3699_v61, %v1785_v2  ;;  %v1963_v55 = vmax.f32 %v1899_v41, 0.0 }
 0x2db   : > { %v1788_v34 = vpop.f32.mrf.mxu0  ;;  %v1478_v49 = vmul.f32 %v3689_v51, %v1403_v54 }
 0x2dc   : > { %v1901_v9 = vadd.f32 %v3703_v58, %v1787_v57  ;;  %v1789_v19 = vadd.f32 %v1788_v34, %v1473_v4  ;;  %2254 = vmatprep.mubr.bf16.mxu1 %v2008_v26  ;;  %v1964_v14 = vmax.f32 %v1900_v5, 0.0  ;;  %v1481_v26 = vmul.f32 %v3685_v53, %v1406_v59 }
 0x2dd   : > { %v1792_v52 = vpop.f32.mrf.mxu0  ;;  %2255 = vmatmul.mubr.bf16.gmra.mxu1 %v2007_v56  ;;  %v1408_v34 = vunpack.c.l.bf16 %v3571_v38  ;;  %v1411_v38 = vunpack.c.l.bf16 %v3583_v63 }
 0x2de   : > { %v1902_v20 = vadd.f32 %v3699_v61, %v1789_v19  ;;  %v1965_v32 = vmax.f32 %v1901_v9, 0.0  ;;  %v1793_v3 = vadd.f32 %v1792_v52, %v1474_v36  ;;  %v1482_v36 = vmul.f32 %v3689_v51, %v1407_v15 }
 0x2df   : > { %v1794_v60 = vpop.f32.mrf.mxu0  ;;  %v1486_v59 = vmul.f32 %v3689_v51, %v1411_v38 }
 0x2e0   : > { %v1966_v40 = vmax.f32 %v1902_v20, 0.0  ;;  %v1795_v25 = vadd.f32 %v1794_v60, %v1475_v35  ;;  %v2009_v43 = vpack.c.bf16 %v1965_v32, %v1963_v55  ;;  %v1903_v13 = vadd.f32 %v3703_v58, %v1793_v3 }
 0x2e1   : > { %v1796_v31 = vpop.f32.mrf.mxu0  ;;  %v1483_v35 = vmul.f32 %v3685_v53, %v1408_v34 }
 0x2e2   : > { %v1797_v27 = vadd.f32 %v1796_v31, %v1476_v50  ;;  %v2010_v12 = vpack.c.bf16 %v1966_v40, %v1964_v14  ;;  %v1904_v17 = vadd.f32 %v3699_v61, %v1795_v25  ;;  %v1967_v16 = vmax.f32 %v1903_v13, 0.0 }
 0x2e3   : > { %v1798_v22 = vpop.f32.mrf.mxu0  ;;  %v1484_v50 = vmul.f32 %v3689_v51, %v1409_v29 }
 0x2e4   : > { %v1905_v18 = vadd.f32 %v3703_v58, %v1797_v27  ;;  %v1799_v10 = vadd.f32 %v1798_v22, %v1477_v42  ;;  %2262 = vmatprep.mubr.bf16.mxu1 %v2010_v12  ;;  %v1968_v2 = vmax.f32 %v1904_v17, 0.0  ;;  %v1485_v27 = vmul.f32 %v3685_v53, %v1410_v24 }
 0x2e5   : > { %v1802_v44 = vpop.f32.mrf.mxu0  ;;  %2263 = vmatmul.mubr.bf16.gmra.mxu1 %v2009_v43  ;;  %v1412_v12 = vunpack.c.l.bf16 %v3581_v62 }
 0x2e6   : > { %v1906_v21 = vadd.f32 %v3699_v61, %v1799_v10  ;;  %v1969_v48 = vmax.f32 %v1905_v18, 0.0  ;;  %v1803_v1 = vadd.f32 %v1802_v44, %v1478_v49  ;;  %v1413_v18 = vunpack.c.h.bf16 %v3583_v63 }
 0x2e7   : > { %v1804_v37 = vpop.f32.mrf.mxu0  ;;  %v1487_v44 = vmul.f32 %v3685_v53, %v1412_v12 }
 0x2e8   : > { %v1970_v6 = vmax.f32 %v1906_v21, 0.0  ;;  %v1805_v33 = vadd.f32 %v1804_v37, %v1479_v45  ;;  %v2011_v56 = vpack.c.bf16 %v1969_v48, %v1967_v16  ;;  %v1907_v41 = vadd.f32 %v3703_v58, %v1803_v1 }
 0x2e9   : > { %v1806_v57 = vpop.f32.mrf.mxu0  ;;  %v1414_v21 = vunpack.c.h.bf16 %v3581_v62  ;;  %v1415_v62 = vunpack.c.l.bf16 %v3593_v23 }
 0x2ea   : > { %v1807_v4 = vadd.f32 %v1806_v57, %v1480_v11  ;;  %v2012_v7 = vpack.c.bf16 %v1970_v6, %v1968_v2  ;;  %v1908_v5 = vadd.f32 %v3699_v61, %v1805_v33  ;;  %v1971_v39 = vmax.f32 %v1907_v41, 0.0 }
 0x2eb   : > { %v1808_v30 = vpop.f32.mrf.mxu0  ;;  %v1488_v6 = vmul.f32 %v3689_v51, %v1413_v18  ;;  %v1489_v1 = vmul.f32 %v3685_v53, %v1414_v21  ;;  %v1418_v41 = vunpack.c.h.bf16 %v3591_v0 }
 0x2ec   : > { %v1909_v9 = vadd.f32 %v3703_v58, %v1807_v4  ;;  %v1809_v19 = vadd.f32 %v1808_v30, %v1481_v26  ;;  %2270 = vmatprep.mubr.bf16.mxu1 %v2012_v7  ;;  %v1972_v14 = vmax.f32 %v1908_v5, 0.0  ;;  %v1416_v4 = vunpack.c.l.bf16 %v3591_v0 }
 0x2ed   : > { %v1812_v52 = vpop.f32.mrf.mxu0  ;;  %2271 = vmatmul.mubr.bf16.gmra.mxu1 %v2011_v56  ;;  %v1417_v56 = vunpack.c.h.bf16 %v3593_v23  ;;  %v1419_v0 = vunpack.c.l.bf16 %v3603_v47 }
 0x2ee   : > { %v1910_v20 = vadd.f32 %v3699_v61, %v1809_v19  ;;  %v1973_v32 = vmax.f32 %v1909_v9, 0.0  ;;  %v1813_v55 = vadd.f32 %v1812_v52, %v1482_v36  ;;  %v1491_v29 = vmul.f32 %v3685_v53, %v1416_v4 }
 0x2ef   : > { %v1814_v60 = vpop.f32.mrf.mxu0 }
 0x2f0   : > { %v1974_v40 = vmax.f32 %v1910_v20, 0.0  ;;  %v1815_v25 = vadd.f32 %v1814_v60, %v1483_v35  ;;  %v2013_v22 = vpack.c.bf16 %v1973_v32, %v1971_v39  ;;  %v1911_v10 = vadd.f32 %v3703_v58, %v1813_v55 }
 0x2f1   : > { %v1816_v3 = vpop.f32.mrf.mxu0  ;;  %v1490_v20 = vmul.f32 %v3689_v51, %v1415_v62  ;;  %v1492_v60 = vmul.f32 %v3689_v51, %v1417_v56  ;;  %v1420_v55 = vunpack.c.l.bf16 %v3601_v46 }
 0x2f2   : > { %v1817_v31 = vadd.f32 %v1816_v3, %v1484_v50  ;;  %v2014_v42 = vpack.c.bf16 %v1974_v40, %v1972_v14  ;;  %v1912_v54 = vadd.f32 %v3699_v61, %v1815_v25  ;;  %v1975_v63 = vmax.f32 %v1911_v10, 0.0 }
 0x2f3   : > { %v1818_v8 = vpop.f32.mrf.mxu0  ;;  %v1493_v50 = vmul.f32 %v3685_v53, %v1418_v41  ;;  %v1494_v10 = vmul.f32 %v3689_v51, %v1419_v0 }
 0x2f4   : > { %v1913_v43 = vadd.f32 %v3703_v58, %v1817_v31  ;;  %v1819_v17 = vadd.f32 %v1818_v8, %v1485_v27  ;;  %2278 = vmatprep.mubr.bf16.mxu1 %v2014_v42  ;;  %v1976_v49 = vmax.f32 %v1912_v54, 0.0  ;;  %v1421_v8 = vunpack.c.h.bf16 %v3603_v47 }
 0x2f5   : > { %v1822_v28 = vpop.f32.mrf.mxu0  ;;  %2279 = vmatmul.mubr.bf16.gmra.mxu1 %v2013_v22 }
 0x2f6   : > { %v1914_v13 = vadd.f32 %v3699_v61, %v1819_v17  ;;  %v1977_v45 = vmax.f32 %v1913_v43, 0.0  ;;  %v1823_v33 = vadd.f32 %v1822_v28, %v1486_v59  ;;  %v1495_v43 = vmul.f32 %v3685_v53, %v1420_v55 }
 0x2f7   : > { %v1824_v48 = vpop.f32.mrf.mxu0  ;;  %v1422_v17 = vunpack.c.h.bf16 %v3601_v46 }
 0x2f8   : > { %v1978_v37 = vmax.f32 %v1914_v13, 0.0  ;;  %v1825_v2 = vadd.f32 %v1824_v48, %v1487_v44  ;;  %v2015_v7 = vpack.c.bf16 %v1977_v45, %v1975_v63  ;;  %v1915_v5 = vadd.f32 %v3703_v58, %v1823_v33 }
 0x2f9   : > { %v1826_v11 = vpop.f32.mrf.mxu0  ;;  %v1496_v45 = vmul.f32 %v3689_v51, %v1421_v8 }
 0x2fa   : > { %v1827_v16 = vadd.f32 %v1826_v11, %v1488_v6  ;;  %v2016_v57 = vpack.c.bf16 %v1978_v37, %v1976_v49  ;;  %v1916_v34 = vadd.f32 %v3699_v61, %v1825_v2  ;;  %v1979_v23 = vmax.f32 %v1915_v5, 0.0 }
 0x2fb   : > { %v1828_v26 = vpop.f32.mrf.mxu0  ;;  %v1497_v37 = vmul.f32 %v3685_v53, %v1422_v17 }
 0x2fc   : > { %v1917_v30 = vadd.f32 %v3703_v58, %v1827_v16  ;;  %v1829_v15 = vadd.f32 %v1828_v26, %v1489_v1  ;;  %2286 = vmatprep.mubr.bf16.mxu1 %v2016_v57  ;;  %v1980_v24 = vmax.f32 %v1916_v34, 0.0 }
 0x2fd   : > { %v1832_v9 = vpop.f32.mrf.mxu0  ;;  %2287 = vmatmul.mubr.bf16.gmra.mxu1 %v2015_v7  ;;  %v3032_v7 = vmov 0.0  }
 0x2fe   : > { %v1918_v19 = vadd.f32 %v3699_v61, %v1829_v15  ;;  %v1981_v52 = vmax.f32 %v1917_v30, 0.0  ;;  %v1833_v14 = vadd.f32 %v1832_v9, %v1490_v20  ;;  %422 = vst [vmem:[#allocation2] sm:$0x1] %v3032_v7 }
 0x2ff   : > { %v1834_v35 = vpop.f32.mrf.mxu0 }
 0x300   : > { %v1982_v32 = vmax.f32 %v1918_v19, 0.0  ;;  %v1835_v36 = vadd.f32 %v1834_v35, %v1491_v29  ;;  %v2017_v31 = vpack.c.bf16 %v1981_v52, %v1979_v23  ;;  %v1919_v38 = vadd.f32 %v3703_v58, %v1833_v14 }
 0x301   : > { %v1836_v40 = vpop.f32.mrf.mxu0 }
 0x302   : > { %v1837_v25 = vadd.f32 %v1836_v40, %v1492_v60  ;;  %v2018_v39 = vpack.c.bf16 %v1982_v32, %v1980_v24  ;;  %v1920_v27 = vadd.f32 %v3699_v61, %v1835_v36  ;;  %v1983_v47 = vmax.f32 %v1919_v38, 0.0 }
 0x303   : > { %v1838_v3 = vpop.f32.mrf.mxu0 }
 0x304   : > { %v1921_v42 = vadd.f32 %v3703_v58, %v1837_v25  ;;  %v1839_v12 = vadd.f32 %v1838_v3, %v1493_v50  ;;  %2294 = vmatprep.mubr.bf16.mxu1 %v2018_v39  ;;  %v1984_v13 = vmax.f32 %v1920_v27, 0.0 }
 0x305   : > { %v1842_v22 = vpop.f32.mrf.mxu0  ;;  %2295 = vmatmul.mubr.bf16.gmra.mxu1 %v2017_v31 }
 0x306   : > { %v1922_v54 = vadd.f32 %v3699_v61, %v1839_v12  ;;  %v1985_v18 = vmax.f32 %v1921_v42, 0.0  ;;  %v1843_v59 = vadd.f32 %v1842_v22, %v1494_v10 }
 0x307   : > { %v1844_v28 = vpop.f32.mrf.mxu0 }
 0x308   : > { %v1986_v44 = vmax.f32 %v1922_v54, 0.0  ;;  %v1845_v21 = vadd.f32 %v1844_v28, %v1495_v43  ;;  %v2019_v63 = vpack.c.bf16 %v1985_v18, %v1983_v47  ;;  %v1923_v16 = vadd.f32 %v3703_v58, %v1843_v59  ;;  %v3903_v54 = vld [vmem:[%s4002_s9] ss:$0 sm:$0xff] }
 0x309   : > { %v1846_v48 = vpop.f32.mrf.mxu0 }
 0x30a   : > { %v1847_v49 = vadd.f32 %v1846_v48, %v1496_v45  ;;  %v2020_v2 = vpack.c.bf16 %v1986_v44, %v1984_v13  ;;  %v1924_v46 = vadd.f32 %v3699_v61, %v1845_v21  ;;  %v1987_v26 = vmax.f32 %v1923_v16, 0.0 }
 0x30b   : > { %v1848_v6 = vpop.f32.mrf.mxu0 }
 0x30c   : > { %v1925_v33 = vadd.f32 %v3703_v58, %v1847_v49  ;;  %v1849_v11 = vadd.f32 %v1848_v6, %v1497_v37  ;;  %2302 = vmatprep.mubr.bf16.mxu1 %v2020_v2  ;;  %v1988_v57 = vmax.f32 %v1924_v46, 0.0 }
 0x30d   : > { %2303 = vmatmul.mubr.bf16.gmra.mxu1 %v2019_v63 }
 0x30e   : > { %v1926_v51 = vadd.f32 %v3699_v61, %v1849_v11  ;;  %v1989_v1 = vmax.f32 %v1925_v33, 0.0 }
 0x310   : > { %v1990_v4 = vmax.f32 %v1926_v51, 0.0  ;;  %v2021_v53 = vpack.c.bf16 %v1989_v1, %v1987_v26 }
 0x312   : > { %v2022_v62 = vpack.c.bf16 %v1990_v4, %v1988_v57 }
 0x314   : > { %2310 = vmatprep.mubr.bf16.mxu1 %v2022_v62 }
 0x315   : > { %2311 = vmatmul.mubr.bf16.gmra.mxu1 %v2021_v53 }
 0x35d   : > { %v2623_v34 = vpop.f32.mrf.mxu0 }
 0x35f   : > { %v2624_v15 = vpop.f32.mrf.mxu0 }
 0x360   : > { %v2625_v38 = vadd.f32 %v2624_v15, %v2623_v34 }
 0x361   : > { %v2626_v9 = vpop.f32.mrf.mxu0 }
 0x362   : > { %v2193_v13 = vadd.f32 %v2625_v38, %v3903_v54 }
 0x363   : > { %v2627_v29 = vpop.f32.mrf.mxu0 }
 0x364   : > { %v2628_v42 = vadd.f32 %v2627_v29, %v2626_v9  ;;  %v2319_v37 = vmax.f32 %v2193_v13, 0.0 }
 0x365   : > { %v2629_v52 = vpop.f32.mrf.mxu0 }
 0x366   : > { %v2196_v17 = vadd.f32 %v2628_v42, %v3903_v54 }
 0x367   : > { %v2630_v24 = vpop.f32.mrf.mxu0 }
 0x368   : > { %v2631_v22 = vadd.f32 %v2630_v24, %v2629_v52  ;;  %v2320_v47 = vmax.f32 %v2196_v17, 0.0 }
 0x369   : > { %v2632_v60 = vpop.f32.mrf.mxu0 }
 0x36a   : > { %v2201_v44 = vadd.f32 %v2631_v22, %v3903_v54  ;;  %v2352_v33 = vadd.f32 %v2320_v47, %v2319_v37 }
 0x36b   : > { %v2633_v40 = vpop.f32.mrf.mxu0 }
 0x36c   : > { %v2634_v18 = vadd.f32 %v2633_v40, %v2632_v60  ;;  %v2321_v2 = vmax.f32 %v2201_v44, 0.0 }
 0x36d   : > { %v2635_v39 = vpop.f32.mrf.mxu0 }
 0x36e   : > { %v2204_v59 = vadd.f32 %v2634_v18, %v3903_v54  ;;  %v2353_v57 = vadd.f32 %v2352_v33, %v2321_v2 }
 0x36f   : > { %v2636_v0 = vpop.f32.mrf.mxu0 }
 0x370   : > { %v2637_v21 = vadd.f32 %v2636_v0, %v2635_v39  ;;  %v2322_v11 = vmax.f32 %v2204_v59, 0.0 }
 0x371   : > { %v2638_v12 = vpop.f32.mrf.mxu0 }
 0x372   : > { %v2209_v6 = vadd.f32 %v2637_v21, %v3903_v54  ;;  %v2354_v7 = vadd.f32 %v2353_v57, %v2322_v11 }
 0x373   : > { %v2639_v10 = vpop.f32.mrf.mxu0 }
 0x374   : > { %v2640_v48 = vadd.f32 %v2639_v10, %v2638_v12  ;;  %v2323_v4 = vmax.f32 %v2209_v6, 0.0 }
 0x375   : > { %v2641_v30 = vpop.f32.mrf.mxu1 }
 0x376   : > { %v2212_v16 = vadd.f32 %v2640_v48, %v3903_v54 }
 0x377   : > { %v2642_v56 = vpop.f32.mrf.mxu1 }
 0x378   : > { %v2643_v63 = vadd.f32 %v2642_v56, %v2641_v30  ;;  %v2324_v34 = vmax.f32 %v2212_v16, 0.0  ;;  %v2355_v30 = vadd.f32 %v2354_v7, %v2323_v4 }
 0x379   : > { %v2644_v5 = vpop.f32.mrf.mxu1 }
 0x37a   : > { %v2217_v26 = vadd.f32 %v2643_v63, %v3903_v54 }
 0x37b   : > { %v2645_v58 = vpop.f32.mrf.mxu1 }
 0x37c   : > { %v2646_v51 = vadd.f32 %v2645_v58, %v2644_v5  ;;  %v2325_v56 = vmax.f32 %v2217_v26, 0.0  ;;  %v2356_v5 = vadd.f32 %v2355_v30, %v2324_v34 }
 0x37d   : > { %v2647_v19 = vpop.f32.mrf.mxu1 }
 0x37e   : > { %v2220_v15 = vadd.f32 %v2646_v51, %v3903_v54 }
 0x37f   : > { %v2648_v61 = vpop.f32.mrf.mxu1 }
 0x380   : > { %v2649_v62 = vadd.f32 %v2648_v61, %v2647_v19  ;;  %v2326_v58 = vmax.f32 %v2220_v15, 0.0  ;;  %v2357_v19 = vadd.f32 %v2356_v5, %v2325_v56 }
 0x381   : > { %v2650_v41 = vpop.f32.mrf.mxu1 }
 0x382   : > { %v2225_v52 = vadd.f32 %v2649_v62, %v3903_v54 }
 0x383   : > { %v2651_v20 = vpop.f32.mrf.mxu1 }
 0x384   : > { %v2652_v9 = vadd.f32 %v2651_v20, %v2650_v41  ;;  %v2327_v61 = vmax.f32 %v2225_v52, 0.0  ;;  %v2358_v41 = vadd.f32 %v2357_v19, %v2326_v58 }
 0x385   : > { %v2653_v35 = vpop.f32.mrf.mxu1 }
 0x386   : > { %v2228_v40 = vadd.f32 %v2652_v9, %v3903_v54 }
 0x387   : > { %v2654_v32 = vpop.f32.mrf.mxu1 }
 0x388   : > { %v2655_v24 = vadd.f32 %v2654_v32, %v2653_v35  ;;  %v2328_v20 = vmax.f32 %v2228_v40, 0.0  ;;  %v2359_v32 = vadd.f32 %v2358_v41, %v2327_v61 }
 0x389   : > { %v2656_v36 = vpop.f32.mrf.mxu1 }
 0x38a   : > { %v2233_v42 = vadd.f32 %v2655_v24, %v3903_v54  ;;  %v2360_v13 = vadd.f32 %v2359_v32, %v2328_v20 }
 0x38b   : > { %v2657_v23 = vpop.f32.mrf.mxu1 }
 0x38c   : > { %v2658_v39 = vadd.f32 %v2657_v23, %v2656_v36  ;;  %v2329_v18 = vmax.f32 %v2233_v42, 0.0 }
 0x38d   : > { %v2659_v14 = vpop.f32.mrf.mxu1 }
 0x38e   : > { %v2236_v22 = vadd.f32 %v2658_v39, %v3903_v54  ;;  %v2361_v47 = vadd.f32 %v2360_v13, %v2329_v18 }
 0x38f   : > { %v2660_v25 = vpop.f32.mrf.mxu1 }
 0x390   : > { %v2661_v12 = vadd.f32 %v2660_v25, %v2659_v14  ;;  %v2330_v44 = vmax.f32 %v2236_v22, 0.0 }
 0x391   : > { %v3890_v50 = vpop.f32.mrf.mxu1 }
 0x392   : > { %v2241_v10 = vadd.f32 %v2661_v12, %v3903_v54  ;;  %v2362_v37 = vadd.f32 %v2361_v47, %v2330_v44 }
 0x393   : > { %v2663_v55 = vpop.f32.mrf.mxu1 }
 0x394   : > { %v2664_v17 = vadd.f32 %v2663_v55, %v3890_v50  ;;  %v2331_v59 = vmax.f32 %v2241_v10, 0.0 }
 0x395   : > { %v3892_v3 = vpop.f32.mrf.mxu1 }
 0x396   : > { %v2244_v14 = vadd.f32 %v2664_v17, %v3903_v54  ;;  %v2363_v63 = vadd.f32 %v2362_v37, %v2331_v59 }
 0x397   : > { %v3894_v31 = vpop.f32.mrf.mxu1 }
 0x398   : > { %v2667_v36 = vadd.f32 %v3894_v31, %v3892_v3  ;;  %v2332_v2 = vmax.f32 %v2244_v14, 0.0 }
 0x399   : > { %v3896_v27 = vpop.f32.mrf.mxu1 }
 0x39a   : > { %v2249_v50 = vadd.f32 %v2667_v36, %v3903_v54  ;;  %v2364_v16 = vadd.f32 %v2363_v63, %v2332_v2 }
 0x39b   : > { %v3898_v8 = vpop.f32.mrf.mxu1 }
 0x39c   : > { %v2670_v25 = vadd.f32 %v3898_v8, %v3896_v27  ;;  %v2333_v33 = vmax.f32 %v2249_v50, 0.0 }
 0x39d   : > { %v3905_v43 = vpop.f32.mrf.mxu1 }
 0x39e   : > { %v2252_v3 = vadd.f32 %v2670_v25, %v3903_v54 }
 0x39f   : > { %v2672_v28 = vpop.f32.mrf.mxu1 }
 0x3a0   : > { %v2673_v55 = vadd.f32 %v2672_v28, %v3905_v43  ;;  %v2334_v51 = vmax.f32 %v2252_v3, 0.0  ;;  %v2365_v28 = vadd.f32 %v2364_v16, %v2333_v33 }
 0x3a1   : > { %v3910_v45 = vpop.f32.mrf.mxu1 }
 0x3a2   : > { %v2257_v11 = vadd.f32 %v2673_v55, %v3903_v54 }
 0x3a3   : > { %v2675_v49 = vpop.f32.mrf.mxu1 }
 0x3a4   : > { %v2676_v31 = vadd.f32 %v2675_v49, %v3910_v45  ;;  %v2335_v26 = vmax.f32 %v2257_v11, 0.0  ;;  %v2366_v45 = vadd.f32 %v2365_v28, %v2334_v51 }
 0x3a5   : > { %v2677_v46 = vpop.f32.mrf.mxu1 }
 0x3a6   : > { %v2260_v57 = vadd.f32 %v2676_v31, %v3903_v54 }
 0x3a7   : > { %v2678_v1 = vpop.f32.mrf.mxu1 }
 0x3a8   : > { %v2679_v27 = vadd.f32 %v2678_v1, %v2677_v46  ;;  %v2336_v49 = vmax.f32 %v2260_v57, 0.0  ;;  %v2367_v46 = vadd.f32 %v2366_v45, %v2335_v26 }
 0x3a9   : > { %v2680_v53 = vpop.f32.mrf.mxu1 }
 0x3aa   : > { %v2265_v62 = vadd.f32 %v2679_v27, %v3903_v54 }
 0x3ab   : > { %v2681_v29 = vpop.f32.mrf.mxu1 }
 0x3ac   : > { %v2682_v4 = vadd.f32 %v2681_v29, %v2680_v53  ;;  %v2337_v1 = vmax.f32 %v2265_v62, 0.0  ;;  %v2368_v53 = vadd.f32 %v2367_v46, %v2336_v49 }
 0x3ad   : > { %v2683_v60 = vpop.f32.mrf.mxu1 }
 0x3ae   : > { %v2268_v15 = vadd.f32 %v2682_v4, %v3903_v54 }
 0x3af   : > { %v2684_v0 = vpop.f32.mrf.mxu1 }
 0x3b0   : > { %v2685_v7 = vadd.f32 %v2684_v0, %v2683_v60  ;;  %v2338_v29 = vmax.f32 %v2268_v15, 0.0  ;;  %v2369_v60 = vadd.f32 %v2368_v53, %v2337_v1 }
 0x3b1   : > { %v2686_v38 = vpop.f32.mrf.mxu1 }
 0x3b2   : > { %v2273_v56 = vadd.f32 %v2685_v7, %v3903_v54  ;;  %v2370_v42 = vadd.f32 %v2369_v60, %v2338_v29  ;;  %v2351_v29 = vld [vmem:[#allocation2] sm:$0x1] }
 0x3b3   : > { %v2687_v35 = vpop.f32.mrf.mxu1 }
 0x3b4   : > { %v2688_v9 = vadd.f32 %v2687_v35, %v2686_v38  ;;  %v2339_v39 = vmax.f32 %v2273_v56, 0.0 }
 0x3b5   : > { %v2689_v23 = vpop.f32.mrf.mxu1 }
 0x3b6   : > { %v2276_v5 = vadd.f32 %v2688_v9, %v3903_v54  ;;  %v2371_v22 = vadd.f32 %v2370_v42, %v2339_v39 }
 0x3b7   : > { %v2690_v21 = vpop.f32.mrf.mxu1 }
 0x3b8   : > { %v2691_v52 = vadd.f32 %v2690_v21, %v2689_v23  ;;  %v2340_v12 = vmax.f32 %v2276_v5, 0.0 }
 0x3b9   : > { %v2692_v48 = vpop.f32.mrf.mxu1 }
 0x3ba   : > { %v2281_v0 = vadd.f32 %v2691_v52, %v3903_v54  ;;  %v2372_v10 = vadd.f32 %v2371_v22, %v2340_v12 }
 0x3bb   : > { %v2693_v6 = vpop.f32.mrf.mxu1 }
 0x3bc   : > { %v2694_v58 = vadd.f32 %v2693_v6, %v2692_v48  ;;  %v2341_v17 = vmax.f32 %v2281_v0, 0.0 }
 0x3bd   : > { %v2695_v8 = vpop.f32.mrf.mxu1 }
 0x3be   : > { %v2284_v38 = vadd.f32 %v2694_v58, %v3903_v54  ;;  %v2373_v14 = vadd.f32 %v2372_v10, %v2341_v17 }
 0x3bf   : > { %v2696_v43 = vpop.f32.mrf.mxu1 }
 0x3c0   : > { %v2697_v19 = vadd.f32 %v2696_v43, %v2695_v8  ;;  %v2342_v36 = vmax.f32 %v2284_v38, 0.0 }
 0x3c1   : > { %v2698_v34 = vpop.f32.mrf.mxu1 }
 0x3c2   : > { %v2289_v35 = vadd.f32 %v2697_v19, %v3903_v54  ;;  %v2374_v50 = vadd.f32 %v2373_v14, %v2342_v36 }
 0x3c3   : > { %v2699_v30 = vpop.f32.mrf.mxu1 }
 0x3c4   : > { %v2700_v41 = vadd.f32 %v2699_v30, %v2698_v34  ;;  %v2343_v25 = vmax.f32 %v2289_v35, 0.0 }
 0x3c5   : > { %v2701_v24 = vpop.f32.mrf.mxu1 }
 0x3c6   : > { %v2292_v23 = vadd.f32 %v2700_v41, %v3903_v54  ;;  %v2375_v2 = vadd.f32 %v2374_v50, %v2343_v25 }
 0x3c7   : > { %v2702_v40 = vpop.f32.mrf.mxu1 }
 0x3c8   : > { %v2703_v32 = vadd.f32 %v2702_v40, %v2701_v24  ;;  %v2344_v55 = vmax.f32 %v2292_v23, 0.0 }
 0x3c9   : > { %v2704_v61 = vpop.f32.mrf.mxu1 }
 0x3ca   : > { %v2297_v21 = vadd.f32 %v2703_v32, %v3903_v54  ;;  %v2376_v33 = vadd.f32 %v2375_v2, %v2344_v55 }
 0x3cb   : > { %v2705_v20 = vpop.f32.mrf.mxu1 }
 0x3cc   : > { %v2706_v13 = vadd.f32 %v2705_v20, %v2704_v61  ;;  %v2345_v3 = vmax.f32 %v2297_v21, 0.0 }
 0x3cd   : > { %v2707_v18 = vpop.f32.mrf.mxu1 }
 0x3ce   : > { %v2300_v48 = vadd.f32 %v2706_v13, %v3903_v54  ;;  %v2377_v16 = vadd.f32 %v2376_v33, %v2345_v3 }
 0x3cf   : > { %v2708_v44 = vpop.f32.mrf.mxu1 }
 0x3d0   : > { %v2709_v47 = vadd.f32 %v2708_v44, %v2707_v18  ;;  %v2346_v11 = vmax.f32 %v2300_v48, 0.0 }
 0x3d1   : > { %v2710_v59 = vpop.f32.mrf.mxu1 }
 0x3d2   : > { %v2305_v31 = vadd.f32 %v2709_v47, %v3903_v54  ;;  %v2378_v43 = vadd.f32 %v2377_v16, %v2346_v11 }
 0x3d3   : > { %v2711_v37 = vpop.f32.mrf.mxu1 }
 0x3d4   : > { %v2712_v6 = vadd.f32 %v2711_v37, %v2710_v59  ;;  %v2347_v51 = vmax.f32 %v2305_v31, 0.0 }
 0x3d5   : > { %v2713_v63 = vpop.f32.mrf.mxu1 }
 0x3d6   : > { %v2308_v27 = vadd.f32 %v2712_v6, %v3903_v54  ;;  %v2379_v7 = vadd.f32 %v2378_v43, %v2347_v51 }
 0x3d7   : > { %v2714_v8 = vpop.f32.mrf.mxu1 }
 0x3d8   : > { %v2715_v57 = vadd.f32 %v2714_v8, %v2713_v63  ;;  %v2348_v28 = vmax.f32 %v2308_v27, 0.0 }
 0x3d9   : > { %v2716_v4 = vpop.f32.mrf.mxu1 }
 0x3da   : > { %v2313_v26 = vadd.f32 %v2715_v57, %v3903_v54  ;;  %v2380_v49 = vadd.f32 %v2379_v7, %v2348_v28 }
 0x3db   : > { %v2717_v62 = vpop.f32.mrf.mxu1 }
 0x3dc   : > { %v2349_v34 = vmax.f32 %v2313_v26, 0.0  ;;  %v2718_v45 = vadd.f32 %v2717_v62, %v2716_v4 }
 0x3de   : > { %v2316_v15 = vadd.f32 %v2718_v45, %v3903_v54  ;;  %v2381_v9 = vadd.f32 %v2380_v49, %v2349_v34 }
 0x3e0   : > { %v2350_v30 = vmax.f32 %v2316_v15, 0.0 }
 0x3e2   : > { %v2382_v46 = vadd.f32 %v2381_v9, %v2350_v30 }
 0x3e4   : > { %v2383_v1 = vrot.slane %v2382_v46, 4 }
 0x3e6   : > { %v2384_v56 = vadd.f32 %v2383_v1, %v2382_v46 }
 0x3e8   : > { %v2385_v52 = vrot.slane %v2384_v56, 2 }
 0x3ea   : > { %v2386_v24 = vadd.f32 %v2385_v52, %v2384_v56 }
 0x3ec   : > { %v2387_v53 = vrot.slane %v2386_v24, 1 }
 0x3ee   : > { %v2388_v5 = vadd.f32 %v2387_v53, %v2386_v24 }
 0x3f0   : > { %v2389_v58 = vadd.f32 %v2388_v5, %v2351_v29 }
 0x3f2   : > { %2390 = vst [vmem:[#allocation2] sm:$0x1] %v2389_v58 }
 0x3f9   : > { %v2394_v54 = vld [vmem:[#allocation2] sm:$0x1] }
 0x3fa   : > { %2395 = vst [vmem:[%s403_s28] sm:$0x1] %v2394_v54 }
 0x3fb   : > { %2959 = shalt.err (!%p2956_p3)
}
 0x3fc   : > { %s2960_s12 = scalar_lea.hbm %s3953_s24, 16  ;;  %s2964_s30 = scalar_lea.hbm %s4003_s10, 32 }
 0x3fd   : > { %p2961_p5 = scmp.ne.s32.totalorder %s3953_s24, %s2960_s12  ;;  %p2965_p9 = scmp.lt.s32.totalorder %s3953_s24, %s4003_s10 }
 0x3fe   : > { %p2966_p12 = scmp.lt.s32.totalorder %s2964_s30, %s2960_s12 }
 0x3ff   : > { %p2962_p6 = pnand %p2961_p5, %p3129_p4 }
 0x400   : > { %p2967_p10 = por %p2966_p12, %p2965_p9 }
 0x401   : > { %p2963_p7 = pneg %p2962_p6 }
 0x403   : > { %p2968_p11 = pnand %p2967_p10, %p2963_p7 }
 0x405   : > { %2971 = shalt.err (!%p2968_p11)
}
 0x406   : > { %2739 = dma.vmem_to_hbm [thread:$0]  (%p3129_p4), %s2411_s19, 16, %s3953_s24, %s2397_s29  }
 0x407 PF: > { %p2751_p13 = scmp.ge.s32.totalorder %s3026_s18, 2  ;;  %s2422_s0 = sand.u32 1, %s3006_s13  }
 0x408   : > { %s2423_s11 = scalar_lea.sflag [#allocation5], %s2422_s0 }
 0x409   : > { %p2746_p0 = pnand %p2751_p13, %p3136_p8 }
 0x40b   : > { %p2747_p1 = pneg %p2746_p0 }
 0x40d   : > { %3001 = dma.done.wait (%p2747_p1), %s2423_s11, 16  }
 0x40e   : > { %3003 = vsyncadd (%p2747_p1), %s2423_s11, 4294967280  ;;  %s24_s18 = sadd.s32 1, %s3026_s18   ;;  %s4010_s13 = smov %s3010_s14 }
 0x40f   : > { %p21_p2 = scmp.ge.s32.totalorder %s24_s18, 4   ;;  %s4011_s14 = smov %s3014_s15 }
 0x410   : > { %s4012_s15 = smov %s3142_s26  ;;  %s4013_s16 = smov %s3022_s17 }
 0x411   : > { %s4014_s17 = smov %s4016_s21  ;;  %23 = sbr.rel (!%p21_p2) target bundleno = 7 (0x7), region = 108 }
 0x416   :  { %2427 = vsyncpa [#allocation4], 1 }
 0x417   :  { %2429 = vsyncpa [#allocation4 + $0x1], 1 }
 0x418   :  { %2430 = vsyncpa [#allocation5], 1 }
 0x419   :  { %2432 = vsyncpa [#allocation5 + $0x1], 1 }

</bundles_post_ra>
